<compile_context>
chip_gen: v7x
topology: tpu7x:2x2x1
jax: 0.10.0
libtpu: 0.0.40
codegen_flags: <defaults>
</compile_context>

<pallas_src>
import functools
import numpy as np
import jax
import jax.numpy as jnp
from jax.experimental import pallas as pl
from jax.experimental.pallas import tpu as pltpu

# ---- problem sizes (small, consistent with the module's B,1,H,W conventions) ----
H, Wd = 16, 16
N = H * Wd                # flattened image size
V, D = 8, 16
S = V * D                 # flattened sinogram size
B = 2                     # real batch
BP = 8                    # padded batch (full f32 sublane group)
CHID = 4                  # hidden channels of the CG-init CNN stand-in
K = 4 * N                 # 4 Haar subbands
CN = CHID * N
LAYERS = 3                # args.layers
CG_ITER = 5               # CG_alg(..., CGiter=5) inside MetaInvH.forward


# ----------------------------- Pallas kernel ---------------------------------
def _metainvh_fused_kernel(scal_ref, x0_ref, pty_ref, ata_ref, wtw_ref,
                           wmt_ref, wm_ref, c1t_ref, b1_ref, c2t_ref, b2_ref,
                           out_ref, x_scr):
    layer = pl.program_id(0)

    # carry the image across layers; seed from the FBP init at layer 0
    @pl.when(layer == 0)
    def _():
        x_scr[...] = x0_ref[...]

    laam = scal_ref[layer, 0]
    miu = scal_ref[layer, 1]

    x = x_scr[...]                  # (BP, N) f32
    AtA = ata_ref[...]              # (N, N)  f32
    WtW = wtw_ref[...]              # (N, N)  f32

    dotf = lambda a, b: jnp.dot(a, b, preferred_element_type=jnp.float32)
    relu = lambda t: jnp.maximum(t, 0.0)
    bf16 = jnp.bfloat16

    xb = x.astype(bf16)

    # ---- MetaInvH.forward: soft-threshold of W x (bf16 MXU path) ----
    Wu = dotf(xb, wmt_ref[...])                         # (BP, K)
    dnz = relu(Wu - laam) - relu(-Wu - laam)            # soft-threshold
    muWtV = dotf(dnz.astype(bf16), wm_ref[...])         # (BP, N)
    rhs = pty_ref[...] + muWtV * miu                    # PtY precomputed outside

    # CG-init CNN (stand-in for UNet(1,1)): conv3x3(1->CHID) -> ReLU -> conv3x3(CHID->1)
    # expressed as dense matrices built in glue.
    # TODO(synk): the real UNet architecture is not provided in the module source;
    # this is a deterministic 2-conv stand-in with identical I/O shapes.
    hmid = relu(dotf(xb, c1t_ref[...]) + b1_ref[...])   # (BP, CN)
    uk0 = dotf(hmid.astype(bf16), c2t_ref[...]) + b2_ref[...]   # (BP, N)

    def normal_ops(v):
        # q1 = (A^T A) v, q2 = (W^T W) v -- computed once, reused for
        # AWx / pATAp / pWTWp (the PyTorch code recomputes each).
        return dotf(v, AtA), dotf(v, WtW)

    q1, q2 = normal_ops(uk0)
    res = q1 + miu * q2 - rhs                           # AWx(uk0, miu) - rhs

    # ---- CG_alg(CgModule, uk0, miu, res, CGiter=5), unrolled ----
    r = res
    p = -res
    xk = uk0
    rTr = jnp.sum(r * r, axis=1, keepdims=True)         # carried across iterations
    for _ in range(CG_ITER):
        q1, q2 = normal_ops(p)
        pATAp = jnp.sum(p * q1, axis=1, keepdims=True)
        mu_pWtWp = miu * jnp.sum(p * q2, axis=1, keepdims=True)
        alphak = rTr / (mu_pWtWp + pATAp)
        xk = xk + alphak * p
        r = r + alphak * (q1 + miu * q2)
        rTr_new = jnp.sum(r * r, axis=1, keepdims=True)
        betak = rTr_new / rTr
        p = -r + betak * p
        rTr = rTr_new
    q1, q2 = normal_ops(p)
    pATAp = jnp.sum(p * q1, axis=1, keepdims=True)
    mu_pWtWp = miu * jnp.sum(p * q2, axis=1, keepdims=True)
    alphak = rTr / (mu_pWtWp + pATAp)
    xk = xk + alphak * p

    x_scr[...] = xk
    out_ref[...] = xk


@functools.partial(jax.jit, static_argnames=("num_steps",))
def metainvh_fused(scal, x0, pty, ata, wtw, wmt, wm, c1t, b1, c2t, b2, *,
                   num_steps):
    # resident operand: full-array block, same block index every grid step
    def const(shape):
        return pl.BlockSpec(shape, lambda l: (0,) * len(shape))

    return pl.pallas_call(
        _metainvh_fused_kernel,
        out_shape=jax.ShapeDtypeStruct((num_steps, BP, N), jnp.float32),
        grid_spec=pltpu.PrefetchScalarGridSpec(
            num_scalar_prefetch=0,
            grid=(num_steps,),
            in_specs=[
                pl.BlockSpec(memory_space=pltpu.MemorySpace.SMEM),  # scal table
                const((BP, N)),      # x0 (FBP init)
                const((BP, N)),      # PtY
                const((N, N)),       # AtA  (f32)
                const((N, N)),       # WtW  (f32)
                const((N, K)),       # Wm^T (bf16)
                const((K, N)),       # Wm   (bf16)
                const((N, CN)),      # C1^T (bf16)
                const((1, CN)),      # b1
                const((CN, N)),      # C2^T (bf16)
                const((1, N)),       # b2
            ],
            out_specs=pl.BlockSpec((None, BP, N), lambda l: (l, 0, 0)),
            scratch_shapes=[pltpu.VMEM((BP, N), jnp.float32)],
        ),
        compiler_params=pltpu.CompilerParams(
            dimension_semantics=("arbitrary",)),
    )(scal, x0, pty, ata, wtw, wmt, wm, c1t, b1, c2t, b2)


# ----------------------------- glue / wrapper ---------------------------------
def metainvnet_h_forward(sino, fbpu, params, layers=LAYERS):
    """Mirrors MetaInvNet_H.forward: returns img_list of length layers+1."""
    A, ata, wtw, wm_bf, wmt_bf, c1t_bf, b1, c2t_bf, b2 = params
    sino_flat = sino.reshape(B, S).astype(jnp.float32)
    x0 = fbpu.reshape(B, N).astype(jnp.float32)

    # PtY = A^T sino is constant across all layers -> computed once, outside.
    pty = jnp.dot(sino_flat, A, preferred_element_type=jnp.float32)

    # pad batch 2 -> 8 with edge-replication (no zero rows -> no 0/0 in CG)
    x0p = jnp.pad(x0, ((0, BP - B), (0, 0)), mode="edge")
    ptyp = jnp.pad(pty, ((0, BP - B), (0, 0)), mode="edge")

    # per-layer (laam, miu) schedule of MetaInvNet_H.forward
    laam, miu = 0.005, 0.01
    inc_lam, inc_miu = 0.0008, 0.02
    rows = []
    for i in range(layers + 1):
        if i > 0:
            laam -= inc_lam
            miu += inc_miu
        rows.append((laam, miu))
    scal = jnp.array(rows, dtype=jnp.float32)            # (layers+1, 2)

    imgs = metainvh_fused(scal, x0p, ptyp, ata, wtw, wmt_bf, wm_bf,
                          c1t_bf, b1, c2t_bf, b2, num_steps=layers + 1)
    return [imgs[i, :B].reshape(B, 1, H, Wd) for i in range(layers + 1)]


# ----------------------- deterministic parameter setup ------------------------
def build_haar_matrix(h, w):
    """Dense matrix of a level-1 undecimated 2D Haar transform (4 subbands,
    periodic boundary): (4*h*w, h*w). Stand-in for torch_W; transpose is torch_Wt."""
    n = h * w
    filts = np.array(
        [[[0.5, 0.5], [0.5, 0.5]],
         [[0.5, -0.5], [0.5, -0.5]],
         [[0.5, 0.5], [-0.5, -0.5]],
         [[0.5, -0.5], [-0.5, 0.5]]], dtype=np.float32)
    wm = np.zeros((4 * n, n), dtype=np.float32)
    for f in range(4):
        for i in range(h):
            for j in range(w):
                row = f * n + i * w + j
                for di in range(2):
                    for dj in range(2):
                        col = ((i + di) % h) * w + ((j + dj) % w)
                        wm[row, col] += filts[f, di, dj]
    return wm


def conv3x3_as_matrix(kernels, h, w):
    """Dense matrix of a 3x3 same-padding conv: (Cout*h*w, Cin*h*w)."""
    cout, cin, kh, kw = kernels.shape
    n = h * w
    m = np.zeros((cout * n, cin * n), dtype=np.float32)
    for co in range(cout):
        for ci in range(cin):
            for i in range(h):
                for j in range(w):
                    row = co * n + i * w + j
                    for di in range(kh):
                        for dj in range(kw):
                            ii, jj = i + di - 1, j + dj - 1
                            if 0 <= ii < h and 0 <= jj < w:
                                m[row, ci * n + ii * w + jj] += kernels[co, ci, di, dj]
    return m


def make_params(key):
    k1, k2, k3 = jax.random.split(key, 3)
    # TODO(synk): Radon/iRadon are external callables in the PyTorch forward;
    # modeled here as a deterministic dense matrix A and its adjoint A^T.
    A = (jax.random.normal(k1, (S, N), jnp.float32) / np.sqrt(N)).astype(jnp.float32)
    A_np = np.asarray(A)
    Wm = build_haar_matrix(H, Wd)                        # (K, N) f32

    # precomputed normal operators for the CG hot path (kept f32 for precision)
    AtA = jnp.asarray(A_np.T @ A_np)                     # (N, N)
    WtW = jnp.asarray(Wm.T @ Wm)                         # (N, N)

    ker1 = np.asarray(jax.random.normal(k2, (CHID, 1, 3, 3), jnp.float32)) * 0.2
    ker2 = np.asarray(jax.random.normal(k3, (1, CHID, 3, 3), jnp.float32)) * 0.2
    C1 = conv3x3_as_matrix(ker1, H, Wd)                  # (CN, N)
    C2 = conv3x3_as_matrix(ker2, H, Wd)                  # (N, CN)
    b1 = jnp.zeros((1, CN), jnp.float32)
    b2 = jnp.zeros((1, N), jnp.float32)

    # bf16 copies of the large, precision-tolerant operators (halves weight DMA,
    # native bf16 MXU path); dots accumulate in f32 inside the kernel.
    wm_bf = jnp.asarray(Wm, dtype=jnp.bfloat16)          # (K, N)
    wmt_bf = jnp.asarray(Wm.T, dtype=jnp.bfloat16)       # (N, K)
    c1t_bf = jnp.asarray(C1.T, dtype=jnp.bfloat16)       # (N, CN)
    c2t_bf = jnp.asarray(C2.T, dtype=jnp.bfloat16)       # (CN, N)

    return (A, AtA, WtW, wm_bf, wmt_bf, c1t_bf, b1, c2t_bf, b2)


if __name__ == "__main__":
    key = jax.random.PRNGKey(0)
    kp, ks, kf = jax.random.split(key, 3)
    params = make_params(kp)
    sino = jax.random.normal(ks, (B, 1, V, D), jnp.float32)     # sinogram
    fbpu = jax.random.normal(kf, (B, 1, H, Wd), jnp.float32)    # FBP init image
    img_list = metainvnet_h_forward(sino, fbpu, params, layers=LAYERS)
    jax.block_until_ready(img_list[-1])
    assert len(img_list) == LAYERS + 1
    assert img_list[-1].shape == (B, 1, H, Wd)
    assert bool(jnp.all(jnp.isfinite(img_list[-1])))
    print("KERNEL_OK")
</pallas_src>

<mosaic_0001>
module attributes {stable_mosaic.version = 11 : i64} {
  func.func @_metainvh_fused_kernel(%arg0: i32, %arg1: memref<4x2xf32, #tpu.memory_space<smem>>, %arg2: memref<8x256xf32, #tpu.memory_space<vmem>>, %arg3: memref<8x256xf32, #tpu.memory_space<vmem>>, %arg4: memref<256x256xf32, #tpu.memory_space<vmem>>, %arg5: memref<256x256xf32, #tpu.memory_space<vmem>>, %arg6: memref<256x1024xbf16, #tpu.memory_space<vmem>>, %arg7: memref<1024x256xbf16, #tpu.memory_space<vmem>>, %arg8: memref<256x1024xbf16, #tpu.memory_space<vmem>>, %arg9: memref<1x1024xf32, #tpu.memory_space<vmem>>, %arg10: memref<1024x256xbf16, #tpu.memory_space<vmem>>, %arg11: memref<1x256xf32, #tpu.memory_space<vmem>>, %arg12: memref<1x8x256xf32, #tpu.memory_space<vmem>>, %arg13: memref<8x256xf32, #tpu.memory_space<vmem>>) attributes {dimension_semantics = [#tpu.dimension_semantics<arbitrary>], iteration_bounds = array<i64: 4>, scalar_prefetch = 0 : i64, scratch_operands = 1 : i64, tpu.core_type = #tpu.core_type<tc>, window_params = [{transform_indices = @transform_0, window_bounds = array<i64: 4, 2>}, {pipeline_mode = #tpu.pipeline_mode<synchronous>, transform_indices = @transform_1, window_bounds = array<i64: 8, 256>}, {pipeline_mode = #tpu.pipeline_mode<synchronous>, transform_indices = @transform_2, window_bounds = array<i64: 8, 256>}, {pipeline_mode = #tpu.pipeline_mode<synchronous>, transform_indices = @transform_3, window_bounds = array<i64: 256, 256>}, {pipeline_mode = #tpu.pipeline_mode<synchronous>, transform_indices = @transform_4, window_bounds = array<i64: 256, 256>}, {pipeline_mode = #tpu.pipeline_mode<synchronous>, transform_indices = @transform_5, window_bounds = array<i64: 256, 1024>}, {pipeline_mode = #tpu.pipeline_mode<synchronous>, transform_indices = @transform_6, window_bounds = array<i64: 1024, 256>}, {pipeline_mode = #tpu.pipeline_mode<synchronous>, transform_indices = @transform_7, window_bounds = array<i64: 256, 1024>}, {pipeline_mode = #tpu.pipeline_mode<synchronous>, transform_indices = @transform_8, window_bounds = array<i64: 1, 1024>}, {pipeline_mode = #tpu.pipeline_mode<synchronous>, transform_indices = @transform_9, window_bounds = array<i64: 1024, 256>}, {pipeline_mode = #tpu.pipeline_mode<synchronous>, transform_indices = @transform_10, window_bounds = array<i64: 1, 256>}, {transform_indices = @transform_11, window_bounds = array<i64: 1, 8, 256>}]} {
    %c0_i32 = arith.constant 0 : i32
    %0 = arith.cmpi eq, %arg0, %c0_i32 : i32
    %1 = arith.extui %0 : i1 to i32
    %c0_i32_0 = arith.constant 0 : i32
    %2 = arith.cmpi ne, %1, %c0_i32_0 : i32
    scf.if %2 {
      %c0_71 = arith.constant 0 : index
      %c0_72 = arith.constant 0 : index
      %224 = vector.load %arg2[%c0_71, %c0_72] : memref<8x256xf32, #tpu.memory_space<vmem>>, vector<8x256xf32>
      %c0_73 = arith.constant 0 : index
      %c0_74 = arith.constant 0 : index
      %225 = vector.load %arg13[%c0_73, %c0_74] : memref<8x256xf32, #tpu.memory_space<vmem>>, vector<8x256xf32>
      tpu.vector_store %arg13[%c0_73, %c0_74], %224 {strides = array<i32>} : memref<8x256xf32, #tpu.memory_space<vmem>>, vector<8x256xf32>,
    } else {
    }
    %3 = arith.index_cast %arg0 : i32 to index
    %c0 = arith.constant 0 : index
    %4 = memref.load %arg1[%3, %c0] : memref<4x2xf32, #tpu.memory_space<smem>>
    %5 = arith.index_cast %arg0 : i32 to index
    %c1 = arith.constant 1 : index
    %6 = memref.load %arg1[%5, %c1] : memref<4x2xf32, #tpu.memory_space<smem>>
    %c0_1 = arith.constant 0 : index
    %c0_2 = arith.constant 0 : index
    %7 = vector.load %arg13[%c0_1, %c0_2] : memref<8x256xf32, #tpu.memory_space<vmem>>, vector<8x256xf32>
    %c0_3 = arith.constant 0 : index
    %c0_4 = arith.constant 0 : index
    %8 = vector.load %arg4[%c0_3, %c0_4] : memref<256x256xf32, #tpu.memory_space<vmem>>, vector<256x256xf32>
    %c0_5 = arith.constant 0 : index
    %c0_6 = arith.constant 0 : index
    %9 = vector.load %arg5[%c0_5, %c0_6] : memref<256x256xf32, #tpu.memory_space<vmem>>, vector<256x256xf32>
    %10 = arith.truncf %7 : vector<8x256xf32> to vector<8x256xbf16>
    %c0_7 = arith.constant 0 : index
    %c0_8 = arith.constant 0 : index
    %11 = vector.load %arg6[%c0_7, %c0_8] : memref<256x1024xbf16, #tpu.memory_space<vmem>>, vector<256x1024xbf16>
    %cst = arith.constant dense<0.000000e+00> : vector<8x1024xf32>
    %12 = tpu.matmul %10, %11, %cst {dimension_numbers = #tpu.dot_dimension_numbers<[1], [0], [0], [1], [0, 0, 1, 1], [], []>} : vector<8x256xbf16>, vector<256x1024xbf16>, vector<8x1024xf32> -> vector<8x1024xf32>
    %13 = vector.broadcast %4 : f32 to vector<8x1024xf32>
    %14 = arith.subf %12, %13 : vector<8x1024xf32>
    %cst_9 = arith.constant 0.000000e+00 : f32
    %15 = vector.broadcast %cst_9 : f32 to vector<8x1024xf32>
    %16 = arith.maximumf %14, %15 : vector<8x1024xf32>
    %cst_10 = arith.constant 0.000000e+00 : f32
    %17 = vector.broadcast %cst_10 : f32 to vector<8x1024xf32>
    %18 = arith.subf %17, %12 : vector<8x1024xf32>
    %19 = vector.broadcast %4 : f32 to vector<8x1024xf32>
    %20 = arith.subf %18, %19 : vector<8x1024xf32>
    %cst_11 = arith.constant 0.000000e+00 : f32
    %21 = vector.broadcast %cst_11 : f32 to vector<8x1024xf32>
    %22 = arith.maximumf %20, %21 : vector<8x1024xf32>
    %23 = arith.subf %16, %22 : vector<8x1024xf32>
    %24 = arith.truncf %23 : vector<8x1024xf32> to vector<8x1024xbf16>
    %c0_12 = arith.constant 0 : index
    %c0_13 = arith.constant 0 : index
    %25 = vector.load %arg7[%c0_12, %c0_13] : memref<1024x256xbf16, #tpu.memory_space<vmem>>, vector<1024x256xbf16>
    %cst_14 = arith.constant dense<0.000000e+00> : vector<8x256xf32>
    %26 = tpu.matmul %24, %25, %cst_14 {dimension_numbers = #tpu.dot_dimension_numbers<[1], [0], [0], [1], [0, 0, 1, 1], [], []>} : vector<8x1024xbf16>, vector<1024x256xbf16>, vector<8x256xf32> -> vector<8x256xf32>
    %c0_15 = arith.constant 0 : index
    %c0_16 = arith.constant 0 : index
    %27 = vector.load %arg3[%c0_15, %c0_16] : memref<8x256xf32, #tpu.memory_space<vmem>>, vector<8x256xf32>
    %28 = vector.broadcast %6 : f32 to vector<8x256xf32>
    %29 = arith.mulf %26, %28 : vector<8x256xf32>
    %30 = arith.addf %27, %29 : vector<8x256xf32>
    %c0_17 = arith.constant 0 : index
    %c0_18 = arith.constant 0 : index
    %31 = vector.load %arg8[%c0_17, %c0_18] : memref<256x1024xbf16, #tpu.memory_space<vmem>>, vector<256x1024xbf16>
    %cst_19 = arith.constant dense<0.000000e+00> : vector<8x1024xf32>
    %32 = tpu.matmul %10, %31, %cst_19 {dimension_numbers = #tpu.dot_dimension_numbers<[1], [0], [0], [1], [0, 0, 1, 1], [], []>} : vector<8x256xbf16>, vector<256x1024xbf16>, vector<8x1024xf32> -> vector<8x1024xf32>
    %c0_20 = arith.constant 0 : index
    %c0_21 = arith.constant 0 : index
    %33 = vector.load %arg9[%c0_20, %c0_21] : memref<1x1024xf32, #tpu.memory_space<vmem>>, vector<1x1024xf32>
    %34 = vector.broadcast %33 : vector<1x1024xf32> to vector<8x1024xf32>
    %35 = arith.addf %32, %34 : vector<8x1024xf32>
    %cst_22 = arith.constant 0.000000e+00 : f32
    %36 = vector.broadcast %cst_22 : f32 to vector<8x1024xf32>
    %37 = arith.maximumf %35, %36 : vector<8x1024xf32>
    %38 = arith.truncf %37 : vector<8x1024xf32> to vector<8x1024xbf16>
    %c0_23 = arith.constant 0 : index
    %c0_24 = arith.constant 0 : index
    %39 = vector.load %arg10[%c0_23, %c0_24] : memref<1024x256xbf16, #tpu.memory_space<vmem>>, vector<1024x256xbf16>
    %cst_25 = arith.constant dense<0.000000e+00> : vector<8x256xf32>
    %40 = tpu.matmul %38, %39, %cst_25 {dimension_numbers = #tpu.dot_dimension_numbers<[1], [0], [0], [1], [0, 0, 1, 1], [], []>} : vector<8x1024xbf16>, vector<1024x256xbf16>, vector<8x256xf32> -> vector<8x256xf32>
    %c0_26 = arith.constant 0 : index
    %c0_27 = arith.constant 0 : index
    %41 = vector.load %arg11[%c0_26, %c0_27] : memref<1x256xf32, #tpu.memory_space<vmem>>, vector<1x256xf32>
    %42 = vector.broadcast %41 : vector<1x256xf32> to vector<8x256xf32>
    %43 = arith.addf %40, %42 : vector<8x256xf32>
    %cst_28 = arith.constant dense<0.000000e+00> : vector<8x256xf32>
    %44 = tpu.matmul %43, %8, %cst_28 {dimension_numbers = #tpu.dot_dimension_numbers<[1], [0], [0], [1], [0, 0, 1, 1], [], []>} : vector<8x256xf32>, vector<256x256xf32>, vector<8x256xf32> -> vector<8x256xf32>
    %cst_29 = arith.constant dense<0.000000e+00> : vector<8x256xf32>
    %45 = tpu.matmul %43, %9, %cst_29 {dimension_numbers = #tpu.dot_dimension_numbers<[1], [0], [0], [1], [0, 0, 1, 1], [], []>} : vector<8x256xf32>, vector<256x256xf32>, vector<8x256xf32> -> vector<8x256xf32>
    %46 = vector.broadcast %6 : f32 to vector<8x256xf32>
    %47 = arith.mulf %46, %45 : vector<8x256xf32>
    %48 = arith.addf %44, %47 : vector<8x256xf32>
    %49 = arith.subf %48, %30 : vector<8x256xf32>
    %cst_30 = arith.constant 0.000000e+00 : f32
    %50 = vector.broadcast %cst_30 : f32 to vector<8x256xf32>
    %51 = arith.subf %50, %49 : vector<8x256xf32>
    %52 = arith.mulf %49, %49 : vector<8x256xf32>
    %cst_31 = arith.constant dense<0.000000e+00> : vector<8xf32>
    %53 = vector.multi_reduction <add>, %52, %cst_31 [1] : vector<8x256xf32> to vector<8xf32>
    %54 = vector.shape_cast %53 : vector<8xf32> to vector<8x1xf32>
    %cst_32 = arith.constant dense<0.000000e+00> : vector<8x256xf32>
    %55 = tpu.matmul %51, %8, %cst_32 {dimension_numbers = #tpu.dot_dimension_numbers<[1], [0], [0], [1], [0, 0, 1, 1], [], []>} : vector<8x256xf32>, vector<256x256xf32>, vector<8x256xf32> -> vector<8x256xf32>
    %cst_33 = arith.constant dense<0.000000e+00> : vector<8x256xf32>
    %56 = tpu.matmul %51, %9, %cst_33 {dimension_numbers = #tpu.dot_dimension_numbers<[1], [0], [0], [1], [0, 0, 1, 1], [], []>} : vector<8x256xf32>, vector<256x256xf32>, vector<8x256xf32> -> vector<8x256xf32>
    %57 = arith.mulf %51, %55 : vector<8x256xf32>
    %cst_34 = arith.constant dense<0.000000e+00> : vector<8xf32>
    %58 = vector.multi_reduction <add>, %57, %cst_34 [1] : vector<8x256xf32> to vector<8xf32>
    %59 = vector.shape_cast %58 : vector<8xf32> to vector<8x1xf32>
    %60 = arith.mulf %51, %56 : vector<8x256xf32>
    %cst_35 = arith.constant dense<0.000000e+00> : vector<8xf32>
    %61 = vector.multi_reduction <add>, %60, %cst_35 [1] : vector<8x256xf32> to vector<8xf32>
    %62 = vector.shape_cast %61 : vector<8xf32> to vector<8x1xf32>
    %63 = vector.broadcast %6 : f32 to vector<8x1xf32>
    %64 = arith.mulf %63, %62 : vector<8x1xf32>
    %65 = arith.addf %64, %59 : vector<8x1xf32>
    %66 = arith.divf %54, %65 : vector<8x1xf32>
    %67 = vector.broadcast %66 : vector<8x1xf32> to vector<8x256xf32>
    %68 = arith.mulf %67, %51 : vector<8x256xf32>
    %69 = arith.addf %43, %68 : vector<8x256xf32>
    %70 = vector.broadcast %6 : f32 to vector<8x256xf32>
    %71 = arith.mulf %70, %56 : vector<8x256xf32>
    %72 = arith.addf %55, %71 : vector<8x256xf32>
    %73 = vector.broadcast %66 : vector<8x1xf32> to vector<8x256xf32>
    %74 = arith.mulf %73, %72 : vector<8x256xf32>
    %75 = arith.addf %49, %74 : vector<8x256xf32>
    %76 = arith.mulf %75, %75 : vector<8x256xf32>
    %cst_36 = arith.constant dense<0.000000e+00> : vector<8xf32>
    %77 = vector.multi_reduction <add>, %76, %cst_36 [1] : vector<8x256xf32> to vector<8xf32>
    %78 = vector.shape_cast %77 : vector<8xf32> to vector<8x1xf32>
    %79 = arith.divf %78, %54 : vector<8x1xf32>
    %cst_37 = arith.constant 0.000000e+00 : f32
    %80 = vector.broadcast %cst_37 : f32 to vector<8x256xf32>
    %81 = arith.subf %80, %75 : vector<8x256xf32>
    %82 = vector.broadcast %79 : vector<8x1xf32> to vector<8x256xf32>
    %83 = arith.mulf %82, %51 : vector<8x256xf32>
    %84 = arith.addf %81, %83 : vector<8x256xf32>
    %cst_38 = arith.constant dense<0.000000e+00> : vector<8x256xf32>
    %85 = tpu.matmul %84, %8, %cst_38 {dimension_numbers = #tpu.dot_dimension_numbers<[1], [0], [0], [1], [0, 0, 1, 1], [], []>} : vector<8x256xf32>, vector<256x256xf32>, vector<8x256xf32> -> vector<8x256xf32>
    %cst_39 = arith.constant dense<0.000000e+00> : vector<8x256xf32>
    %86 = tpu.matmul %84, %9, %cst_39 {dimension_numbers = #tpu.dot_dimension_numbers<[1], [0], [0], [1], [0, 0, 1, 1], [], []>} : vector<8x256xf32>, vector<256x256xf32>, vector<8x256xf32> -> vector<8x256xf32>
    %87 = arith.mulf %84, %85 : vector<8x256xf32>
    %cst_40 = arith.constant dense<0.000000e+00> : vector<8xf32>
    %88 = vector.multi_reduction <add>, %87, %cst_40 [1] : vector<8x256xf32> to vector<8xf32>
    %89 = vector.shape_cast %88 : vector<8xf32> to vector<8x1xf32>
    %90 = arith.mulf %84, %86 : vector<8x256xf32>
    %cst_41 = arith.constant dense<0.000000e+00> : vector<8xf32>
    %91 = vector.multi_reduction <add>, %90, %cst_41 [1] : vector<8x256xf32> to vector<8xf32>
    %92 = vector.shape_cast %91 : vector<8xf32> to vector<8x1xf32>
    %93 = vector.broadcast %6 : f32 to vector<8x1xf32>
    %94 = arith.mulf %93, %92 : vector<8x1xf32>
    %95 = arith.addf %94, %89 : vector<8x1xf32>
    %96 = arith.divf %78, %95 : vector<8x1xf32>
    %97 = vector.broadcast %96 : vector<8x1xf32> to vector<8x256xf32>
    %98 = arith.mulf %97, %84 : vector<8x256xf32>
    %99 = arith.addf %69, %98 : vector<8x256xf32>
    %100 = vector.broadcast %6 : f32 to vector<8x256xf32>
    %101 = arith.mulf %100, %86 : vector<8x256xf32>
    %102 = arith.addf %85, %101 : vector<8x256xf32>
    %103 = vector.broadcast %96 : vector<8x1xf32> to vector<8x256xf32>
    %104 = arith.mulf %103, %102 : vector<8x256xf32>
    %105 = arith.addf %75, %104 : vector<8x256xf32>
    %106 = arith.mulf %105, %105 : vector<8x256xf32>
    %cst_42 = arith.constant dense<0.000000e+00> : vector<8xf32>
    %107 = vector.multi_reduction <add>, %106, %cst_42 [1] : vector<8x256xf32> to vector<8xf32>
    %108 = vector.shape_cast %107 : vector<8xf32> to vector<8x1xf32>
    %109 = arith.divf %108, %78 : vector<8x1xf32>
    %cst_43 = arith.constant 0.000000e+00 : f32
    %110 = vector.broadcast %cst_43 : f32 to vector<8x256xf32>
    %111 = arith.subf %110, %105 : vector<8x256xf32>
    %112 = vector.broadcast %109 : vector<8x1xf32> to vector<8x256xf32>
    %113 = arith.mulf %112, %84 : vector<8x256xf32>
    %114 = arith.addf %111, %113 : vector<8x256xf32>
    %cst_44 = arith.constant dense<0.000000e+00> : vector<8x256xf32>
    %115 = tpu.matmul %114, %8, %cst_44 {dimension_numbers = #tpu.dot_dimension_numbers<[1], [0], [0], [1], [0, 0, 1, 1], [], []>} : vector<8x256xf32>, vector<256x256xf32>, vector<8x256xf32> -> vector<8x256xf32>
    %cst_45 = arith.constant dense<0.000000e+00> : vector<8x256xf32>
    %116 = tpu.matmul %114, %9, %cst_45 {dimension_numbers = #tpu.dot_dimension_numbers<[1], [0], [0], [1], [0, 0, 1, 1], [], []>} : vector<8x256xf32>, vector<256x256xf32>, vector<8x256xf32> -> vector<8x256xf32>
    %117 = arith.mulf %114, %115 : vector<8x256xf32>
    %cst_46 = arith.constant dense<0.000000e+00> : vector<8xf32>
    %118 = vector.multi_reduction <add>, %117, %cst_46 [1] : vector<8x256xf32> to vector<8xf32>
    %119 = vector.shape_cast %118 : vector<8xf32> to vector<8x1xf32>
    %120 = arith.mulf %114, %116 : vector<8x256xf32>
    %cst_47 = arith.constant dense<0.000000e+00> : vector<8xf32>
    %121 = vector.multi_reduction <add>, %120, %cst_47 [1] : vector<8x256xf32> to vector<8xf32>
    %122 = vector.shape_cast %121 : vector<8xf32> to vector<8x1xf32>
    %123 = vector.broadcast %6 : f32 to vector<8x1xf32>
    %124 = arith.mulf %123, %122 : vector<8x1xf32>
    %125 = arith.addf %124, %119 : vector<8x1xf32>
    %126 = arith.divf %108, %125 : vector<8x1xf32>
    %127 = vector.broadcast %126 : vector<8x1xf32> to vector<8x256xf32>
    %128 = arith.mulf %127, %114 : vector<8x256xf32>
    %129 = arith.addf %99, %128 : vector<8x256xf32>
    %130 = vector.broadcast %6 : f32 to vector<8x256xf32>
    %131 = arith.mulf %130, %116 : vector<8x256xf32>
    %132 = arith.addf %115, %131 : vector<8x256xf32>
    %133 = vector.broadcast %126 : vector<8x1xf32> to vector<8x256xf32>
    %134 = arith.mulf %133, %132 : vector<8x256xf32>
    %135 = arith.addf %105, %134 : vector<8x256xf32>
    %136 = arith.mulf %135, %135 : vector<8x256xf32>
    %cst_48 = arith.constant dense<0.000000e+00> : vector<8xf32>
    %137 = vector.multi_reduction <add>, %136, %cst_48 [1] : vector<8x256xf32> to vector<8xf32>
    %138 = vector.shape_cast %137 : vector<8xf32> to vector<8x1xf32>
    %139 = arith.divf %138, %108 : vector<8x1xf32>
    %cst_49 = arith.constant 0.000000e+00 : f32
    %140 = vector.broadcast %cst_49 : f32 to vector<8x256xf32>
    %141 = arith.subf %140, %135 : vector<8x256xf32>
    %142 = vector.broadcast %139 : vector<8x1xf32> to vector<8x256xf32>
    %143 = arith.mulf %142, %114 : vector<8x256xf32>
    %144 = arith.addf %141, %143 : vector<8x256xf32>
    %cst_50 = arith.constant dense<0.000000e+00> : vector<8x256xf32>
    %145 = tpu.matmul %144, %8, %cst_50 {dimension_numbers = #tpu.dot_dimension_numbers<[1], [0], [0], [1], [0, 0, 1, 1], [], []>} : vector<8x256xf32>, vector<256x256xf32>, vector<8x256xf32> -> vector<8x256xf32>
    %cst_51 = arith.constant dense<0.000000e+00> : vector<8x256xf32>
    %146 = tpu.matmul %144, %9, %cst_51 {dimension_numbers = #tpu.dot_dimension_numbers<[1], [0], [0], [1], [0, 0, 1, 1], [], []>} : vector<8x256xf32>, vector<256x256xf32>, vector<8x256xf32> -> vector<8x256xf32>
    %147 = arith.mulf %144, %145 : vector<8x256xf32>
    %cst_52 = arith.constant dense<0.000000e+00> : vector<8xf32>
    %148 = vector.multi_reduction <add>, %147, %cst_52 [1] : vector<8x256xf32> to vector<8xf32>
    %149 = vector.shape_cast %148 : vector<8xf32> to vector<8x1xf32>
    %150 = arith.mulf %144, %146 : vector<8x256xf32>
    %cst_53 = arith.constant dense<0.000000e+00> : vector<8xf32>
    %151 = vector.multi_reduction <add>, %150, %cst_53 [1] : vector<8x256xf32> to vector<8xf32>
    %152 = vector.shape_cast %151 : vector<8xf32> to vector<8x1xf32>
    %153 = vector.broadcast %6 : f32 to vector<8x1xf32>
    %154 = arith.mulf %153, %152 : vector<8x1xf32>
    %155 = arith.addf %154, %149 : vector<8x1xf32>
    %156 = arith.divf %138, %155 : vector<8x1xf32>
    %157 = vector.broadcast %156 : vector<8x1xf32> to vector<8x256xf32>
    %158 = arith.mulf %157, %144 : vector<8x256xf32>
    %159 = arith.addf %129, %158 : vector<8x256xf32>
    %160 = vector.broadcast %6 : f32 to vector<8x256xf32>
    %161 = arith.mulf %160, %146 : vector<8x256xf32>
    %162 = arith.addf %145, %161 : vector<8x256xf32>
    %163 = vector.broadcast %156 : vector<8x1xf32> to vector<8x256xf32>
    %164 = arith.mulf %163, %162 : vector<8x256xf32>
    %165 = arith.addf %135, %164 : vector<8x256xf32>
    %166 = arith.mulf %165, %165 : vector<8x256xf32>
    %cst_54 = arith.constant dense<0.000000e+00> : vector<8xf32>
    %167 = vector.multi_reduction <add>, %166, %cst_54 [1] : vector<8x256xf32> to vector<8xf32>
    %168 = vector.shape_cast %167 : vector<8xf32> to vector<8x1xf32>
    %169 = arith.divf %168, %138 : vector<8x1xf32>
    %cst_55 = arith.constant 0.000000e+00 : f32
    %170 = vector.broadcast %cst_55 : f32 to vector<8x256xf32>
    %171 = arith.subf %170, %165 : vector<8x256xf32>
    %172 = vector.broadcast %169 : vector<8x1xf32> to vector<8x256xf32>
    %173 = arith.mulf %172, %144 : vector<8x256xf32>
    %174 = arith.addf %171, %173 : vector<8x256xf32>
    %cst_56 = arith.constant dense<0.000000e+00> : vector<8x256xf32>
    %175 = tpu.matmul %174, %8, %cst_56 {dimension_numbers = #tpu.dot_dimension_numbers<[1], [0], [0], [1], [0, 0, 1, 1], [], []>} : vector<8x256xf32>, vector<256x256xf32>, vector<8x256xf32> -> vector<8x256xf32>
    %cst_57 = arith.constant dense<0.000000e+00> : vector<8x256xf32>
    %176 = tpu.matmul %174, %9, %cst_57 {dimension_numbers = #tpu.dot_dimension_numbers<[1], [0], [0], [1], [0, 0, 1, 1], [], []>} : vector<8x256xf32>, vector<256x256xf32>, vector<8x256xf32> -> vector<8x256xf32>
    %177 = arith.mulf %174, %175 : vector<8x256xf32>
    %cst_58 = arith.constant dense<0.000000e+00> : vector<8xf32>
    %178 = vector.multi_reduction <add>, %177, %cst_58 [1] : vector<8x256xf32> to vector<8xf32>
    %179 = vector.shape_cast %178 : vector<8xf32> to vector<8x1xf32>
    %180 = arith.mulf %174, %176 : vector<8x256xf32>
    %cst_59 = arith.constant dense<0.000000e+00> : vector<8xf32>
    %181 = vector.multi_reduction <add>, %180, %cst_59 [1] : vector<8x256xf32> to vector<8xf32>
    %182 = vector.shape_cast %181 : vector<8xf32> to vector<8x1xf32>
    %183 = vector.broadcast %6 : f32 to vector<8x1xf32>
    %184 = arith.mulf %183, %182 : vector<8x1xf32>
    %185 = arith.addf %184, %179 : vector<8x1xf32>
    %186 = arith.divf %168, %185 : vector<8x1xf32>
    %187 = vector.broadcast %186 : vector<8x1xf32> to vector<8x256xf32>
    %188 = arith.mulf %187, %174 : vector<8x256xf32>
    %189 = arith.addf %159, %188 : vector<8x256xf32>
    %190 = vector.broadcast %6 : f32 to vector<8x256xf32>
    %191 = arith.mulf %190, %176 : vector<8x256xf32>
    %192 = arith.addf %175, %191 : vector<8x256xf32>
    %193 = vector.broadcast %186 : vector<8x1xf32> to vector<8x256xf32>
    %194 = arith.mulf %193, %192 : vector<8x256xf32>
    %195 = arith.addf %165, %194 : vector<8x256xf32>
    %196 = arith.mulf %195, %195 : vector<8x256xf32>
    %cst_60 = arith.constant dense<0.000000e+00> : vector<8xf32>
    %197 = vector.multi_reduction <add>, %196, %cst_60 [1] : vector<8x256xf32> to vector<8xf32>
    %198 = vector.shape_cast %197 : vector<8xf32> to vector<8x1xf32>
    %199 = arith.divf %198, %168 : vector<8x1xf32>
    %cst_61 = arith.constant 0.000000e+00 : f32
    %200 = vector.broadcast %cst_61 : f32 to vector<8x256xf32>
    %201 = arith.subf %200, %195 : vector<8x256xf32>
    %202 = vector.broadcast %199 : vector<8x1xf32> to vector<8x256xf32>
    %203 = arith.mulf %202, %174 : vector<8x256xf32>
    %204 = arith.addf %201, %203 : vector<8x256xf32>
    %cst_62 = arith.constant dense<0.000000e+00> : vector<8x256xf32>
    %205 = tpu.matmul %204, %8, %cst_62 {dimension_numbers = #tpu.dot_dimension_numbers<[1], [0], [0], [1], [0, 0, 1, 1], [], []>} : vector<8x256xf32>, vector<256x256xf32>, vector<8x256xf32> -> vector<8x256xf32>
    %cst_63 = arith.constant dense<0.000000e+00> : vector<8x256xf32>
    %206 = tpu.matmul %204, %9, %cst_63 {dimension_numbers = #tpu.dot_dimension_numbers<[1], [0], [0], [1], [0, 0, 1, 1], [], []>} : vector<8x256xf32>, vector<256x256xf32>, vector<8x256xf32> -> vector<8x256xf32>
    %207 = arith.mulf %204, %205 : vector<8x256xf32>
    %cst_64 = arith.constant dense<0.000000e+00> : vector<8xf32>
    %208 = vector.multi_reduction <add>, %207, %cst_64 [1] : vector<8x256xf32> to vector<8xf32>
    %209 = vector.shape_cast %208 : vector<8xf32> to vector<8x1xf32>
    %210 = arith.mulf %204, %206 : vector<8x256xf32>
    %cst_65 = arith.constant dense<0.000000e+00> : vector<8xf32>
    %211 = vector.multi_reduction <add>, %210, %cst_65 [1] : vector<8x256xf32> to vector<8xf32>
    %212 = vector.shape_cast %211 : vector<8xf32> to vector<8x1xf32>
    %213 = vector.broadcast %6 : f32 to vector<8x1xf32>
    %214 = arith.mulf %213, %212 : vector<8x1xf32>
    %215 = arith.addf %214, %209 : vector<8x1xf32>
    %216 = arith.divf %198, %215 : vector<8x1xf32>
    %217 = vector.broadcast %216 : vector<8x1xf32> to vector<8x256xf32>
    %218 = arith.mulf %217, %204 : vector<8x256xf32>
    %219 = arith.addf %189, %218 : vector<8x256xf32>
    %c0_66 = arith.constant 0 : index
    %c0_67 = arith.constant 0 : index
    %220 = vector.load %arg13[%c0_66, %c0_67] : memref<8x256xf32, #tpu.memory_space<vmem>>, vector<8x256xf32>
    tpu.vector_store %arg13[%c0_66, %c0_67], %219 {strides = array<i32>} : memref<8x256xf32, #tpu.memory_space<vmem>>, vector<8x256xf32>,
    %c0_68 = arith.constant 0 : index
    %c0_69 = arith.constant 0 : index
    %c0_70 = arith.constant 0 : index
    %221 = vector.load %arg12[%c0_68, %c0_69, %c0_70] : memref<1x8x256xf32, #tpu.memory_space<vmem>>, vector<1x8x256xf32>
    %222 = vector.shape_cast %221 : vector<1x8x256xf32> to vector<8x256xf32>
    %223 = vector.shape_cast %219 : vector<8x256xf32> to vector<1x8x256xf32>
    tpu.vector_store %arg12[%c0_68, %c0_69, %c0_70], %223 {strides = array<i32>} : memref<1x8x256xf32, #tpu.memory_space<vmem>>, vector<1x8x256xf32>,
    return
  }
  func.func @transform_0(%arg0: i32) -> (i32, i32) {
    %c0_i32 = arith.constant 0 : i32
    %c0_i32_0 = arith.constant 0 : i32
    %c0_i32_1 = arith.constant 0 : i32
    return %c0_i32, %c0_i32_0 : i32, i32
  }
  func.func @transform_1(%arg0: i32) -> (i32, i32) {
    %c0_i32 = arith.constant 0 : i32
    %c0_i32_0 = arith.constant 0 : i32
    %c0_i32_1 = arith.constant 0 : i32
    return %c0_i32, %c0_i32_0 : i32, i32
  }
  func.func @transform_2(%arg0: i32) -> (i32, i32) {
    %c0_i32 = arith.constant 0 : i32
    %c0_i32_0 = arith.constant 0 : i32
    %c0_i32_1 = arith.constant 0 : i32
    return %c0_i32, %c0_i32_0 : i32, i32
  }
  func.func @transform_3(%arg0: i32) -> (i32, i32) {
    %c0_i32 = arith.constant 0 : i32
    %c0_i32_0 = arith.constant 0 : i32
    %c0_i32_1 = arith.constant 0 : i32
    return %c0_i32, %c0_i32_0 : i32, i32
  }
  func.func @transform_4(%arg0: i32) -> (i32, i32) {
    %c0_i32 = arith.constant 0 : i32
    %c0_i32_0 = arith.constant 0 : i32
    %c0_i32_1 = arith.constant 0 : i32
    return %c0_i32, %c0_i32_0 : i32, i32
  }
  func.func @transform_5(%arg0: i32) -> (i32, i32) {
    %c0_i32 = arith.constant 0 : i32
    %c0_i32_0 = arith.constant 0 : i32
    %c0_i32_1 = arith.constant 0 : i32
    return %c0_i32, %c0_i32_0 : i32, i32
  }
  func.func @transform_6(%arg0: i32) -> (i32, i32) {
    %c0_i32 = arith.constant 0 : i32
    %c0_i32_0 = arith.constant 0 : i32
    %c0_i32_1 = arith.constant 0 : i32
    return %c0_i32, %c0_i32_0 : i32, i32
  }
  func.func @transform_7(%arg0: i32) -> (i32, i32) {
    %c0_i32 = arith.constant 0 : i32
    %c0_i32_0 = arith.constant 0 : i32
    %c0_i32_1 = arith.constant 0 : i32
    return %c0_i32, %c0_i32_0 : i32, i32
  }
  func.func @transform_8(%arg0: i32) -> (i32, i32) {
    %c0_i32 = arith.constant 0 : i32
    %c0_i32_0 = arith.constant 0 : i32
    %c0_i32_1 = arith.constant 0 : i32
    return %c0_i32, %c0_i32_0 : i32, i32
  }
  func.func @transform_9(%arg0: i32) -> (i32, i32) {
    %c0_i32 = arith.constant 0 : i32
    %c0_i32_0 = arith.constant 0 : i32
    %c0_i32_1 = arith.constant 0 : i32
    return %c0_i32, %c0_i32_0 : i32, i32
  }
  func.func @transform_10(%arg0: i32) -> (i32, i32) {
    %c0_i32 = arith.constant 0 : i32
    %c0_i32_0 = arith.constant 0 : i32
    %c0_i32_1 = arith.constant 0 : i32
    return %c0_i32, %c0_i32_0 : i32, i32
  }
  func.func @transform_11(%arg0: i32) -> (i32, i32, i32) {
    %c0_i32 = arith.constant 0 : i32
    %c0_i32_0 = arith.constant 0 : i32
    %c0_i32_1 = arith.constant 0 : i32
    return %arg0, %c0_i32, %c0_i32_0 : i32, i32, i32
  }
}

</mosaic_0001>

<bundles_post_ra>
// kernel: metainvh_fused.1
= control target key start
LH: loop header
LB: loop body
LE: loop exit
PB: predicated region body
PF: predicated region fallthrough
CT: control target
= control target key end

     0   :  { %s9529_s0 = inlined_call_operand.vmem [shape: f32[4,2], index: 0, kind: input, shape index: {}]   ;;  %s9530_s1 = inlined_call_operand.hbm [shape: f32[8,256], index: 1, kind: input, shape index: {}]   ;;  %s9531_s2 = inlined_call_operand.hbm [shape: f32[8,256], index: 2, kind: input, shape index: {}]   ;;  %s9532_s3 = inlined_call_operand.hbm [shape: f32[256,256], index: 3, kind: input, shape index: {}]   ;;  %s9533_s4 = inlined_call_operand.hbm [shape: f32[256,256], index: 4, kind: input, shape index: {}]   ;;  %s9534_s5 = inlined_call_operand.hbm [shape: bf16[256,1024], index: 5, kind: input, shape index: {}]   ;;  %s9535_s6 = inlined_call_operand.hbm [shape: bf16[1024,256], index: 6, kind: input, shape index: {}]   ;;  %s9536_s7 = inlined_call_operand.hbm [shape: bf16[256,1024], index: 7, kind: input, shape index: {}]   ;;  %s9537_s8 = inlined_call_operand.vmem [shape: f32[1,1024], index: 8, kind: input, shape index: {}]   ;;  %s9538_s9 = inlined_call_operand.hbm [shape: bf16[1024,256], index: 9, kind: input, shape index: {}]   ;;  %s9539_s10 = inlined_call_operand.vmem [shape: f32[1,256], index: 10, kind: input, shape index: {}]   ;;  %s9540_s11 = inlined_call_operand.hbm [shape: f32[4,8,256], index: 11, kind: output, shape index: {}]  }
   0x1   :  { %9633 = sst [smem:[#allocation66_spill]] %s9531_s2 }
   0x2   :  { %9634 = sst [smem:[#allocation67_spill]] %s9540_s11 }
   0x3   :  { %16 = vsyncpa [#allocation6], 0 }
   0x4   :  { %17 = vsyncpa [#allocation4], 0 }
   0x5   :  { %18 = vsyncpa [#allocation9], 0 }
   0x6   :  { %19 = vsyncpa [#allocation12], 0 }
   0x7   :  { %20 = vsyncpa [#allocation15], 0 }
   0x8   :  { %21 = vsyncpa [#allocation18], 0 }
   0x9   :  { %22 = vsyncpa [#allocation5], 0 }
   0xa   :  { %24 = vsyncpa [#allocation5 + $0x1], 0  ;;  %s8282_s17 = smov 0   ;;  %s8284_s18 = smov 0  }
   0xb   :  { %s8286_s19 = smov 0   ;;  %s8288_s20 = smov 0  }
   0xc LB: > { %9635 = sst [smem:[#allocation27_spill]] %s8192_s17  ;;  %s8303_s21 = sadd.s32 4294967295, %s8204_s20   ;;  %s8204_s20 = sphi %s8288_s20, %s9833_s20   ;;  %s8200_s19 = sphi %s8286_s19, %s9835_s19   ;;  %s8196_s18 = sphi %s8284_s18, %s9837_s18   ;;  %s8192_s17 = sphi %s8282_s17, %s9836_s17  }
   0xd   : > { %9636 = sst [smem:[#allocation28_spill]] %s8200_s19  ;;  %s5873_s22 = sadd.s32 4294967294, %s8204_s20  }
   0xe   : > { %9637 = sst [smem:[#allocation29_spill]] %s8204_s20  ;;  %s8307_s23 = sadd.s32 1, %s8204_s20  }
   0xf   : > { %9638 = sst [smem:[#allocation30_spill]] %s8307_s23  ;;  %s268_s24 = sadd.s32 1, %s8200_s19 }
  0x10   : > { %s265_s25 = ssub.s32 %s8204_s20, %s8307_s23  ;;  %p278_p0 = scmp.ne.s32.totalorder %s8200_s19, %s8196_s18 }
  0x11   : > { %p266_p1 = scmp.eq.s32.totalorder %s265_s25, 0  ;;  %p279_p2 = scmp.eq.s32.totalorder %s8303_s21, 3 }
  0x12   : > { %p284_p3 = scmp.ne.s32.totalorder %s8196_s18, %s8192_s17  ;;  %p285_p4 = scmp.eq.s32.totalorder %s5873_s22, 3 }
  0x13   : > { %s8318_s26 = scalar_select %p266_p1, %s8200_s19, %s268_s24  }
  0x14   : > { %p8320_p5 = por %p279_p2, %p278_p0  ;;  %p8324_p6 = por %p285_p4, %p284_p3 }
  0x15   : > { %9639 = sst [smem:[#allocation31_spill]] %s8318_s26  ;;  %p5874_p7 = scmp.ge.s32.totalorder %s8204_s20, 1 }
  0x16   : > { %s9640_s27 = scalar_select %p8320_p5, 1, 0 }
  0x17   : > { %s9642_s28 = scalar_select %p8324_p6, 1, 0 }
  0x18   : > { %9641 = sst [smem:[#allocation32_spill]] %s9640_s27  ;;  %p292_p8 = scmp.lt.s32.totalorder %s8204_s20, 5 }
  0x19   : > { %9643 = sst [smem:[#allocation33_spill]] %s9642_s28  ;;  %p9544_p10 = scmp.eq.s32.totalorder %s8303_s21, 0 }
  0x1a   : > { %p8332_p11 = pnand %p5874_p7, %p292_p8  ;;  %s8206_s30 = smov [#allocation8]  }
  0x1b   : > { %s327_s12 = sshll.u32 %s8206_s30, 4  ;;  %s8207_s14 = smov [#allocation11]   ;;  %s328_s12 = int_to_ptr.vmem [resolvable:$true] %s327_s12 }
  0x1c   : > { %s9644_s29 = scalar_select %p8332_p11, 1, 0 }
  0x1d   : > { %p7375_p12 = pneg %p8332_p11  ;;  %s350_s15 = sshll.u32 %s8207_s14, 4  ;;  %s8344_s15 = int_to_ptr.vmem [resolvable:$true] %s350_s15 }
  0x1e   : > { %s8208_s16 = smov [#allocation14]   ;;  %s9646_s2 = sld [smem:[#allocation66_spill]] }
  0x1f   : > { %p8340_p13 = pnand %p9544_p10, %p7375_p12  ;;  %s8346_s22 = sshll.u32 %s8208_s16, 4  ;;  %s377_s22 = int_to_ptr.vmem [resolvable:$true] %s8346_s22 }
  0x21   : > { %p8356_p1 = pneg %p8340_p13 }
  0x24   : > { %s7879_s30 = scalar_lea.hbm %s9646_s2, 256 }
  0x25   : > { %p7880_p0 = scmp.ne.s32.totalorder %s9646_s2, %s7879_s30  ;;  %p7886_p4 = scmp.lt.u32.totalorder %s7879_s30, %s9646_s2 }
  0x27   : > { %p7882_p2 = pnand %p8356_p1, %p7880_p0 }
  0x29   : > { %p7883_p3 = pneg %p7882_p2 }
  0x2b   : > { %p7888_p7 = pnand %p7886_p4, %p7883_p3 }
  0x2d   : > { %7891 = shalt.err (!%p7888_p7)
}
  0x2e   : > { %s7892_s24 = scalar_lea.vmem %s328_s12, 256  ;;  %p7900_p10 = scmp.lt.s32.totalorder %s328_s12, %s328_s12 }
  0x2f   : > { %p7893_p8 = scmp.ne.s32.totalorder %s328_s12, %s7892_s24  ;;  %p7901_p6 = scmp.lt.s32.totalorder %s7892_s24, %s7892_s24 }
  0x31   : > { %p7895_p12 = pnand %p7893_p8, %p8356_p1  ;;  %p7902_p5 = por %p7901_p6, %p7900_p10 }
  0x33   : > { %p7896_p9 = pneg %p7895_p12 }
  0x35   : > { %p7903_p11 = pnand %p7902_p5, %p7896_p9 }
  0x37   : > { %7906 = shalt.err (!%p7903_p11)
}
  0x38   : > { %7384 = dma.hbm_to_vmem [thread:$0]  (!%p8340_p13), %s9646_s2, 256, %s328_s12, [#allocation9]  }
  0x39   : > { %s7907_s14 = scalar_lea.hbm %s9533_s4, 8192 }
  0x3a   : > { %p7908_p0 = scmp.ne.s32.totalorder %s9533_s4, %s7907_s14  ;;  %p7914_p5 = scmp.lt.u32.totalorder %s7907_s14, %s9533_s4 }
  0x3c   : > { %p7910_p2 = pnand %p7908_p0, %p8356_p1 }
  0x3e   : > { %p7911_p6 = pneg %p7910_p2 }
  0x40   : > { %p7916_p9 = pnand %p7914_p5, %p7911_p6 }
  0x42   : > { %7919 = shalt.err (!%p7916_p9)
}
  0x43   : > { %s7920_s12 = scalar_lea.vmem %s8344_s15, 8192  ;;  %p7928_p4 = scmp.lt.s32.totalorder %s8344_s15, %s8344_s15 }
  0x44   : > { %p7921_p10 = scmp.ne.s32.totalorder %s8344_s15, %s7920_s12  ;;  %p7929_p7 = scmp.lt.s32.totalorder %s7920_s12, %s7920_s12 }
  0x46   : > { %p7923_p11 = pnand %p7921_p10, %p8356_p1  ;;  %p7930_p8 = por %p7929_p7, %p7928_p4 }
  0x48   : > { %p7924_p3 = pneg %p7923_p11 }
  0x4a   : > { %p7931_p12 = pnand %p7930_p8, %p7924_p3 }
  0x4c   : > { %7934 = shalt.err (!%p7931_p12)
}
  0x4d   : > { %s8209_s28 = smov 256   ;;  %s8210_s17 = smov 16  }
  0x4e   : > { %7390 = dma.hbm_to_vmem [thread:$0]  (!%p8340_p13), %s9533_s4, 8192, %s8344_s15, [#allocation12], %s8209_s28, %s8209_s28, %s8210_s17  }
  0x4f   : > { %s305_s14 = sshll.u32 %s9529_s0, 4  ;;  %s7935_s12 = scalar_lea.hbm %s9535_s6, 16384  ;;  %s306_s14 = int_to_ptr.vmem [resolvable:$true] %s305_s14 }
  0x50   : > { %p7936_p0 = scmp.ne.s32.totalorder %s9535_s6, %s7935_s12  ;;  %p7942_p5 = scmp.lt.u32.totalorder %s7935_s12, %s9535_s6 }
  0x52   : > { %p7938_p2 = pnand %p7936_p0, %p8356_p1 }
  0x54   : > { %p7939_p6 = pneg %p7938_p2 }
  0x56   : > { %p7944_p9 = pnand %p7942_p5, %p7939_p6 }
  0x58   : > { %7947 = shalt.err (!%p7944_p9)
}
  0x59   : > { %s7948_s15 = scalar_lea.vmem %s377_s22, 16384  ;;  %p7956_p4 = scmp.lt.s32.totalorder %s377_s22, %s377_s22 }
  0x5a   : > { %p7949_p10 = scmp.ne.s32.totalorder %s377_s22, %s7948_s15  ;;  %p7957_p7 = scmp.lt.s32.totalorder %s7948_s15, %s7948_s15 }
  0x5c   : > { %p7951_p11 = pnand %p7949_p10, %p8356_p1  ;;  %p7958_p8 = por %p7957_p7, %p7956_p4 }
  0x5e   : > { %p7952_p3 = pneg %p7951_p11 }
  0x60   : > { %p7959_p12 = pnand %p7958_p8, %p7952_p3 }
  0x62   : > { %7962 = shalt.err (!%p7959_p12)
}
  0x63   : > { %s9553_s2 = smov 128   ;;  %s9554_s20 = smov 8  }
  0x64   : > { %7396 = dma.hbm_to_vmem [thread:$0]  (!%p8340_p13), %s9535_s6, 16384, %s377_s22, [#allocation15], %s9553_s2, %s9553_s2, %s9554_s20  }
  0x65   : > { %s7963_s19 = scalar_lea.vmem %s306_s14, 64  ;;  %p7971_p5 = scmp.lt.s32.totalorder %s306_s14, %s306_s14 }
  0x66   : > { %p7964_p0 = scmp.ne.s32.totalorder %s306_s14, %s7963_s19  ;;  %p7972_p9 = scmp.lt.s32.totalorder %s7963_s19, %s7963_s19 }
  0x68   : > { %p7966_p2 = pnand %p7964_p0, %p8356_p1  ;;  %p7973_p10 = por %p7972_p9, %p7971_p5 }
  0x6a   : > { %p7967_p6 = pneg %p7966_p2 }
  0x6c   : > { %p7974_p11 = pnand %p7973_p10, %p7967_p6 }
  0x6e   : > { %7977 = shalt.err (!%p7974_p11)
}
  0x6f   : > { %s8213_s26 = smov [#allocation3]   ;;  %s8214_s25 = smov [#allocation7]  }
  0x70   : > { %7378 = dma.vmem_to_smem (!%p8340_p13), %s306_s14, 64, %s8213_s26, [#allocation6]  }
  0x71   : > { %s316_s30 = sshll.u32 %s8214_s25, 4  ;;  %s8215_s16 = smov [#allocation10]   ;;  %s317_s30 = int_to_ptr.vmem [resolvable:$true] %s316_s30 }
  0x72   : > { %s337_s22 = sshll.u32 %s8215_s16, 4  ;;  %s7978_s15 = scalar_lea.hbm %s9530_s1, 256  ;;  %s8427_s22 = int_to_ptr.vmem [resolvable:$true] %s337_s22 }
  0x73   : > { %p7979_p3 = scmp.ne.s32.totalorder %s9530_s1, %s7978_s15  ;;  %p7985_p8 = scmp.lt.u32.totalorder %s7978_s15, %s9530_s1 }
  0x75   : > { %p7981_p4 = pnand %p7979_p3, %p8356_p1 }
  0x77   : > { %p7982_p7 = pneg %p7981_p4 }
  0x79   : > { %p7987_p12 = pnand %p7985_p8, %p7982_p7 }
  0x7b   : > { %7990 = shalt.err (!%p7987_p12)
}
  0x7c   : > { %s7991_s26 = scalar_lea.vmem %s317_s30, 256  ;;  %p7999_p5 = scmp.lt.s32.totalorder %s317_s30, %s317_s30 }
  0x7d   : > { %p7992_p0 = scmp.ne.s32.totalorder %s317_s30, %s7991_s26  ;;  %p8000_p9 = scmp.lt.s32.totalorder %s7991_s26, %s7991_s26 }
  0x7f   : > { %p7994_p2 = pnand %p7992_p0, %p8356_p1  ;;  %p8001_p10 = por %p8000_p9, %p7999_p5 }
  0x81   : > { %p7995_p6 = pneg %p7994_p2 }
  0x83   : > { %p8002_p11 = pnand %p8001_p10, %p7995_p6 }
  0x85   : > { %8005 = shalt.err (!%p8002_p11)
}
  0x86   : > { %7381 = dma.hbm_to_vmem [thread:$0]  (!%p8340_p13), %s9530_s1, 256, %s317_s30, [#allocation4]  }
  0x87   : > { %s8006_s15 = scalar_lea.hbm %s9532_s3, 8192 }
  0x88   : > { %p8007_p3 = scmp.ne.s32.totalorder %s9532_s3, %s8006_s15  ;;  %p8013_p8 = scmp.lt.u32.totalorder %s8006_s15, %s9532_s3 }
  0x8a   : > { %p8009_p4 = pnand %p8007_p3, %p8356_p1 }
  0x8c   : > { %p8010_p7 = pneg %p8009_p4 }
  0x8e   : > { %p8015_p12 = pnand %p8013_p8, %p8010_p7 }
  0x90   : > { %8018 = shalt.err (!%p8015_p12)
}
  0x91   : > { %s8019_s30 = scalar_lea.vmem %s8427_s22, 8192  ;;  %p8027_p5 = scmp.lt.s32.totalorder %s8427_s22, %s8427_s22 }
  0x92   : > { %p8020_p0 = scmp.ne.s32.totalorder %s8427_s22, %s8019_s30  ;;  %p8028_p9 = scmp.lt.s32.totalorder %s8019_s30, %s8019_s30 }
  0x94   : > { %p8022_p2 = pnand %p8020_p0, %p8356_p1  ;;  %p8029_p10 = por %p8028_p9, %p8027_p5 }
  0x96   : > { %p8023_p6 = pneg %p8022_p2 }
  0x98   : > { %p8030_p11 = pnand %p8029_p10, %p8023_p6 }
  0x9a   : > { %8033 = shalt.err (!%p8030_p11)
}
  0x9b   : > { %7387 = dma.hbm_to_vmem [thread:$0]  (!%p8340_p13), %s9532_s3, 8192, %s8427_s22, [#allocation9], %s8209_s28, %s8209_s28, %s8210_s17  }
  0x9c   : > { %s8216_s16 = smov [#allocation13]   ;;  %s8034_s11 = scalar_lea.hbm %s9534_s5, 16384 }
  0x9d   : > { %s363_s24 = sshll.u32 %s8216_s16, 4  ;;  %p8035_p3 = scmp.ne.s32.totalorder %s9534_s5, %s8034_s11  ;;  %s364_s24 = int_to_ptr.vmem [resolvable:$true] %s363_s24 }
  0x9e   : > { %p8041_p8 = scmp.lt.u32.totalorder %s8034_s11, %s9534_s5 }
  0x9f   : > { %p8037_p4 = pnand %p8035_p3, %p8356_p1 }
  0xa1   : > { %p8038_p7 = pneg %p8037_p4 }
  0xa3   : > { %p8043_p12 = pnand %p8041_p8, %p8038_p7 }
  0xa5   : > { %8046 = shalt.err (!%p8043_p12)
}
  0xa6   : > { %s8047_s28 = scalar_lea.vmem %s364_s24, 16384  ;;  %p8055_p5 = scmp.lt.s32.totalorder %s364_s24, %s364_s24 }
  0xa7   : > { %p8048_p0 = scmp.ne.s32.totalorder %s364_s24, %s8047_s28  ;;  %p8056_p9 = scmp.lt.s32.totalorder %s8047_s28, %s8047_s28 }
  0xa9   : > { %p8050_p2 = pnand %p8048_p0, %p8356_p1  ;;  %p8057_p10 = por %p8056_p9, %p8055_p5 }
  0xab   : > { %p8051_p6 = pneg %p8050_p2 }
  0xad   : > { %p8058_p11 = pnand %p8057_p10, %p8051_p6 }
  0xaf   : > { %8061 = shalt.err (!%p8058_p11)
}
  0xb0   : > { %s8217_s17 = smov 512   ;;  %s8218_s22 = smov 32  }
  0xb1   : > { %7393 = dma.hbm_to_vmem [thread:$0]  (!%p8340_p13), %s9534_s5, 16384, %s364_s24, [#allocation12], %s8217_s17, %s8217_s17, %s8218_s22  }
  0xb2   : > { %s8219_s16 = smov [#allocation16]   ;;  %s8220_s15 = smov [#allocation17]  }
  0xb3   : > { %s389_s12 = sshll.u32 %s8219_s16, 4  ;;  %s405_s11 = sshll.u32 %s8220_s15, 4  ;;  %s390_s12 = int_to_ptr.vmem [resolvable:$true] %s389_s12  ;;  %s406_s11 = int_to_ptr.vmem [resolvable:$true] %s405_s11 }
  0xb4   : > { %s8062_s14 = scalar_lea.hbm %s9536_s7, 16384 }
  0xb5   : > { %p8063_p3 = scmp.ne.s32.totalorder %s9536_s7, %s8062_s14  ;;  %p8069_p8 = scmp.lt.u32.totalorder %s8062_s14, %s9536_s7 }
  0xb7   : > { %p8065_p4 = pnand %p8063_p3, %p8356_p1 }
  0xb9   : > { %p8066_p7 = pneg %p8065_p4 }
  0xbb   : > { %p8071_p12 = pnand %p8069_p8, %p8066_p7 }
  0xbd   : > { %8074 = shalt.err (!%p8071_p12)
}
  0xbe   : > { %s8075_s24 = scalar_lea.vmem %s390_s12, 16384  ;;  %p8083_p5 = scmp.lt.s32.totalorder %s390_s12, %s390_s12 }
  0xbf   : > { %p8076_p0 = scmp.ne.s32.totalorder %s390_s12, %s8075_s24  ;;  %p8084_p9 = scmp.lt.s32.totalorder %s8075_s24, %s8075_s24 }
  0xc1   : > { %p8078_p2 = pnand %p8076_p0, %p8356_p1  ;;  %p8085_p10 = por %p8084_p9, %p8083_p5 }
  0xc3   : > { %p8079_p6 = pneg %p8078_p2 }
  0xc5   : > { %p8086_p11 = pnand %p8085_p10, %p8079_p6 }
  0xc7   : > { %8089 = shalt.err (!%p8086_p11)
}
  0xc8   : > { %7399 = dma.hbm_to_vmem [thread:$0]  (!%p8340_p13), %s9536_s7, 16384, %s390_s12, [#allocation15], %s8217_s17, %s8217_s17, %s8218_s22  }
  0xc9   : > { %s8090_s16 = scalar_lea.hbm %s9538_s9, 16384 }
  0xca   : > { %p8091_p3 = scmp.ne.s32.totalorder %s9538_s9, %s8090_s16  ;;  %p8097_p8 = scmp.lt.u32.totalorder %s8090_s16, %s9538_s9 }
  0xcc   : > { %p8093_p4 = pnand %p8091_p3, %p8356_p1 }
  0xce   : > { %p8094_p7 = pneg %p8093_p4 }
  0xd0   : > { %p8099_p12 = pnand %p8097_p8, %p8094_p7 }
  0xd2   : > { %8102 = shalt.err (!%p8099_p12)
}
  0xd3   : > { %s8103_s30 = scalar_lea.vmem %s406_s11, 16384  ;;  %p8111_p5 = scmp.lt.s32.totalorder %s406_s11, %s406_s11 }
  0xd4   : > { %p8104_p0 = scmp.ne.s32.totalorder %s406_s11, %s8103_s30  ;;  %p8112_p9 = scmp.lt.s32.totalorder %s8103_s30, %s8103_s30 }
  0xd6   : > { %p8106_p2 = pnand %p8104_p0, %p8356_p1  ;;  %p8113_p10 = por %p8112_p9, %p8111_p5 }
  0xd8   : > { %p8107_p6 = pneg %p8106_p2 }
  0xda   : > { %p8114_p11 = pnand %p8113_p10, %p8107_p6 }
  0xdc   : > { %8117 = shalt.err (!%p8114_p11)
}
  0xdd   : > { %s9648_s17 = smov 8   ;;  %s9649_s22 = smov 128  }
  0xde   : > { %7402 = dma.hbm_to_vmem [thread:$0]  (!%p8340_p13), %s9538_s9, 16384, %s406_s11, [#allocation18], %s9649_s22, %s9649_s22, %s9648_s17  }
  0xdf   : > { %p9650_p3 = scmp.ne.s32.totalorder %s9644_s29, 0 }
  0xe1   : > { %424 = sbr.rel (%p9650_p3) target bundleno = 4628 (0x1214), region = 64 }
  0xe8   : > { %p9651_p1 = scmp.eq.s32.totalorder %s8303_s21, 0 }
  0xea   : > { %8163 = dma.done.wait (%p9651_p1), [#allocation6], 64   ;;  %p9652_p4 = pmov %p9651_p1 }
  0xeb   : > { %p9653_p7 = pmov %p9651_p1 }
  0xec   : > { %8165 = vsyncadd (%p9652_p4), [#allocation6], 4294967232 }
  0xed   : > { %8167 = dma.done.wait (%p9653_p7), [#allocation4], 256   ;;  %p9654_p8 = pmov %p9651_p1 }
  0xee   : > { %p9655_p12 = pmov %p9651_p1 }
  0xef   : > { %8169 = vsyncadd (%p9654_p8), [#allocation4], 4294967040 }
  0xf0   : > { %8171 = dma.done.wait (%p9655_p12), [#allocation9], 8448   ;;  %p9656_p13 = pmov %p9651_p1 }
  0xf1   : > { %p9657_p0 = pmov %p9651_p1 }
  0xf2   : > { %8173 = vsyncadd (%p9656_p13), [#allocation9], 4294958848 }
  0xf3   : > { %8175 = dma.done.wait (%p9657_p0), [#allocation12], 24576   ;;  %p9658_p2 = pmov %p9657_p0 }
  0xf4   : > { %p9659_p6 = pmov %p9657_p0 }
  0xf5   : > { %8177 = vsyncadd (%p9658_p2), [#allocation12], 4294942720 }
  0xf6   : > { %8179 = dma.done.wait (%p9659_p6), [#allocation15], 32768   ;;  %p9660_p5 = pmov %p9657_p0 }
  0xf7   : > { %p9661_p9 = pmov %p9657_p0 }
  0xf8   : > { %8181 = vsyncadd (%p9660_p5), [#allocation15], 4294934528 }
  0xf9   : > { %8183 = dma.done.wait (%p9661_p9), [#allocation18], 16384   ;;  %p9662_p10 = pmov %p9657_p0 }
  0xfb   : > { %8185 = vsyncadd (%p9662_p10), [#allocation18], 4294950912 }
  0xfc   : > { %462 = sfence }
  0xfd   : > { %s489_s23 = sand.u32 1, %s8196_s18   ;;  %p9663_p11 = scmp.ne.s32.totalorder %s8303_s21, 0 }
  0xfe   : > { %s5894_s29 = sshll.u32 %s489_s23, 4  ;;  %v496_v0 = vld [vmem:[#allocation7] sm:$0xff] (!%p9663_p11)  ;;  %v497_v1 = vld [vmem:[#allocation7 + $0x8] sm:$0xff] (!%p9663_p11) }
  0xff   : > { %s8559_s13 = scalar_lea.vmem [#allocation19], %s5894_s29  ;;  %495 = sbr.rel (%p9663_p11) target bundleno = 262 (0x106), region = 104  ;;  %498 = vst [vmem:[#allocation2] sm:$0xff] (!%p9663_p11), %v496_v0  ;;  %499 = vst [vmem:[#allocation2 + $0x8] sm:$0xff] (!%p9663_p11), %v497_v1 }
 0x106 PF: > { %v636_v2 = vld [vmem:[#allocation13] sm:$0xff]  ;;  %v637_v19 = vld [vmem:[#allocation13 + $0x8] sm:$0xff]  ;;  %v505_v21 = vld [vmem:[#allocation2 + $0x8] sm:$0xff]  ;;  %s5896_s11 = sshll.u32 %s8303_s21, 7  ;;  %s9826_s27 = sld [smem:[#allocation32_spill]] }
 0x107   : > { %v640_v3 = vld [vmem:[#allocation13 + $0x20] sm:$0xff]  ;;  %v641_v20 = vld [vmem:[#allocation13 + $0x28] sm:$0xff]  ;;  %v8563_v25 = vpack.c.bf16 %v505_v21, %v505_v21  ;;  %s501_s24 = sld [smem:[#allocation3 + %s5896_s11]]  ;;  %s502_s16 = sadd.s32 1, %s5896_s11 }
 0x108   : > { %v644_v4 = vld [vmem:[#allocation13 + $0x40] sm:$0xff]  ;;  %v5898_v5 = vcombine.high %v636_v2, %v640_v3  ;;  %v5897_v6 = vcombine.low %v636_v2, %v640_v3  ;;  %v5900_v23 = vcombine.high %v637_v19, %v641_v20  ;;  %v5899_v24 = vcombine.low %v637_v19, %v641_v20  ;;  %v645_v26 = vld [vmem:[#allocation13 + $0x48] sm:$0xff]  ;;  %s503_s15 = sld [smem:[#allocation3 + %s502_s16]]  ;;  %s6414_s19 = sshll.u32 %s8303_s21, 8 }
 0x109   : > { %v648_v7 = vld [vmem:[#allocation13 + $0x60] sm:$0xff]  ;;  %v649_v27 = vld [vmem:[#allocation13 + $0x68] sm:$0xff]  ;;  %1436 = vmatprep.mubr.bf16.mxu0 %v8563_v25  ;;  %1477 = vmatprep.mubr.bf16.mxu1 %v8563_v25  ;;  %s5735_s14 = sshll.u32 %s8559_s13, 4  ;;  %s9827_s22 = sld [smem:[#allocation67_spill]]  ;;  %s9485_s14 = int_to_ptr.vmem [resolvable:$true] %s5735_s14 }
 0x10a   : > { %v5906_v8 = vcombine.high %v644_v4, %v648_v7  ;;  %v652_v9 = vld [vmem:[#allocation13 + $0x80] sm:$0xff]  ;;  %1404 = vmatprep.subr.bf16.mxu0 %v5898_v5  ;;  %v5905_v11 = vcombine.low %v644_v4, %v648_v7  ;;  %v5908_v29 = vcombine.high %v645_v26, %v649_v27  ;;  %v653_v30 = vld [vmem:[#allocation13 + $0x88] sm:$0xff]  ;;  %1445 = vmatprep.subr.bf16.mxu1 %v5900_v23  ;;  %s5721_s21 = scalar_lea.sflag [#allocation5], %s489_s23  ;;  %s8118_s28 = scalar_lea.vmem %s9485_s14, 256 }
 0x10b   : > { %v656_v10 = vld [vmem:[#allocation13 + $0xa0] sm:$0xff]  ;;  %1405 = vmatpush1.bf16.msra.mxu0 %v5897_v6  ;;  %v657_v31 = vld [vmem:[#allocation13 + $0xa8] sm:$0xff]  ;;  %1446 = vmatpush1.bf16.msra.mxu1 %v5899_v24  ;;  %v5907_v34 = vcombine.low %v645_v26, %v649_v27  ;;  %p8119_p3 = scmp.ne.s32.totalorder %s9485_s14, %s8118_s28  ;;  %s8221_s29 = smov [#allocation19]  }
 0x10c   : > { %1406 = vmatprep.subr.bf16.mxu0 %v5906_v8  ;;  %v5914_v12 = vcombine.high %v652_v9, %v656_v10  ;;  %v660_v13 = vld [vmem:[#allocation13 + $0xc0] sm:$0xff]  ;;  %v5913_v15 = vcombine.low %v652_v9, %v656_v10  ;;  %1447 = vmatprep.subr.bf16.mxu1 %v5908_v29  ;;  %v5916_v36 = vcombine.high %v653_v30, %v657_v31  ;;  %v661_v38 = vld [vmem:[#allocation13 + $0xc8] sm:$0xff]  ;;  %p9828_p1 = scmp.ne.s32.totalorder %s9826_s27, 0  ;;  %s8122_s11 = sshll.u32 %s8221_s29, 4  ;;  %s8123_s11 = int_to_ptr.vmem [resolvable:$false] %s8122_s11 }
 0x10d   : > { %v664_v14 = vld [vmem:[#allocation13 + $0xe0] sm:$0xff]  ;;  %v665_v39 = vld [vmem:[#allocation13 + $0xe8] sm:$0xff]  ;;  %v5915_v42 = vcombine.low %v653_v30, %v657_v31  ;;  %p8125_p8 = scmp.lt.s32.totalorder %s9485_s14, %s8123_s11 }
 0x10e   : > { %v5922_v16 = vcombine.high %v660_v13, %v664_v14  ;;  %v668_v17 = vld [vmem:[#allocation13 + $0x100] sm:$0xff]  ;;  %v5921_v22 = vcombine.low %v660_v13, %v664_v14  ;;  %v5924_v44 = vcombine.high %v661_v38, %v665_v39  ;;  %v669_v46 = vld [vmem:[#allocation13 + $0x108] sm:$0xff]  ;;  %v5923_v50 = vcombine.low %v661_v38, %v665_v39  ;;  %p8120_p4 = pnand %p8119_p3, %p9828_p1 }
 0x10f   : > { %1407 = vmatpush1.bf16.msra.mxu0 %v5905_v11  ;;  %v672_v18 = vld [vmem:[#allocation13 + $0x120] sm:$0xff]  ;;  %1448 = vmatpush1.bf16.msra.mxu1 %v5907_v34  ;;  %v673_v47 = vld [vmem:[#allocation13 + $0x128] sm:$0xff]  ;;  %s9483_s12 = scalar_lea.hbm %s9827_s22, %s6414_s19 }
 0x110   : > { %1408 = vmatprep.subr.bf16.mxu0 %v5914_v12  ;;  %v5930_v28 = vcombine.high %v668_v17, %v672_v18  ;;  %v676_v32 = vld [vmem:[#allocation13 + $0x140] sm:$0xff]  ;;  %v5929_v35 = vcombine.low %v668_v17, %v672_v18  ;;  %1449 = vmatprep.subr.bf16.mxu1 %v5916_v36  ;;  %v5932_v52 = vcombine.high %v669_v46, %v673_v47  ;;  %v677_v54 = vld [vmem:[#allocation13 + $0x148] sm:$0xff]  ;;  %p8121_p7 = pneg %p8120_p4 }
 0x111   : > { %v680_v33 = vld [vmem:[#allocation13 + $0x160] sm:$0xff]  ;;  %v681_v55 = vld [vmem:[#allocation13 + $0x168] sm:$0xff]  ;;  %v5931_v58 = vcombine.low %v669_v46, %v673_v47 }
 0x112   : > { %v5938_v37 = vcombine.high %v676_v32, %v680_v33  ;;  %v684_v40 = vld [vmem:[#allocation13 + $0x180] sm:$0xff]  ;;  %v5937_v43 = vcombine.low %v676_v32, %v680_v33  ;;  %v5940_v60 = vcombine.high %v677_v54, %v681_v55  ;;  %v685_v62 = vld [vmem:[#allocation13 + $0x188] sm:$0xff]  ;;  %v5939_v2 = vcombine.low %v677_v54, %v681_v55 }
 0x113   : > { %1409 = vmatpush1.bf16.msra.mxu0 %v5913_v15  ;;  %v688_v41 = vld [vmem:[#allocation13 + $0x1a0] sm:$0xff]  ;;  %1450 = vmatpush1.bf16.msra.mxu1 %v5915_v42  ;;  %v689_v63 = vld [vmem:[#allocation13 + $0x1a8] sm:$0xff] }
 0x114   : > { %1410 = vmatprep.subr.bf16.mxu0 %v5922_v16  ;;  %v5946_v45 = vcombine.high %v684_v40, %v688_v41  ;;  %v692_v48 = vld [vmem:[#allocation13 + $0x1c0] sm:$0xff]  ;;  %v5945_v51 = vcombine.low %v684_v40, %v688_v41  ;;  %1451 = vmatprep.subr.bf16.mxu1 %v5924_v44  ;;  %v5948_v4 = vcombine.high %v685_v62, %v689_v63  ;;  %v693_v6 = vld [vmem:[#allocation13 + $0x1c8] sm:$0xff] }
 0x115   : > { %v696_v49 = vld [vmem:[#allocation13 + $0x1e0] sm:$0xff]  ;;  %v697_v7 = vld [vmem:[#allocation13 + $0x1e8] sm:$0xff]  ;;  %v5947_v10 = vcombine.low %v685_v62, %v689_v63 }
 0x116   : > { %v5954_v53 = vcombine.high %v692_v48, %v696_v49  ;;  %v700_v56 = vld [vmem:[#allocation13 + $0x200] sm:$0xff]  ;;  %v5953_v59 = vcombine.low %v692_v48, %v696_v49  ;;  %v5956_v12 = vcombine.high %v693_v6, %v697_v7  ;;  %v701_v14 = vld [vmem:[#allocation13 + $0x208] sm:$0xff]  ;;  %v5955_v18 = vcombine.low %v693_v6, %v697_v7 }
 0x117   : > { %1411 = vmatpush1.bf16.msra.mxu0 %v5921_v22  ;;  %v704_v57 = vld [vmem:[#allocation13 + $0x220] sm:$0xff]  ;;  %1452 = vmatpush1.bf16.msra.mxu1 %v5923_v50  ;;  %v705_v15 = vld [vmem:[#allocation13 + $0x228] sm:$0xff] }
 0x118   : > { %1412 = vmatprep.subr.bf16.mxu0 %v5930_v28  ;;  %1453 = vmatprep.subr.bf16.mxu1 %v5932_v52  ;;  %v5962_v61 = vcombine.high %v700_v56, %v704_v57  ;;  %v708_v0 = vld [vmem:[#allocation13 + $0x240] sm:$0xff]  ;;  %v5961_v3 = vcombine.low %v700_v56, %v704_v57  ;;  %v5964_v20 = vcombine.high %v701_v14, %v705_v15  ;;  %v709_v22 = vld [vmem:[#allocation13 + $0x248] sm:$0xff]  ;;  %v638_v57 = vld [vmem:[#allocation13 + $0x10] sm:$0xff] }
 0x119   : > { %v712_v1 = vld [vmem:[#allocation13 + $0x260] sm:$0xff]  ;;  %v713_v23 = vld [vmem:[#allocation13 + $0x268] sm:$0xff]  ;;  %v5963_v27 = vcombine.low %v701_v14, %v705_v15  ;;  %v639_v14 = vld [vmem:[#allocation13 + $0x18] sm:$0xff] }
 0x11a   : > { %v5970_v5 = vcombine.high %v708_v0, %v712_v1  ;;  %v716_v8 = vld [vmem:[#allocation13 + $0x280] sm:$0xff]  ;;  %v5969_v11 = vcombine.low %v708_v0, %v712_v1  ;;  %v5972_v29 = vcombine.high %v709_v22, %v713_v23  ;;  %v717_v31 = vld [vmem:[#allocation13 + $0x288] sm:$0xff]  ;;  %v643_v15 = vld [vmem:[#allocation13 + $0x38] sm:$0xff] }
 0x11b   : > { %1413 = vmatpush1.bf16.msra.mxu0 %v5929_v35  ;;  %1454 = vmatpush1.bf16.msra.mxu1 %v5931_v58  ;;  %v720_v9 = vld [vmem:[#allocation13 + $0x2a0] sm:$0xff]  ;;  %v721_v32 = vld [vmem:[#allocation13 + $0x2a8] sm:$0xff]  ;;  %v5971_v35 = vcombine.low %v709_v22, %v713_v23  ;;  %v642_v58 = vld [vmem:[#allocation13 + $0x30] sm:$0xff] }
 0x11c   : > { %1414 = vmatprep.subr.bf16.mxu0 %v5938_v37  ;;  %1455 = vmatprep.subr.bf16.mxu1 %v5940_v60  ;;  %v5978_v13 = vcombine.high %v716_v8, %v720_v9  ;;  %v724_v16 = vld [vmem:[#allocation13 + $0x2c0] sm:$0xff]  ;;  %v5977_v19 = vcombine.low %v716_v8, %v720_v9  ;;  %v5980_v37 = vcombine.high %v717_v31, %v721_v32  ;;  %v725_v39 = vld [vmem:[#allocation13 + $0x2c8] sm:$0xff]  ;;  %v647_v22 = vld [vmem:[#allocation13 + $0x58] sm:$0xff] }
 0x11d   : > { %v728_v17 = vld [vmem:[#allocation13 + $0x2e0] sm:$0xff]  ;;  %v729_v40 = vld [vmem:[#allocation13 + $0x2e8] sm:$0xff]  ;;  %v5902_v1 = vcombine.high %v638_v57, %v642_v58  ;;  %v5901_v9 = vcombine.low %v638_v57, %v642_v58  ;;  %v651_v23 = vld [vmem:[#allocation13 + $0x78] sm:$0xff] }
 0x11e   : > { %v5986_v21 = vcombine.high %v724_v16, %v728_v17  ;;  %v732_v24 = vld [vmem:[#allocation13 + $0x300] sm:$0xff]  ;;  %v5985_v28 = vcombine.low %v724_v16, %v728_v17  ;;  %v5988_v46 = vcombine.high %v725_v39, %v729_v40  ;;  %v733_v48 = vld [vmem:[#allocation13 + $0x308] sm:$0xff]  ;;  %v702_v58 = vld [vmem:[#allocation13 + $0x210] sm:$0xff] }
 0x11f   : > { %1415 = vmatpush1.bf16.msra.mxu0 %v5937_v43  ;;  %1456 = vmatpush1.bf16.msra.mxu1 %v5939_v2  ;;  %v736_v26 = vld [vmem:[#allocation13 + $0x320] sm:$0xff]  ;;  %v5979_v43 = vcombine.low %v717_v31, %v721_v32  ;;  %v737_v49 = vld [vmem:[#allocation13 + $0x328] sm:$0xff]  ;;  %v646_v2 = vld [vmem:[#allocation13 + $0x50] sm:$0xff] }
 0x120   : > { %1416 = vmatprep.subr.bf16.mxu0 %v5946_v45  ;;  %1457 = vmatprep.subr.bf16.mxu1 %v5948_v4  ;;  %v5994_v30 = vcombine.high %v732_v24, %v736_v26  ;;  %v740_v33 = vld [vmem:[#allocation13 + $0x340] sm:$0xff]  ;;  %v5993_v36 = vcombine.low %v732_v24, %v736_v26  ;;  %v741_v55 = vld [vmem:[#allocation13 + $0x348] sm:$0xff]  ;;  %v670_v26 = vld [vmem:[#allocation13 + $0x110] sm:$0xff] }
 0x121   : > { %v744_v34 = vld [vmem:[#allocation13 + $0x360] sm:$0xff]  ;;  %v745_v56 = vld [vmem:[#allocation13 + $0x368] sm:$0xff]  ;;  %v655_v31 = vld [vmem:[#allocation13 + $0x98] sm:$0xff] }
 0x122   : > { %v6002_v38 = vcombine.high %v740_v33, %v744_v34  ;;  %v748_v41 = vld [vmem:[#allocation13 + $0x380] sm:$0xff]  ;;  %v6001_v44 = vcombine.low %v740_v33, %v744_v34  ;;  %v6004_v62 = vcombine.high %v741_v55, %v745_v56  ;;  %v749_v63 = vld [vmem:[#allocation13 + $0x388] sm:$0xff]  ;;  %v659_v32 = vld [vmem:[#allocation13 + $0xb8] sm:$0xff] }
 0x123   : > { %1417 = vmatpush1.bf16.msra.mxu0 %v5945_v51  ;;  %1458 = vmatpush1.bf16.msra.mxu1 %v5947_v10  ;;  %v752_v42 = vld [vmem:[#allocation13 + $0x3a0] sm:$0xff]  ;;  %v5987_v51 = vcombine.low %v725_v39, %v729_v40  ;;  %v753_v0 = vld [vmem:[#allocation13 + $0x3a8] sm:$0xff]  ;;  %v654_v10 = vld [vmem:[#allocation13 + $0x90] sm:$0xff] }
 0x124   : > { %1418 = vmatprep.subr.bf16.mxu0 %v5954_v53  ;;  %1459 = vmatprep.subr.bf16.mxu1 %v5956_v12  ;;  %v756_v45 = vld [vmem:[#allocation13 + $0x3c0] sm:$0xff]  ;;  %v6010_v47 = vcombine.high %v748_v41, %v752_v42  ;;  %v6009_v52 = vcombine.low %v748_v41, %v752_v42  ;;  %v5996_v53 = vcombine.high %v733_v48, %v737_v49  ;;  %v757_v6 = vld [vmem:[#allocation13 + $0x3c8] sm:$0xff]  ;;  %v678_v34 = vld [vmem:[#allocation13 + $0x150] sm:$0xff] }
 0x125   : > { %v760_v50 = vld [vmem:[#allocation13 + $0x3e0] sm:$0xff]  ;;  %v761_v7 = vld [vmem:[#allocation13 + $0x3e8] sm:$0xff]  ;;  %v6012_v8 = vcombine.high %v749_v63, %v753_v0  ;;  %v663_v39 = vld [vmem:[#allocation13 + $0xd8] sm:$0xff] }
 0x126   : > { %v6018_v54 = vcombine.high %v756_v45, %v760_v50  ;;  %v6017_v60 = vcombine.low %v756_v45, %v760_v50  ;;  %v6020_v16 = vcombine.high %v757_v6, %v761_v7  ;;  %v667_v40 = vld [vmem:[#allocation13 + $0xf8] sm:$0xff]  ;;  %v686_v42 = vld [vmem:[#allocation13 + $0x190] sm:$0xff] }
 0x127   : > { %1419 = vmatpush1.bf16.msra.mxu0 %v5953_v59  ;;  %1460 = vmatpush1.bf16.msra.mxu1 %v5955_v18  ;;  %v5995_v59 = vcombine.low %v733_v48, %v737_v49  ;;  %v662_v18 = vld [vmem:[#allocation13 + $0xd0] sm:$0xff]  ;;  %v675_v48 = vld [vmem:[#allocation13 + $0x138] sm:$0xff] }
 0x128   : > { %1420 = vmatprep.subr.bf16.mxu0 %v5962_v61  ;;  %1461 = vmatprep.subr.bf16.mxu1 %v5964_v20  ;;  %v504_v61 = vld [vmem:[#allocation2] sm:$0xff] }
 0x129   : > { %v8567_v4 = vpack.c.bf16 %v504_v61, %v504_v61  ;;  %v694_v50 = vld [vmem:[#allocation13 + $0x1d0] sm:$0xff] }
 0x12b   : > { %1421 = vmatpush1.bf16.msra.mxu0 %v5961_v3  ;;  %1462 = vmatpush1.bf16.msra.mxu1 %v5963_v27  ;;  %v650_v3 = vld [vmem:[#allocation13 + $0x70] sm:$0xff] }
 0x12c   : > { %1422 = vmatprep.subr.bf16.mxu0 %v5970_v5  ;;  %1463 = vmatprep.subr.bf16.mxu1 %v5972_v29  ;;  %v6003_v5 = vcombine.low %v741_v55, %v745_v56  ;;  %v5910_v12 = vcombine.high %v646_v2, %v650_v3  ;;  %v5909_v17 = vcombine.low %v646_v2, %v650_v3  ;;  %v674_v27 = vld [vmem:[#allocation13 + $0x130] sm:$0xff]  ;;  %v679_v55 = vld [vmem:[#allocation13 + $0x158] sm:$0xff] }
 0x12d   : > { %v5933_v41 = vcombine.low %v670_v26, %v674_v27  ;;  %v683_v56 = vld [vmem:[#allocation13 + $0x178] sm:$0xff]  ;;  %v710_v2 = vld [vmem:[#allocation13 + $0x250] sm:$0xff] }
 0x12e   : > { %v714_v3 = vld [vmem:[#allocation13 + $0x270] sm:$0xff] }
 0x12f   : > { %1423 = vmatpush1.bf16.msra.mxu0 %v5969_v11  ;;  %1464 = vmatpush1.bf16.msra.mxu1 %v5971_v35  ;;  %v658_v11 = vld [vmem:[#allocation13 + $0xb0] sm:$0xff] }
 0x130   : > { %1424 = vmatprep.subr.bf16.mxu0 %v5978_v13  ;;  %1465 = vmatprep.subr.bf16.mxu1 %v5980_v37  ;;  %v6011_v13 = vcombine.low %v749_v63, %v753_v0  ;;  %v5918_v20 = vcombine.high %v654_v10, %v658_v11  ;;  %v5917_v24 = vcombine.low %v654_v10, %v658_v11  ;;  %v682_v35 = vld [vmem:[#allocation13 + $0x170] sm:$0xff]  ;;  %v687_v63 = vld [vmem:[#allocation13 + $0x198] sm:$0xff] }
 0x131   : > { %v5934_v37 = vcombine.high %v670_v26, %v674_v27  ;;  %v5942_v45 = vcombine.high %v678_v34, %v682_v35  ;;  %v5941_v49 = vcombine.low %v678_v34, %v682_v35  ;;  %v691_v0 = vld [vmem:[#allocation13 + $0x1b8] sm:$0xff]  ;;  %v718_v11 = vld [vmem:[#allocation13 + $0x290] sm:$0xff] }
 0x132   : > { %v715_v26 = vld [vmem:[#allocation13 + $0x278] sm:$0xff] }
 0x133   : > { %1425 = vmatpush1.bf16.msra.mxu0 %v5977_v19  ;;  %1466 = vmatpush1.bf16.msra.mxu1 %v5979_v43  ;;  %v666_v19 = vld [vmem:[#allocation13 + $0xf0] sm:$0xff]  ;;  %v723_v34 = vld [vmem:[#allocation13 + $0x2b8] sm:$0xff] }
 0x134   : > { %1426 = vmatprep.subr.bf16.mxu0 %v5986_v21  ;;  %1467 = vmatprep.subr.bf16.mxu1 %v5988_v46  ;;  %v6019_v21 = vcombine.low %v757_v6, %v761_v7  ;;  %v5926_v29 = vcombine.high %v662_v18, %v666_v19  ;;  %v5925_v33 = vcombine.low %v662_v18, %v666_v19  ;;  %v690_v43 = vld [vmem:[#allocation13 + $0x1b0] sm:$0xff] }
 0x135   : > { %v5919_v46 = vcombine.low %v655_v31, %v659_v32  ;;  %v5949_v57 = vcombine.low %v686_v42, %v690_v43  ;;  %v5943_v7 = vcombine.low %v679_v55, %v683_v56  ;;  %v5973_v18 = vcombine.low %v710_v2, %v714_v3  ;;  %v726_v19 = vld [vmem:[#allocation13 + $0x2d0] sm:$0xff] }
 0x137   : > { %1427 = vmatpush1.bf16.msra.mxu0 %v5985_v28  ;;  %1468 = vmatpush1.bf16.msra.mxu1 %v5987_v51  ;;  %v5904_v28 = vcombine.high %v639_v14, %v643_v15  ;;  %v698_v51 = vld [vmem:[#allocation13 + $0x1f0] sm:$0xff] }
 0x138   : > { %1428 = vmatprep.subr.bf16.mxu0 %v5994_v30  ;;  %1469 = vmatprep.subr.bf16.mxu1 %v5996_v53  ;;  %v5903_v30 = vcombine.low %v639_v14, %v643_v15  ;;  %v5950_v53 = vcombine.high %v686_v42, %v690_v43  ;;  %v5958_v61 = vcombine.high %v694_v50, %v698_v51  ;;  %v731_v42 = vld [vmem:[#allocation13 + $0x2f8] sm:$0xff] }
 0x139   : > { %v5974_v14 = vcombine.high %v710_v2, %v714_v3  ;;  %v5951_v15 = vcombine.low %v687_v63, %v691_v0 }
 0x13b   : > { %1429 = vmatpush1.bf16.msra.mxu0 %v5993_v36  ;;  %1470 = vmatpush1.bf16.msra.mxu1 %v5995_v59  ;;  %v5912_v36 = vcombine.high %v647_v22, %v651_v23  ;;  %v706_v59 = vld [vmem:[#allocation13 + $0x230] sm:$0xff] }
 0x13c   : > { %1430 = vmatprep.subr.bf16.mxu0 %v6002_v38  ;;  %1471 = vmatprep.subr.bf16.mxu1 %v6004_v62  ;;  %v5911_v38 = vcombine.low %v647_v22, %v651_v23  ;;  %v5966_v6 = vcombine.high %v702_v58, %v706_v59  ;;  %v5965_v10 = vcombine.low %v702_v58, %v706_v59  ;;  %v747_v58 = vld [vmem:[#allocation13 + $0x378] sm:$0xff] }
 0x13f   : > { %1431 = vmatpush1.bf16.msra.mxu0 %v6001_v44  ;;  %1472 = vmatpush1.bf16.msra.mxu1 %v6003_v5  ;;  %v5920_v44 = vcombine.high %v655_v31, %v659_v32  ;;  %v5944_v5 = vcombine.high %v679_v55, %v683_v56 }
 0x140   : > { %1432 = vmatprep.subr.bf16.mxu0 %v6010_v47  ;;  %1473 = vmatprep.subr.bf16.mxu1 %v6012_v8  ;;  %v671_v47 = vld [vmem:[#allocation13 + $0x118] sm:$0xff] }
 0x141   : > { %v5935_v62 = vcombine.low %v671_v47, %v675_v48  ;;  %v695_v8 = vld [vmem:[#allocation13 + $0x1d8] sm:$0xff] }
 0x143   : > { %1433 = vmatpush1.bf16.msra.mxu0 %v6009_v52  ;;  %1474 = vmatpush1.bf16.msra.mxu1 %v6011_v13  ;;  %v5928_v52 = vcombine.high %v663_v39, %v667_v40  ;;  %v5952_v13 = vcombine.high %v687_v63, %v691_v0  ;;  %v751_v0 = vld [vmem:[#allocation13 + $0x398] sm:$0xff] }
 0x144   : > { %1434 = vmatprep.subr.bf16.mxu0 %v6018_v54  ;;  %1475 = vmatprep.subr.bf16.mxu1 %v6020_v16  ;;  %v5927_v54 = vcombine.low %v663_v39, %v667_v40  ;;  %v703_v16 = vld [vmem:[#allocation13 + $0x218] sm:$0xff] }
 0x147   : > { %1435 = vmatpush1.bf16.msra.mxu0 %v6017_v60  ;;  %1476 = vmatpush1.bf16.msra.mxu1 %v6019_v21  ;;  %v5936_v60 = vcombine.high %v671_v47, %v675_v48 }
 0x148   : > { %1486 = vmatprep.subr.bf16.mxu0 %v5902_v1  ;;  %1527 = vmatprep.subr.bf16.mxu1 %v5904_v28  ;;  %v5957_v1 = vcombine.low %v694_v50, %v698_v51  ;;  %v734_v28 = vld [vmem:[#allocation13 + $0x310] sm:$0xff]  ;;  %v739_v50 = vld [vmem:[#allocation13 + $0x338] sm:$0xff] }
 0x14a   : > { %1437 = vmatmul.mubr.bf16.vlgmr.msra.gmra.mrb[0].mxu0 %v8567_v4  ;;  %1478 = vmatmul.mubr.bf16.vlgmr.msra.gmra.mrb[0].mxu1 %v8567_v4 }
 0x14b   : > { %1487 = vmatpush1.bf16.msra.mxu0 %v5901_v9  ;;  %1518 = vmatprep.mubr.bf16.mxu0 %v8563_v25  ;;  %v699_v9 = vld [vmem:[#allocation13 + $0x1f8] sm:$0xff] }
 0x14c   : > { %1488 = vmatprep.subr.bf16.mxu0 %v5910_v12  ;;  %1528 = vmatpush1.bf16.msra.mxu1 %v5903_v30  ;;  %v722_v12 = vld [vmem:[#allocation13 + $0x2b0] sm:$0xff]  ;;  %v5960_v21 = vcombine.high %v695_v8, %v699_v9  ;;  %v5959_v23 = vcombine.low %v695_v8, %v699_v9  ;;  %v759_v8 = vld [vmem:[#allocation13 + $0x3d8] sm:$0xff] }
 0x14d   : > { %1559 = vmatprep.mubr.bf16.mxu1 %v8563_v25  ;;  %1529 = vmatprep.subr.bf16.mxu1 %v5912_v36  ;;  %v5982_v22 = vcombine.high %v718_v11, %v722_v12  ;;  %v5981_v27 = vcombine.low %v718_v11, %v722_v12  ;;  %v742_v36 = vld [vmem:[#allocation13 + $0x350] sm:$0xff]  ;;  %v763_v9 = vld [vmem:[#allocation13 + $0x3f8] sm:$0xff]  ;;  %v7481_v12 = vld [vmem:[#allocation14 + $0x24] ss:$8 sps:$4 sm:$0xff]  }
 0x14e   : > { %v7476_v11 = vld [vmem:[#allocation14 + $0x10] ss:$8 sps:$4 sm:$0xff]  }
 0x14f   : > { %1489 = vmatpush1.bf16.msra.mxu0 %v5909_v17  ;;  %v707_v17 = vld [vmem:[#allocation13 + $0x238] sm:$0xff] }
 0x150   : > { %1490 = vmatprep.subr.bf16.mxu0 %v5918_v20  ;;  %1530 = vmatpush1.bf16.msra.mxu1 %v5911_v38  ;;  %v730_v20 = vld [vmem:[#allocation13 + $0x2f0] sm:$0xff]  ;;  %v5968_v30 = vcombine.high %v703_v16, %v707_v17  ;;  %v5967_v32 = vcombine.low %v703_v16, %v707_v17  ;;  %v6024_v16 = vcombine.high %v759_v8, %v763_v9  ;;  %v7479_v17 = vld [vmem:[#allocation14 + $0x20] ss:$8 sps:$4 sm:$0xff]  }
 0x151   : > { %1531 = vmatprep.subr.bf16.mxu1 %v5920_v44  ;;  %v5990_v31 = vcombine.high %v726_v19, %v730_v20  ;;  %v5989_v35 = vcombine.low %v726_v19, %v730_v20  ;;  %v750_v44 = vld [vmem:[#allocation13 + $0x390] sm:$0xff]  ;;  %v6023_v19 = vcombine.low %v759_v8, %v763_v9  ;;  %v2572_v20 = vld [vmem:[#allocation16 + $0x40] sm:$0xff] }
 0x152   : > { %v2640_v8 = vld [vmem:[#allocation16 + $0x260] sm:$0xff] }
 0x153   : > { %1491 = vmatpush1.bf16.msra.mxu0 %v5917_v24  ;;  %v711_v24 = vld [vmem:[#allocation13 + $0x258] sm:$0xff] }
 0x154   : > { %1492 = vmatprep.subr.bf16.mxu0 %v5926_v29  ;;  %1532 = vmatpush1.bf16.msra.mxu1 %v5919_v46  ;;  %v738_v29 = vld [vmem:[#allocation13 + $0x330] sm:$0xff]  ;;  %v5976_v38 = vcombine.high %v711_v24, %v715_v26  ;;  %v5975_v40 = vcombine.low %v711_v24, %v715_v26 }
 0x155   : > { %1533 = vmatprep.subr.bf16.mxu1 %v5928_v52  ;;  %v5998_v39 = vcombine.high %v734_v28, %v738_v29  ;;  %v5997_v43 = vcombine.low %v734_v28, %v738_v29  ;;  %v758_v52 = vld [vmem:[#allocation13 + $0x3d0] sm:$0xff]  ;;  %v2580_v28 = vld [vmem:[#allocation16 + $0x80] sm:$0xff] }
 0x156   : > { %v7482_v24 = vld [vmem:[#allocation14 + $0x30] ss:$8 sps:$4 sm:$0xff]   ;;  %v2584_v29 = vld [vmem:[#allocation16 + $0xa0] sm:$0xff] }
 0x157   : > { %1493 = vmatpush1.bf16.msra.mxu0 %v5925_v33  ;;  %v719_v33 = vld [vmem:[#allocation13 + $0x298] sm:$0xff] }
 0x158   : > { %1494 = vmatprep.subr.bf16.mxu0 %v5934_v37  ;;  %1534 = vmatpush1.bf16.msra.mxu1 %v5927_v54  ;;  %v746_v37 = vld [vmem:[#allocation13 + $0x370] sm:$0xff]  ;;  %v5984_v46 = vcombine.high %v719_v33, %v723_v34  ;;  %v5983_v48 = vcombine.low %v719_v33, %v723_v34  ;;  %v2588_v34 = vld [vmem:[#allocation16 + $0xc0] sm:$0xff] }
 0x159   : > { %1535 = vmatprep.subr.bf16.mxu1 %v5936_v60  ;;  %v6006_v47 = vcombine.high %v742_v36, %v746_v37  ;;  %v6005_v51 = vcombine.low %v742_v36, %v746_v37  ;;  %v7490_v33 = vld [vmem:[#allocation14 + $0x54] ss:$8 sps:$4 sm:$0xff]   ;;  %v6169_v36 = vcombine.low %v2580_v28, %v2584_v29  ;;  %v7488_v37 = vld [vmem:[#allocation14 + $0x50] ss:$8 sps:$4 sm:$0xff]  }
 0x15b   : > { %1495 = vmatpush1.bf16.msra.mxu0 %v5933_v41  ;;  %v727_v41 = vld [vmem:[#allocation13 + $0x2d8] sm:$0xff] }
 0x15c   : > { %1496 = vmatprep.subr.bf16.mxu0 %v5942_v45  ;;  %1536 = vmatpush1.bf16.msra.mxu1 %v5935_v62  ;;  %v754_v45 = vld [vmem:[#allocation13 + $0x3b0] sm:$0xff]  ;;  %v5992_v54 = vcombine.high %v727_v41, %v731_v42  ;;  %v5991_v56 = vcombine.low %v727_v41, %v731_v42  ;;  %v7475_v62 = vld [vmem:[#allocation14 + $0x4] ss:$8 sps:$4 sm:$0xff]  }
 0x15d   : > { %1537 = vmatprep.subr.bf16.mxu1 %v5944_v5  ;;  %v6014_v55 = vcombine.high %v750_v44, %v754_v45  ;;  %v6013_v59 = vcombine.low %v750_v44, %v754_v45  ;;  %v7473_v5 = vld [vmem:[#allocation14] ss:$8 sps:$4 sm:$0xff]   ;;  %v7496_v45 = vld [vmem:[#allocation14 + $0x74] ss:$8 sps:$4 sm:$0xff]  }
 0x15e   : > { %v2600_v41 = vld [vmem:[#allocation16 + $0x120] sm:$0xff] }
 0x15f   : > { %1497 = vmatpush1.bf16.msra.mxu0 %v5941_v49  ;;  %v735_v49 = vld [vmem:[#allocation13 + $0x318] sm:$0xff] }
 0x160   : > { %1498 = vmatprep.subr.bf16.mxu0 %v5950_v53  ;;  %1538 = vmatpush1.bf16.msra.mxu1 %v5943_v7  ;;  %v762_v53 = vld [vmem:[#allocation13 + $0x3f0] sm:$0xff]  ;;  %v6000_v60 = vcombine.high %v735_v49, %v739_v50  ;;  %v5999_v63 = vcombine.low %v735_v49, %v739_v50 }
 0x161   : > { %1539 = vmatprep.subr.bf16.mxu1 %v5952_v13  ;;  %v6021_v2 = vcombine.low %v758_v52, %v762_v53  ;;  %v7494_v49 = vld [vmem:[#allocation14 + $0x70] ss:$8 sps:$4 sm:$0xff]  }
 0x163   : > { %1499 = vmatpush1.bf16.msra.mxu0 %v5949_v57  ;;  %v743_v57 = vld [vmem:[#allocation13 + $0x358] sm:$0xff] }
 0x164   : > { %1500 = vmatprep.subr.bf16.mxu0 %v5958_v61  ;;  %1540 = vmatpush1.bf16.msra.mxu1 %v5951_v15  ;;  %v6022_v61 = vcombine.high %v758_v52, %v762_v53  ;;  %v6008_v3 = vcombine.high %v743_v57, %v747_v58  ;;  %v6007_v7 = vcombine.low %v743_v57, %v747_v58  ;;  %v2568_v15 = vld [vmem:[#allocation16 + $0x20] sm:$0xff]  ;;  %v7502_v57 = vld [vmem:[#allocation14 + $0x94] ss:$8 sps:$4 sm:$0xff]  }
 0x165   : > { %1541 = vmatprep.subr.bf16.mxu1 %v5960_v21  ;;  %v2576_v21 = vld [vmem:[#allocation16 + $0x60] sm:$0xff] }
 0x166   : > { %v6162_v26 = vcombine.high %v2572_v20, %v2576_v21  ;;  %v2612_v52 = vld [vmem:[#allocation16 + $0x180] sm:$0xff] }
 0x167   : > { %1501 = vmatpush1.bf16.msra.mxu0 %v5957_v1  ;;  %v755_v1 = vld [vmem:[#allocation13 + $0x3b8] sm:$0xff]  ;;  %v2616_v53 = vld [vmem:[#allocation16 + $0x1a0] sm:$0xff] }
 0x168   : > { %1502 = vmatprep.subr.bf16.mxu0 %v5966_v6  ;;  %1542 = vmatpush1.bf16.msra.mxu1 %v5959_v23  ;;  %v7478_v6 = vld [vmem:[#allocation14 + $0x14] ss:$8 sps:$4 sm:$0xff]   ;;  %v6015_v13 = vcombine.low %v751_v0, %v755_v1  ;;  %v2620_v58 = vld [vmem:[#allocation16 + $0x1c0] sm:$0xff] }
 0x169   : > { %1543 = vmatprep.subr.bf16.mxu1 %v5968_v30  ;;  %v6161_v30 = vcombine.low %v2572_v20, %v2576_v21  ;;  %v2656_v20 = vld [vmem:[#allocation16 + $0x2e0] sm:$0xff] }
 0x16b   : > { %1503 = vmatpush1.bf16.msra.mxu0 %v5965_v10  ;;  %v6016_v10 = vcombine.high %v751_v0, %v755_v1  ;;  %v2628_v0 = vld [vmem:[#allocation16 + $0x200] sm:$0xff] }
 0x16c   : > { %1504 = vmatprep.subr.bf16.mxu0 %v5974_v14  ;;  %1544 = vmatpush1.bf16.msra.mxu1 %v5967_v32  ;;  %v2564_v14 = vld [vmem:[#allocation16] sm:$0xff]  ;;  %v6170_v32 = vcombine.high %v2580_v28, %v2584_v29 }
 0x16d   : > { %1545 = vmatprep.subr.bf16.mxu1 %v5976_v38  ;;  %v6153_v23 = vcombine.low %v2564_v14, %v2568_v15  ;;  %v2632_v1 = vld [vmem:[#allocation16 + $0x220] sm:$0xff] }
 0x16e   : > { %v6217_v9 = vcombine.low %v2628_v0, %v2632_v1  ;;  %v7515_v29 = vld [vmem:[#allocation14 + $0xe0] ss:$8 sps:$4 sm:$0xff]  }
 0x16f   : > { %1505 = vmatpush1.bf16.msra.mxu0 %v5973_v18  ;;  %v7484_v18 = vld [vmem:[#allocation14 + $0x34] ss:$8 sps:$4 sm:$0xff]  }
 0x170   : > { %1506 = vmatprep.subr.bf16.mxu0 %v5982_v22  ;;  %1546 = vmatpush1.bf16.msra.mxu1 %v5975_v40  ;;  %v6154_v22 = vcombine.high %v2564_v14, %v2568_v15  ;;  %v2596_v40 = vld [vmem:[#allocation16 + $0x100] sm:$0xff] }
 0x171   : > { %1547 = vmatprep.subr.bf16.mxu1 %v5984_v46  ;;  %v6186_v44 = vcombine.high %v2596_v40, %v2600_v41  ;;  %v2604_v46 = vld [vmem:[#allocation16 + $0x140] sm:$0xff] }
 0x172   : > { %v2648_v14 = vld [vmem:[#allocation16 + $0x2a0] sm:$0xff] }
 0x173   : > { %1507 = vmatpush1.bf16.msra.mxu0 %v5981_v27  ;;  %v7487_v27 = vld [vmem:[#allocation14 + $0x44] ss:$8 sps:$4 sm:$0xff]  }
 0x174   : > { %1508 = vmatprep.subr.bf16.mxu0 %v5990_v31  ;;  %1548 = vmatpush1.bf16.msra.mxu1 %v5983_v48  ;;  %v7485_v31 = vld [vmem:[#allocation14 + $0x40] ss:$8 sps:$4 sm:$0xff]   ;;  %v6185_v48 = vcombine.low %v2596_v40, %v2600_v41 }
 0x175   : > { %1549 = vmatprep.subr.bf16.mxu1 %v5992_v54 }
 0x177   : > { %1509 = vmatpush1.bf16.msra.mxu0 %v5989_v35  ;;  %v2592_v35 = vld [vmem:[#allocation16 + $0xe0] sm:$0xff] }
 0x178   : > { %1510 = vmatprep.subr.bf16.mxu0 %v5998_v39  ;;  %1550 = vmatpush1.bf16.msra.mxu1 %v5991_v56  ;;  %v6178_v38 = vcombine.high %v2588_v34, %v2592_v35  ;;  %v7493_v39 = vld [vmem:[#allocation14 + $0x64] ss:$8 sps:$4 sm:$0xff]   ;;  %v6177_v42 = vcombine.low %v2588_v34, %v2592_v35  ;;  %v6202_v56 = vcombine.high %v2612_v52, %v2616_v53  ;;  %v7518_v35 = vld [vmem:[#allocation14 + $0xf0] ss:$8 sps:$4 sm:$0xff]  }
 0x179   : > { %1551 = vmatprep.subr.bf16.mxu1 %v6000_v60  ;;  %v6201_v60 = vcombine.low %v2612_v52, %v2616_v53 }
 0x17b   : > { %1511 = vmatpush1.bf16.msra.mxu0 %v5997_v43  ;;  %v7491_v43 = vld [vmem:[#allocation14 + $0x60] ss:$8 sps:$4 sm:$0xff]  }
 0x17c   : > { %1512 = vmatprep.subr.bf16.mxu0 %v6006_v47  ;;  %1552 = vmatpush1.bf16.msra.mxu1 %v5999_v63  ;;  %v2608_v47 = vld [vmem:[#allocation16 + $0x160] sm:$0xff] }
 0x17d   : > { %1553 = vmatprep.subr.bf16.mxu1 %v6008_v3  ;;  %v6194_v50 = vcombine.high %v2604_v46, %v2608_v47  ;;  %v6193_v54 = vcombine.low %v2604_v46, %v2608_v47  ;;  %v7505_v63 = vld [vmem:[#allocation14 + $0xa4] ss:$8 sps:$4 sm:$0xff]   ;;  %v7503_v3 = vld [vmem:[#allocation14 + $0xa0] ss:$8 sps:$4 sm:$0xff]  }
 0x17e   : > { %v2565_v46 = vld [vmem:[#allocation16 + $0x8] sm:$0xff] }
 0x17f   : > { %1513 = vmatpush1.bf16.msra.mxu0 %v6005_v51  ;;  %v7499_v51 = vld [vmem:[#allocation14 + $0x84] ss:$8 sps:$4 sm:$0xff]  }
 0x180   : > { %1514 = vmatprep.subr.bf16.mxu0 %v6014_v55  ;;  %1554 = vmatpush1.bf16.msra.mxu1 %v6007_v7  ;;  %v7497_v55 = vld [vmem:[#allocation14 + $0x80] ss:$8 sps:$4 sm:$0xff]  }
 0x181   : > { %1555 = vmatprep.subr.bf16.mxu1 %v6016_v10  ;;  %v2636_v7 = vld [vmem:[#allocation16 + $0x240] sm:$0xff]  ;;  %v7506_v10 = vld [vmem:[#allocation14 + $0xb0] ss:$8 sps:$4 sm:$0xff]   ;;  %v2569_v47 = vld [vmem:[#allocation16 + $0x28] sm:$0xff] }
 0x182   : > { %v6225_v15 = vcombine.low %v2636_v7, %v2640_v8  ;;  %v6155_v52 = vcombine.low %v2565_v46, %v2569_v47 }
 0x183   : > { %1515 = vmatpush1.bf16.msra.mxu0 %v6013_v59  ;;  %v2624_v59 = vld [vmem:[#allocation16 + $0x1e0] sm:$0xff] }
 0x184   : > { %1516 = vmatprep.subr.bf16.mxu0 %v6022_v61  ;;  %1556 = vmatpush1.bf16.msra.mxu1 %v6015_v13  ;;  %v7500_v61 = vld [vmem:[#allocation14 + $0x90] ss:$8 sps:$4 sm:$0xff]   ;;  %v2644_v13 = vld [vmem:[#allocation16 + $0x280] sm:$0xff] }
 0x185   : > { %1557 = vmatprep.subr.bf16.mxu1 %v6024_v16  ;;  %v7509_v16 = vld [vmem:[#allocation14 + $0xc0] ss:$8 sps:$4 sm:$0xff]   ;;  %v6233_v21 = vcombine.low %v2644_v13, %v2648_v14 }
 0x187   : > { %1517 = vmatpush1.bf16.msra.mxu0 %v6021_v2  ;;  %v6209_v2 = vcombine.low %v2620_v58, %v2624_v59 }
 0x188   : > { %2393 = vmatprep.subr.bf16.mxu0 %v7475_v62  ;;  %1558 = vmatpush1.bf16.msra.mxu1 %v6023_v19  ;;  %v6210_v62 = vcombine.high %v2620_v58, %v2624_v59  ;;  %v2652_v19 = vld [vmem:[#allocation16 + $0x2c0] sm:$0xff]  ;;  %v2589_v58 = vld [vmem:[#allocation16 + $0xc8] sm:$0xff] }
 0x189   : > { %3374 = vmatprep.subr.bf16.mxu1 %v6154_v22  ;;  %v7512_v22 = vld [vmem:[#allocation14 + $0xd0] ss:$8 sps:$4 sm:$0xff]   ;;  %v6241_v28 = vcombine.low %v2652_v19, %v2656_v20  ;;  %v2593_v59 = vld [vmem:[#allocation16 + $0xe8] sm:$0xff] }
 0x18a   : > { %1519 = vmatmul.mubr.bf16.vlgmr.msra.gmra.mrb[4].mxu0 %v8567_v4 }
 0x18b   : > { %2394 = vmatpush1.bf16.msra.mxu0 %v7473_v5  ;;  %1560 = vmatmul.mubr.bf16.vlgmr.msra.gmra.mrb[4].mxu1 %v8567_v4  ;;  %v6218_v5 = vcombine.high %v2628_v0, %v2632_v1  ;;  %v6179_v0 = vcombine.low %v2589_v58, %v2593_v59 }
 0x18c   : > { %2395 = vmatprep.subr.bf16.mxu0 %v7478_v6  ;;  %3375 = vmatpush1.bf16.msra.mxu1 %v6153_v23  ;;  %v7508_v6 = vld [vmem:[#allocation14 + $0xb4] ss:$8 sps:$4 sm:$0xff]   ;;  %v6242_v23 = vcombine.high %v2652_v19, %v2656_v20  ;;  %v2637_v19 = vld [vmem:[#allocation16 + $0x248] sm:$0xff] }
 0x18d   : > { %3406 = vmatprep.mubr.bf16.mxu1 %v8563_v25  ;;  %3376 = vmatprep.subr.bf16.mxu1 %v6162_v26  ;;  %v2660_v26 = vld [vmem:[#allocation16 + $0x300] sm:$0xff]  ;;  %v2641_v20 = vld [vmem:[#allocation16 + $0x268] sm:$0xff] }
 0x18f   : > { %2396 = vmatpush1.bf16.msra.mxu0 %v7476_v11  ;;  %v6226_v11 = vcombine.high %v2636_v7, %v2640_v8  ;;  %v2613_v7 = vld [vmem:[#allocation16 + $0x188] sm:$0xff] }
 0x190   : > { %2397 = vmatprep.subr.bf16.mxu0 %v7481_v12  ;;  %3377 = vmatpush1.bf16.msra.mxu1 %v6161_v30  ;;  %v7511_v12 = vld [vmem:[#allocation14 + $0xc4] ss:$8 sps:$4 sm:$0xff]  }
 0x191   : > { %3378 = vmatprep.subr.bf16.mxu1 %v6170_v32  ;;  %v2668_v32 = vld [vmem:[#allocation16 + $0x340] sm:$0xff]  ;;  %v2617_v8 = vld [vmem:[#allocation16 + $0x1a8] sm:$0xff] }
 0x193   : > { %2398 = vmatpush1.bf16.msra.mxu0 %v7479_v17  ;;  %v6234_v17 = vcombine.high %v2644_v13, %v2648_v14  ;;  %v6203_v13 = vcombine.low %v2613_v7, %v2617_v8 }
 0x194   : > { %2399 = vmatprep.subr.bf16.mxu0 %v7484_v18  ;;  %3379 = vmatpush1.bf16.msra.mxu1 %v6169_v36  ;;  %v7514_v18 = vld [vmem:[#allocation14 + $0xd4] ss:$8 sps:$4 sm:$0xff]  }
 0x195   : > { %3380 = vmatprep.subr.bf16.mxu1 %v6178_v38  ;;  %v2676_v38 = vld [vmem:[#allocation16 + $0x380] sm:$0xff] }
 0x197   : > { %2400 = vmatpush1.bf16.msra.mxu0 %v7482_v24  ;;  %v7517_v24 = vld [vmem:[#allocation14 + $0xe4] ss:$8 sps:$4 sm:$0xff]  }
 0x198   : > { %2401 = vmatprep.subr.bf16.mxu0 %v7487_v27  ;;  %3381 = vmatpush1.bf16.msra.mxu1 %v6177_v42  ;;  %v2664_v27 = vld [vmem:[#allocation16 + $0x320] sm:$0xff] }
 0x199   : > { %3382 = vmatprep.subr.bf16.mxu1 %v6186_v44  ;;  %v6250_v30 = vcombine.high %v2660_v26, %v2664_v27  ;;  %v6249_v34 = vcombine.low %v2660_v26, %v2664_v27  ;;  %v2684_v42 = vld [vmem:[#allocation16 + $0x3c0] sm:$0xff]  ;;  %v6227_v26 = vcombine.low %v2637_v19, %v2641_v20 }
 0x19b   : > { %2402 = vmatpush1.bf16.msra.mxu0 %v7485_v31  ;;  %v7520_v31 = vld [vmem:[#allocation14 + $0xf4] ss:$8 sps:$4 sm:$0xff]  }
 0x19c   : > { %2403 = vmatprep.subr.bf16.mxu0 %v7490_v33  ;;  %3383 = vmatpush1.bf16.msra.mxu1 %v6185_v48  ;;  %v2672_v33 = vld [vmem:[#allocation16 + $0x360] sm:$0xff] }
 0x19d   : > { %3384 = vmatprep.subr.bf16.mxu1 %v6194_v50  ;;  %v6258_v36 = vcombine.high %v2668_v32, %v2672_v33  ;;  %v6257_v40 = vcombine.low %v2668_v32, %v2672_v33  ;;  %v2573_v50 = vld [vmem:[#allocation16 + $0x48] sm:$0xff] }
 0x19e   : > { %v2661_v32 = vld [vmem:[#allocation16 + $0x308] sm:$0xff] }
 0x19f   : > { %2404 = vmatpush1.bf16.msra.mxu0 %v7488_v37  ;;  %v7523_v37 = vld [vmem:[#allocation14 + $0x104] ss:$8 sps:$4 sm:$0xff]  }
 0x1a0   : > { %2405 = vmatprep.subr.bf16.mxu0 %v7493_v39  ;;  %3385 = vmatpush1.bf16.msra.mxu1 %v6193_v54  ;;  %v2680_v39 = vld [vmem:[#allocation16 + $0x3a0] sm:$0xff]  ;;  %v2581_v54 = vld [vmem:[#allocation16 + $0x88] sm:$0xff] }
 0x1a1   : > { %3386 = vmatprep.subr.bf16.mxu1 %v6202_v56  ;;  %v6266_v41 = vcombine.high %v2676_v38, %v2680_v39  ;;  %v6265_v44 = vcombine.low %v2676_v38, %v2680_v39  ;;  %v2665_v33 = vld [vmem:[#allocation16 + $0x328] sm:$0xff] }
 0x1a2   : > { %v6251_v38 = vcombine.low %v2661_v32, %v2665_v33 }
 0x1a3   : > { %2406 = vmatpush1.bf16.msra.mxu0 %v7491_v43  ;;  %v2688_v43 = vld [vmem:[#allocation16 + $0x3e0] sm:$0xff] }
 0x1a4   : > { %2407 = vmatprep.subr.bf16.mxu0 %v7496_v45  ;;  %3387 = vmatpush1.bf16.msra.mxu1 %v6201_v60  ;;  %v6274_v45 = vcombine.high %v2684_v42, %v2688_v43  ;;  %v6273_v48 = vcombine.low %v2684_v42, %v2688_v43 }
 0x1a5   : > { %3388 = vmatprep.subr.bf16.mxu1 %v6210_v62  ;;  %v2597_v62 = vld [vmem:[#allocation16 + $0x108] sm:$0xff] }
 0x1a7   : > { %2408 = vmatpush1.bf16.msra.mxu0 %v7494_v49  ;;  %v6156_v49 = vcombine.high %v2565_v46, %v2569_v47 }
 0x1a8   : > { %2409 = vmatprep.subr.bf16.mxu0 %v7499_v51  ;;  %3389 = vmatpush1.bf16.msra.mxu1 %v6209_v2  ;;  %v2577_v51 = vld [vmem:[#allocation16 + $0x68] sm:$0xff] }
 0x1a9   : > { %3390 = vmatprep.subr.bf16.mxu1 %v6218_v5  ;;  %v6164_v53 = vcombine.high %v2573_v50, %v2577_v51  ;;  %v6163_v56 = vcombine.low %v2573_v50, %v2577_v51  ;;  %v2605_v2 = vld [vmem:[#allocation16 + $0x148] sm:$0xff] }
 0x1ab   : > { %2410 = vmatpush1.bf16.msra.mxu0 %v7497_v55  ;;  %v2585_v55 = vld [vmem:[#allocation16 + $0xa8] sm:$0xff] }
 0x1ac   : > { %2411 = vmatprep.subr.bf16.mxu0 %v7502_v57  ;;  %3391 = vmatpush1.bf16.msra.mxu1 %v6217_v9  ;;  %v6172_v57 = vcombine.high %v2581_v54, %v2585_v55  ;;  %v6171_v60 = vcombine.low %v2581_v54, %v2585_v55 }
 0x1ad   : > { %3392 = vmatprep.subr.bf16.mxu1 %v6226_v11  ;;  %v2621_v11 = vld [vmem:[#allocation16 + $0x1c8] sm:$0xff] }
 0x1af   : > { %2412 = vmatpush1.bf16.msra.mxu0 %v7500_v61  ;;  %v6180_v61 = vcombine.high %v2589_v58, %v2593_v59 }
 0x1b0   : > { %2413 = vmatprep.subr.bf16.mxu0 %v7505_v63  ;;  %3393 = vmatpush1.bf16.msra.mxu1 %v6225_v15  ;;  %v2601_v63 = vld [vmem:[#allocation16 + $0x128] sm:$0xff] }
 0x1b1   : > { %3394 = vmatprep.subr.bf16.mxu1 %v6234_v17  ;;  %v6188_v1 = vcombine.high %v2597_v62, %v2601_v63  ;;  %v6187_v5 = vcombine.low %v2597_v62, %v2601_v63  ;;  %v2629_v15 = vld [vmem:[#allocation16 + $0x208] sm:$0xff]  ;;  %v8583_v63 = vstv %s501_s24  ;;  %s8124_s24 = scalar_lea.vmem %s8123_s11, 512 }
 0x1b2   : > { %p8126_p12 = scmp.lt.s32.totalorder %s8124_s24, %s8118_s28 }
 0x1b3   : > { %2414 = vmatpush1.bf16.msra.mxu0 %v7503_v3  ;;  %v2609_v3 = vld [vmem:[#allocation16 + $0x168] sm:$0xff] }
 0x1b4   : > { %2415 = vmatprep.subr.bf16.mxu0 %v7508_v6  ;;  %3395 = vmatpush1.bf16.msra.mxu1 %v6233_v21  ;;  %v6196_v6 = vcombine.high %v2605_v2, %v2609_v3  ;;  %v6195_v9 = vcombine.low %v2605_v2, %v2609_v3  ;;  %v2602_v2 = vld [vmem:[#allocation16 + $0x130] sm:$0xff]  ;;  %p8127_p13 = por %p8126_p12, %p8125_p8 }
 0x1b5   : > { %3396 = vmatprep.subr.bf16.mxu1 %v6242_v23  ;;  %v2645_v23 = vld [vmem:[#allocation16 + $0x288] sm:$0xff] }
 0x1b6   : > { %p8128_p0 = pnand %p8127_p13, %p8121_p7 }
 0x1b7   : > { %2416 = vmatpush1.bf16.msra.mxu0 %v7506_v10  ;;  %v6204_v10 = vcombine.high %v2613_v7, %v2617_v8 }
 0x1b8   : > { %2417 = vmatprep.subr.bf16.mxu0 %v7511_v12  ;;  %3397 = vmatpush1.bf16.msra.mxu1 %v6241_v28  ;;  %v2625_v12 = vld [vmem:[#allocation16 + $0x1e8] sm:$0xff] }
 0x1b9   : > { %3398 = vmatprep.subr.bf16.mxu1 %v6250_v30  ;;  %v6212_v14 = vcombine.high %v2621_v11, %v2625_v12  ;;  %v6211_v17 = vcombine.low %v2621_v11, %v2625_v12  ;;  %v2653_v28 = vld [vmem:[#allocation16 + $0x2c8] sm:$0xff] }
 0x1bb   : > { %2418 = vmatpush1.bf16.msra.mxu0 %v7509_v16  ;;  %v2633_v16 = vld [vmem:[#allocation16 + $0x228] sm:$0xff] }
 0x1bc   : > { %2419 = vmatprep.subr.bf16.mxu0 %v7514_v18  ;;  %3399 = vmatpush1.bf16.msra.mxu1 %v6249_v34  ;;  %v6220_v18 = vcombine.high %v2629_v15, %v2633_v16  ;;  %v6219_v21 = vcombine.low %v2629_v15, %v2633_v16  ;;  %v2606_v15 = vld [vmem:[#allocation16 + $0x150] sm:$0xff] }
 0x1bd   : > { %3400 = vmatprep.subr.bf16.mxu1 %v6258_v36  ;;  %v2669_v36 = vld [vmem:[#allocation16 + $0x348] sm:$0xff]  ;;  %v2610_v16 = vld [vmem:[#allocation16 + $0x170] sm:$0xff] }
 0x1bf   : > { %2420 = vmatpush1.bf16.msra.mxu0 %v7512_v22  ;;  %v6228_v22 = vcombine.high %v2637_v19, %v2641_v20 }
 0x1c0   : > { %2421 = vmatprep.subr.bf16.mxu0 %v7517_v24  ;;  %3401 = vmatpush1.bf16.msra.mxu1 %v6257_v40  ;;  %v2649_v24 = vld [vmem:[#allocation16 + $0x2a8] sm:$0xff] }
 0x1c1   : > { %3402 = vmatprep.subr.bf16.mxu1 %v6266_v41  ;;  %v6236_v27 = vcombine.high %v2645_v23, %v2649_v24  ;;  %v6235_v30 = vcombine.low %v2645_v23, %v2649_v24  ;;  %v2677_v40 = vld [vmem:[#allocation16 + $0x388] sm:$0xff]  ;;  %v6198_v23 = vcombine.high %v2606_v15, %v2610_v16 }
 0x1c2   : > { %v2681_v41 = vld [vmem:[#allocation16 + $0x3a8] sm:$0xff] }
 0x1c3   : > { %2422 = vmatpush1.bf16.msra.mxu0 %v7515_v29  ;;  %v2657_v29 = vld [vmem:[#allocation16 + $0x2e8] sm:$0xff]  ;;  %v6268_v43 = vcombine.high %v2677_v40, %v2681_v41  ;;  %v6267_v46 = vcombine.low %v2677_v40, %v2681_v41 }
 0x1c4   : > { %2423 = vmatprep.subr.bf16.mxu0 %v7520_v31  ;;  %3403 = vmatpush1.bf16.msra.mxu1 %v6265_v44  ;;  %v6244_v31 = vcombine.high %v2653_v28, %v2657_v29  ;;  %v6243_v34 = vcombine.low %v2653_v28, %v2657_v29  ;;  %v2685_v44 = vld [vmem:[#allocation16 + $0x3c8] sm:$0xff]  ;;  %v6197_v29 = vcombine.low %v2606_v15, %v2610_v16  ;;  %v2666_v15 = vld [vmem:[#allocation16 + $0x330] sm:$0xff] }
 0x1c5   : > { %3404 = vmatprep.subr.bf16.mxu1 %v6274_v45  ;;  %v2689_v45 = vld [vmem:[#allocation16 + $0x3e8] sm:$0xff] }
 0x1c6   : > { %v6276_v47 = vcombine.high %v2685_v44, %v2689_v45  ;;  %v6275_v50 = vcombine.low %v2685_v44, %v2689_v45 }
 0x1c7   : > { %2424 = vmatpush1.bf16.msra.mxu0 %v7518_v35  ;;  %v6252_v35 = vcombine.high %v2661_v32, %v2665_v33 }
 0x1c8   : > { %2434 = vmatprep.subr.bf16.mxu0 %v7523_v37  ;;  %3405 = vmatpush1.bf16.msra.mxu1 %v6273_v48  ;;  %v2673_v37 = vld [vmem:[#allocation16 + $0x368] sm:$0xff]  ;;  %v2566_v48 = vld [vmem:[#allocation16 + $0x10] sm:$0xff] }
 0x1c9   : > { %3415 = vmatprep.subr.bf16.mxu1 %v6156_v49  ;;  %v6260_v39 = vcombine.high %v2669_v36, %v2673_v37  ;;  %v6259_v42 = vcombine.low %v2669_v36, %v2673_v37  ;;  %v2570_v49 = vld [vmem:[#allocation16 + $0x30] sm:$0xff] }
 0x1ca   : > { %v6158_v51 = vcombine.high %v2566_v48, %v2570_v49  ;;  %v6157_v54 = vcombine.low %v2566_v48, %v2570_v49  ;;  %v2622_v36 = vld [vmem:[#allocation16 + $0x1d0] sm:$0xff] }
 0x1cb   : > { %3407 = vmatmul.mubr.bf16.vlgmr.msra.gmra.mrb[8].mxu1 %v8567_v4  ;;  %v2626_v37 = vld [vmem:[#allocation16 + $0x1f0] sm:$0xff] }
 0x1cc   : > { %3416 = vmatpush1.bf16.msra.mxu1 %v6155_v52  ;;  %3447 = vmatprep.mubr.bf16.mxu1 %v8563_v25  ;;  %v2574_v52 = vld [vmem:[#allocation16 + $0x50] sm:$0xff]  ;;  %v6214_v45 = vcombine.high %v2622_v36, %v2626_v37 }
 0x1cd   : > { %3417 = vmatprep.subr.bf16.mxu1 %v6164_v53  ;;  %v2578_v53 = vld [vmem:[#allocation16 + $0x70] sm:$0xff] }
 0x1ce   : > { %v6166_v55 = vcombine.high %v2574_v52, %v2578_v53  ;;  %v6165_v58 = vcombine.low %v2574_v52, %v2578_v53  ;;  %v2630_v49 = vld [vmem:[#allocation16 + $0x210] sm:$0xff]  ;;  %v6213_v52 = vcombine.low %v2622_v36, %v2626_v37  ;;  %v7527_v53 = vld [vmem:[#allocation14 + $0x120] ss:$8 sps:$4 sm:$0xff]  }
 0x1cf   : > { %v7548_v37 = vld [vmem:[#allocation14 + $0x190] ss:$8 sps:$4 sm:$0xff]  }
 0x1d0   : > { %3418 = vmatpush1.bf16.msra.mxu1 %v6163_v56  ;;  %v2582_v56 = vld [vmem:[#allocation16 + $0x90] sm:$0xff] }
 0x1d1   : > { %3419 = vmatprep.subr.bf16.mxu1 %v6172_v57  ;;  %v2586_v57 = vld [vmem:[#allocation16 + $0xb0] sm:$0xff] }
 0x1d2   : > { %v6174_v59 = vcombine.high %v2582_v56, %v2586_v57  ;;  %v6173_v62 = vcombine.low %v2582_v56, %v2586_v57  ;;  %v2638_v57 = vld [vmem:[#allocation16 + $0x250] sm:$0xff] }
 0x1d4   : > { %3420 = vmatpush1.bf16.msra.mxu1 %v6171_v60  ;;  %v2590_v60 = vld [vmem:[#allocation16 + $0xd0] sm:$0xff] }
 0x1d5   : > { %3421 = vmatprep.subr.bf16.mxu1 %v6180_v61  ;;  %v2594_v61 = vld [vmem:[#allocation16 + $0xf0] sm:$0xff] }
 0x1d6   : > { %v6181_v8 = vcombine.low %v2590_v60, %v2594_v61 }
 0x1d8   : > { %3422 = vmatpush1.bf16.msra.mxu1 %v6179_v0  ;;  %v6182_v0 = vcombine.high %v2590_v60, %v2594_v61  ;;  %v7530_v61 = vld [vmem:[#allocation14 + $0x130] ss:$8 sps:$4 sm:$0xff]  }
 0x1d9   : > { %3423 = vmatprep.subr.bf16.mxu1 %v6188_v1  ;;  %v2598_v1 = vld [vmem:[#allocation16 + $0x110] sm:$0xff] }
 0x1da   : > { %v6190_v12 = vcombine.high %v2598_v1, %v2602_v2  ;;  %v6189_v20 = vcombine.low %v2598_v1, %v2602_v2  ;;  %v2646_v1 = vld [vmem:[#allocation16 + $0x290] sm:$0xff] }
 0x1db   : > { %v2650_v2 = vld [vmem:[#allocation16 + $0x2b0] sm:$0xff] }
 0x1dc   : > { %3424 = vmatpush1.bf16.msra.mxu1 %v6187_v5 }
 0x1dd   : > { %3425 = vmatprep.subr.bf16.mxu1 %v6196_v6 }
 0x1e0   : > { %3426 = vmatpush1.bf16.msra.mxu1 %v6195_v9 }
 0x1e1   : > { %3427 = vmatprep.subr.bf16.mxu1 %v6204_v10 }
 0x1e4   : > { %3428 = vmatpush1.bf16.msra.mxu1 %v6203_v13 }
 0x1e5   : > { %3429 = vmatprep.subr.bf16.mxu1 %v6212_v14 }
 0x1e8   : > { %3430 = vmatpush1.bf16.msra.mxu1 %v6211_v17 }
 0x1e9   : > { %3431 = vmatprep.subr.bf16.mxu1 %v6220_v18 }
 0x1ec   : > { %3432 = vmatpush1.bf16.msra.mxu1 %v6219_v21 }
 0x1ed   : > { %3433 = vmatprep.subr.bf16.mxu1 %v6228_v22 }
 0x1f0   : > { %3434 = vmatpush1.bf16.msra.mxu1 %v6227_v26  ;;  %v2614_v26 = vld [vmem:[#allocation16 + $0x190] sm:$0xff] }
 0x1f1   : > { %3435 = vmatprep.subr.bf16.mxu1 %v6236_v27  ;;  %v2618_v27 = vld [vmem:[#allocation16 + $0x1b0] sm:$0xff] }
 0x1f2   : > { %v6206_v32 = vcombine.high %v2614_v26, %v2618_v27 }
 0x1f4   : > { %3436 = vmatpush1.bf16.msra.mxu1 %v6235_v30 }
 0x1f5   : > { %3437 = vmatprep.subr.bf16.mxu1 %v6244_v31  ;;  %v7521_v31 = vld [vmem:[#allocation14 + $0x100] ss:$8 sps:$4 sm:$0xff]  }
 0x1f8   : > { %3438 = vmatpush1.bf16.msra.mxu1 %v6243_v34  ;;  %v7526_v34 = vld [vmem:[#allocation14 + $0x114] ss:$8 sps:$4 sm:$0xff]  }
 0x1f9   : > { %3439 = vmatprep.subr.bf16.mxu1 %v6252_v35 }
 0x1fc   : > { %3440 = vmatpush1.bf16.msra.mxu1 %v6251_v38 }
 0x1fd   : > { %3441 = vmatprep.subr.bf16.mxu1 %v6260_v39 }
 0x200   : > { %3442 = vmatpush1.bf16.msra.mxu1 %v6259_v42  ;;  %v6205_v42 = vcombine.low %v2614_v26, %v2618_v27  ;;  %v7547_v26 = vld [vmem:[#allocation14 + $0x184] ss:$8 sps:$4 sm:$0xff]   ;;  %v2678_v27 = vld [vmem:[#allocation16 + $0x390] sm:$0xff] }
 0x201   : > { %3443 = vmatprep.subr.bf16.mxu1 %v6268_v43  ;;  %v7524_v43 = vld [vmem:[#allocation14 + $0x110] ss:$8 sps:$4 sm:$0xff]  }
 0x204   : > { %3444 = vmatpush1.bf16.msra.mxu1 %v6267_v46  ;;  %v7529_v46 = vld [vmem:[#allocation14 + $0x124] ss:$8 sps:$4 sm:$0xff]  }
 0x205   : > { %3445 = vmatprep.subr.bf16.mxu1 %v6276_v47 }
 0x208   : > { %3446 = vmatpush1.bf16.msra.mxu1 %v6275_v50  ;;  %v2634_v50 = vld [vmem:[#allocation16 + $0x230] sm:$0xff] }
 0x209   : > { %3456 = vmatprep.subr.bf16.mxu1 %v6158_v51  ;;  %v6221_v60 = vcombine.low %v2630_v49, %v2634_v50 }
 0x20b   : > { %3448 = vmatmul.mubr.bf16.vlgmr.msra.gmra.mrb[12].mxu1 %v8567_v4 }
 0x20c   : > { %3457 = vmatpush1.bf16.msra.mxu1 %v6157_v54  ;;  %3488 = vmatprep.mubr.bf16.mxu1 %v8563_v25  ;;  %v6222_v54 = vcombine.high %v2630_v49, %v2634_v50  ;;  %v7554_v49 = vld [vmem:[#allocation14 + $0x1b0] ss:$8 sps:$4 sm:$0xff]  }
 0x20d   : > { %3458 = vmatprep.subr.bf16.mxu1 %v6166_v55  ;;  %v7532_v55 = vld [vmem:[#allocation14 + $0x134] ss:$8 sps:$4 sm:$0xff]  }
 0x210   : > { %3459 = vmatpush1.bf16.msra.mxu1 %v6165_v58  ;;  %v2642_v58 = vld [vmem:[#allocation16 + $0x270] sm:$0xff] }
 0x211   : > { %3460 = vmatprep.subr.bf16.mxu1 %v6174_v59 }
 0x214   : > { %3461 = vmatpush1.bf16.msra.mxu1 %v6173_v62  ;;  %v6230_v62 = vcombine.high %v2638_v57, %v2642_v58 }
 0x215   : > { %3462 = vmatprep.subr.bf16.mxu1 %v6182_v0  ;;  %v7535_v0 = vld [vmem:[#allocation14 + $0x144] ss:$8 sps:$4 sm:$0xff]  }
 0x218   : > { %3463 = vmatpush1.bf16.msra.mxu1 %v6181_v8  ;;  %v2654_v8 = vld [vmem:[#allocation16 + $0x2d0] sm:$0xff] }
 0x219   : > { %3464 = vmatprep.subr.bf16.mxu1 %v6190_v12 }
 0x21c   : > { %3465 = vmatpush1.bf16.msra.mxu1 %v6189_v20  ;;  %v2670_v20 = vld [vmem:[#allocation16 + $0x350] sm:$0xff] }
 0x21d   : > { %v1438_v3 = vpop.f32.mrb[0].mxu0  ;;  %3466 = vmatprep.subr.bf16.mxu1 %v6198_v23  ;;  %v8589_v35 = vpop.f32.mrb[0].mxu1  ;;  %v7542_v23 = vld [vmem:[#allocation14 + $0x170] ss:$8 sps:$4 sm:$0xff]  }
 0x21e   : > { %v1569_v5 = vsub.f32 %v1438_v3, %v8583_v63  ;;  %v1585_v6 = vsub.f32 0.0, %v1438_v3  ;;  %v1440_v7 = vpop.f32.mrb[1].mxu0  ;;  %v1481_v38 = vpop.f32.mrb[1].mxu1  ;;  %v6229_v3 = vcombine.low %v2638_v57, %v2642_v58  ;;  %v1587_v57 = vsub.f32 0.0, %v8589_v35  ;;  %v7562_v58 = vld [vmem:[#allocation14 + $0x1d4] ss:$8 sps:$4 sm:$0xff]  }
 0x21f   : > { %v1570_v9 = vsub.f32 %v1440_v7, %v8583_v63  ;;  %v1586_v10 = vsub.f32 0.0, %v1440_v7  ;;  %v1442_v11 = vpop.f32.mrb[2].mxu0  ;;  %v1572_v39 = vsub.f32 %v1481_v38, %v8583_v63  ;;  %v1588_v40 = vsub.f32 0.0, %v1481_v38  ;;  %v1483_v41 = vpop.f32.mrb[2].mxu1  ;;  %v7538_v7 = vld [vmem:[#allocation14 + $0x154] ss:$8 sps:$4 sm:$0xff]  }
 0x220   : > { %v1593_v13 = vsub.f32 %v1585_v6, %v8583_v63  ;;  %v1443_v14 = vpop.f32.mrb[3].mxu0  ;;  %v1577_v18 = vmax.f32 %v1569_v5, 0.0  ;;  %3467 = vmatpush1.bf16.msra.mxu1 %v6197_v29  ;;  %v1484_v44 = vpop.f32.mrb[3].mxu1  ;;  %v7533_v5 = vld [vmem:[#allocation14 + $0x140] ss:$8 sps:$4 sm:$0xff]   ;;  %v6238_v6 = vcombine.high %v2646_v1, %v2650_v2  ;;  %v2571_v41 = vld [vmem:[#allocation16 + $0x38] sm:$0xff] }
 0x221   : > { %v1594_v17 = vsub.f32 %v1586_v10, %v8583_v63  ;;  %v1578_v21 = vmax.f32 %v1570_v9, 0.0  ;;  %3468 = vmatprep.subr.bf16.mxu1 %v6206_v32  ;;  %v1580_v47 = vmax.f32 %v1572_v39, 0.0  ;;  %v1596_v48 = vsub.f32 %v1588_v40, %v8583_v63  ;;  %v2658_v9 = vld [vmem:[#allocation16 + $0x2f0] sm:$0xff]  ;;  %v7553_v39 = vld [vmem:[#allocation14 + $0x1a4] ss:$8 sps:$4 sm:$0xff]   ;;  %v2567_v40 = vld [vmem:[#allocation16 + $0x18] sm:$0xff] }
 0x222   : > { %v1601_v19 = vmax.f32 %v1593_v13, 0.0  ;;  %v6237_v10 = vcombine.low %v2646_v1, %v2650_v2  ;;  %v7536_v11 = vld [vmem:[#allocation14 + $0x150] ss:$8 sps:$4 sm:$0xff]   ;;  %v6246_v12 = vcombine.high %v2654_v8, %v2658_v9  ;;  %v7541_v13 = vld [vmem:[#allocation14 + $0x164] ss:$8 sps:$4 sm:$0xff]   ;;  %v6245_v16 = vcombine.low %v2654_v8, %v2658_v9 }
 0x223   : > { %v1602_v22 = vmax.f32 %v1594_v17, 0.0  ;;  %v1604_v51 = vmax.f32 %v1596_v48, 0.0  ;;  %v2662_v14 = vld [vmem:[#allocation16 + $0x310] sm:$0xff]  ;;  %v7539_v17 = vld [vmem:[#allocation14 + $0x160] ss:$8 sps:$4 sm:$0xff]   ;;  %v6160_v44 = vcombine.high %v2567_v40, %v2571_v41  ;;  %v6159_v48 = vcombine.low %v2567_v40, %v2571_v41  ;;  %v2627_v40 = vld [vmem:[#allocation16 + $0x1f8] sm:$0xff] }
 0x224   : > { %v1609_v24 = vsub.f32 %v1577_v18, %v1601_v19  ;;  %3469 = vmatpush1.bf16.msra.mxu1 %v6205_v42  ;;  %v6254_v18 = vcombine.high %v2662_v14, %v2666_v15  ;;  %v7544_v19 = vld [vmem:[#allocation14 + $0x174] ss:$8 sps:$4 sm:$0xff]   ;;  %v1571_v1 = vsub.f32 %v8589_v35, %v8583_v63  ;;  %v7565_v2 = vld [vmem:[#allocation14 + $0x1e4] ss:$8 sps:$4 sm:$0xff]   ;;  %v7563_v9 = vld [vmem:[#allocation14 + $0x1e0] ss:$8 sps:$4 sm:$0xff]  }
 0x225   : > { %v1610_v28 = vsub.f32 %v1578_v21, %v1602_v22  ;;  %3470 = vmatprep.subr.bf16.mxu1 %v6214_v45  ;;  %v1612_v56 = vsub.f32 %v1580_v47, %v1604_v51  ;;  %v2674_v21 = vld [vmem:[#allocation16 + $0x370] sm:$0xff]  ;;  %v6253_v22 = vcombine.low %v2662_v14, %v2666_v15  ;;  %v2579_v47 = vld [vmem:[#allocation16 + $0x78] sm:$0xff]  ;;  %v7559_v51 = vld [vmem:[#allocation14 + $0x1c4] ss:$8 sps:$4 sm:$0xff]  }
 0x226   : > { %v1617_v33 = vpack.c.bf16 %v1609_v24, %v1609_v24  ;;  %v6262_v24 = vcombine.high %v2670_v20, %v2674_v21  ;;  %v6261_v29 = vcombine.low %v2670_v20, %v2674_v21  ;;  %v7550_v32 = vld [vmem:[#allocation14 + $0x194] ss:$8 sps:$4 sm:$0xff]   ;;  %v1579_v14 = vmax.f32 %v1571_v1, 0.0 }
 0x227   : > { %v1618_v30 = vpack.c.bf16 %v1610_v28, %v1610_v28  ;;  %v1620_v59 = vpack.c.bf16 %v1612_v56, %v1612_v56  ;;  %v2682_v28 = vld [vmem:[#allocation16 + $0x3b0] sm:$0xff] }
 0x228   : > { %3471 = vmatpush1.bf16.msra.mxu1 %v6213_v52  ;;  %v6269_v36 = vcombine.low %v2678_v27, %v2682_v28  ;;  %v7556_v45 = vld [vmem:[#allocation14 + $0x1b4] ss:$8 sps:$4 sm:$0xff]  }
 0x229   : > { %2425 = vmatprep.mubr.bf16.mxu0 %v1618_v30  ;;  %3472 = vmatprep.subr.bf16.mxu1 %v6222_v54  ;;  %v7545_v30 = vld [vmem:[#allocation14 + $0x180] ss:$8 sps:$4 sm:$0xff]   ;;  %v2583_v52 = vld [vmem:[#allocation16 + $0x98] sm:$0xff] }
 0x22a   : > { %2426 = vmatmul.mubr.bf16.vlgmr.msra.gmra.mrb[8].mxu0 %v1617_v33  ;;  %v2686_v33 = vld [vmem:[#allocation16 + $0x3d0] sm:$0xff] }
 0x22b   : > { %2435 = vmatpush1.bf16.msra.mxu0 %v7521_v31  ;;  %2466 = vmatprep.mubr.bf16.mxu0 %v1620_v59  ;;  %v6270_v31 = vcombine.high %v2678_v27, %v2682_v28  ;;  %v2591_v59 = vld [vmem:[#allocation16 + $0xd8] sm:$0xff]  ;;  %v7571_v27 = vld [vmem:[#allocation14 + $0x204] ss:$8 sps:$4 sm:$0xff]  }
 0x22c   : > { %2436 = vmatprep.subr.bf16.mxu0 %v7526_v34  ;;  %3473 = vmatpush1.bf16.msra.mxu1 %v6221_v60  ;;  %v2690_v34 = vld [vmem:[#allocation16 + $0x3f0] sm:$0xff]  ;;  %v2595_v60 = vld [vmem:[#allocation16 + $0xf8] sm:$0xff] }
 0x22d   : > { %3474 = vmatprep.subr.bf16.mxu1 %v6230_v62  ;;  %v6278_v38 = vcombine.high %v2686_v33, %v2690_v34  ;;  %v6277_v42 = vcombine.low %v2686_v33, %v2690_v34  ;;  %v7560_v62 = vld [vmem:[#allocation14 + $0x1d0] ss:$8 sps:$4 sm:$0xff]   ;;  %v6183_v8 = vcombine.low %v2591_v59, %v2595_v60 }
 0x22f   : > { %2437 = vmatpush1.bf16.msra.mxu0 %v7524_v43  ;;  %v7551_v43 = vld [vmem:[#allocation14 + $0x1a0] ss:$8 sps:$4 sm:$0xff]  }
 0x230   : > { %2438 = vmatprep.subr.bf16.mxu0 %v7529_v46  ;;  %3475 = vmatpush1.bf16.msra.mxu1 %v6229_v3  ;;  %v2575_v46 = vld [vmem:[#allocation16 + $0x58] sm:$0xff] }
 0x231   : > { %3476 = vmatprep.subr.bf16.mxu1 %v6238_v6  ;;  %v6168_v50 = vcombine.high %v2575_v46, %v2579_v47  ;;  %v6167_v54 = vcombine.low %v2575_v46, %v2579_v47  ;;  %v2599_v3 = vld [vmem:[#allocation16 + $0x118] sm:$0xff]  ;;  %v7577_v47 = vld [vmem:[#allocation14 + $0x224] ss:$8 sps:$4 sm:$0xff]  }
 0x233   : > { %2439 = vmatpush1.bf16.msra.mxu0 %v7527_v53  ;;  %v2587_v53 = vld [vmem:[#allocation16 + $0xb8] sm:$0xff] }
 0x234   : > { %2440 = vmatprep.subr.bf16.mxu0 %v7532_v55  ;;  %3477 = vmatpush1.bf16.msra.mxu1 %v6237_v10  ;;  %v7557_v55 = vld [vmem:[#allocation14 + $0x1c0] ss:$8 sps:$4 sm:$0xff]   ;;  %v6176_v56 = vcombine.high %v2583_v52, %v2587_v53  ;;  %v7568_v10 = vld [vmem:[#allocation14 + $0x1f4] ss:$8 sps:$4 sm:$0xff]  }
 0x235   : > { %3478 = vmatprep.subr.bf16.mxu1 %v6246_v12 }
 0x237   : > { %2441 = vmatpush1.bf16.msra.mxu0 %v7530_v61  ;;  %v6175_v61 = vcombine.low %v2583_v52, %v2587_v53  ;;  %v7580_v53 = vld [vmem:[#allocation14 + $0x234] ss:$8 sps:$4 sm:$0xff]  }
 0x238   : > { %2442 = vmatprep.subr.bf16.mxu0 %v7535_v0  ;;  %3479 = vmatpush1.bf16.msra.mxu1 %v6245_v16  ;;  %v6184_v0 = vcombine.high %v2591_v59, %v2595_v60  ;;  %v7583_v59 = vld [vmem:[#allocation14 + $0x244] ss:$8 sps:$4 sm:$0xff]   ;;  %v2647_v60 = vld [vmem:[#allocation16 + $0x298] sm:$0xff] }
 0x239   : > { %3480 = vmatprep.subr.bf16.mxu1 %v6254_v18  ;;  %v2611_v18 = vld [vmem:[#allocation16 + $0x178] sm:$0xff] }
 0x23b   : > { %2443 = vmatpush1.bf16.msra.mxu0 %v7533_v5  ;;  %v2603_v5 = vld [vmem:[#allocation16 + $0x138] sm:$0xff] }
 0x23c   : > { %2444 = vmatprep.subr.bf16.mxu0 %v7538_v7  ;;  %3481 = vmatpush1.bf16.msra.mxu1 %v6253_v22  ;;  %v6192_v35 = vcombine.high %v2599_v3, %v2603_v5  ;;  %v6191_v21 = vcombine.low %v2599_v3, %v2603_v5  ;;  %v7566_v22 = vld [vmem:[#allocation14 + $0x1f0] ss:$8 sps:$4 sm:$0xff]  }
 0x23d   : > { %3482 = vmatprep.subr.bf16.mxu1 %v6262_v24  ;;  %v2659_v3 = vld [vmem:[#allocation16 + $0x2f8] sm:$0xff] }
 0x23f   : > { %2445 = vmatpush1.bf16.msra.mxu0 %v7536_v11 }
 0x240   : > { %2446 = vmatprep.subr.bf16.mxu0 %v7541_v13  ;;  %3483 = vmatpush1.bf16.msra.mxu1 %v6261_v29  ;;  %v2615_v29 = vld [vmem:[#allocation16 + $0x198] sm:$0xff] }
 0x241   : > { %3484 = vmatprep.subr.bf16.mxu1 %v6270_v31 }
 0x243   : > { %2447 = vmatpush1.bf16.msra.mxu0 %v7539_v17  ;;  %v2607_v17 = vld [vmem:[#allocation16 + $0x158] sm:$0xff] }
 0x244   : > { %2448 = vmatprep.subr.bf16.mxu0 %v7544_v19  ;;  %3485 = vmatpush1.bf16.msra.mxu1 %v6269_v36  ;;  %v6200_v24 = vcombine.high %v2607_v17, %v2611_v18  ;;  %v6199_v31 = vcombine.low %v2607_v17, %v2611_v18  ;;  %v7574_v36 = vld [vmem:[#allocation14 + $0x214] ss:$8 sps:$4 sm:$0xff]   ;;  %v7590_v18 = vld [vmem:[#allocation14 + $0x270] ss:$8 sps:$4 sm:$0xff]  }
 0x245   : > { %3486 = vmatprep.subr.bf16.mxu1 %v6278_v38 }
 0x247   : > { %2449 = vmatpush1.bf16.msra.mxu0 %v7542_v23 }
 0x248   : > { %2450 = vmatprep.subr.bf16.mxu0 %v7547_v26  ;;  %3487 = vmatpush1.bf16.msra.mxu1 %v6277_v42 }
 0x249   : > { %3497 = vmatprep.subr.bf16.mxu1 %v6160_v44  ;;  %v7572_v44 = vld [vmem:[#allocation14 + $0x210] ss:$8 sps:$4 sm:$0xff]  }
 0x24b   : > { %2451 = vmatpush1.bf16.msra.mxu0 %v7545_v30  ;;  %3489 = vmatmul.mubr.bf16.vlgmr.msra.gmra.mrb[16].mxu1 %v8567_v4  ;;  %v2619_v30 = vld [vmem:[#allocation16 + $0x1b8] sm:$0xff] }
 0x24c   : > { %2452 = vmatprep.subr.bf16.mxu0 %v7550_v32  ;;  %3498 = vmatpush1.bf16.msra.mxu1 %v6159_v48  ;;  %v7569_v32 = vld [vmem:[#allocation14 + $0x200] ss:$8 sps:$4 sm:$0xff]   ;;  %v6208_v38 = vcombine.high %v2615_v29, %v2619_v30  ;;  %v2631_v48 = vld [vmem:[#allocation16 + $0x218] sm:$0xff] }
 0x24d   : > { %3529 = vmatprep.mubr.bf16.mxu1 %v8563_v25  ;;  %3499 = vmatprep.subr.bf16.mxu1 %v6168_v50  ;;  %v1595_v25 = vsub.f32 %v1587_v57, %v8583_v63  ;;  %v7578_v57 = vld [vmem:[#allocation14 + $0x230] ss:$8 sps:$4 sm:$0xff]  }
 0x24f   : > { %2453 = vmatpush1.bf16.msra.mxu0 %v7548_v37  ;;  %v1603_v15 = vmax.f32 %v1595_v25, 0.0  ;;  %v7586_v25 = vld [vmem:[#allocation14 + $0x254] ss:$8 sps:$4 sm:$0xff]  }
 0x250   : > { %2454 = vmatprep.subr.bf16.mxu0 %v7553_v39  ;;  %3500 = vmatpush1.bf16.msra.mxu1 %v6167_v54  ;;  %v2623_v39 = vld [vmem:[#allocation16 + $0x1d8] sm:$0xff] }
 0x251   : > { %3501 = vmatprep.subr.bf16.mxu1 %v6176_v56  ;;  %v1611_v26 = vsub.f32 %v1579_v14, %v1603_v15  ;;  %v6216_v46 = vcombine.high %v2623_v39, %v2627_v40  ;;  %v6215_v50 = vcombine.low %v2623_v39, %v2627_v40  ;;  %v2639_v54 = vld [vmem:[#allocation16 + $0x258] sm:$0xff]  ;;  %v7607_v40 = vld [vmem:[#allocation14 + $0x2c4] ss:$8 sps:$4 sm:$0xff]  }
 0x252   : > { %v7592_v14 = vld [vmem:[#allocation14 + $0x274] ss:$8 sps:$4 sm:$0xff]   ;;  %v7602_v39 = vld [vmem:[#allocation14 + $0x2b0] ss:$8 sps:$4 sm:$0xff]  }
 0x253   : > { %2455 = vmatpush1.bf16.msra.mxu0 %v7551_v43  ;;  %v1619_v34 = vpack.c.bf16 %v1611_v26, %v1611_v26  ;;  %v6207_v43 = vcombine.low %v2615_v29, %v2619_v30  ;;  %v2671_v15 = vld [vmem:[#allocation16 + $0x358] sm:$0xff] }
 0x254   : > { %2456 = vmatprep.subr.bf16.mxu0 %v7556_v45  ;;  %3502 = vmatpush1.bf16.msra.mxu1 %v6175_v61  ;;  %v2651_v61 = vld [vmem:[#allocation16 + $0x2b8] sm:$0xff] }
 0x255   : > { %3503 = vmatprep.subr.bf16.mxu1 %v6184_v0  ;;  %v7581_v0 = vld [vmem:[#allocation14 + $0x240] ss:$8 sps:$4 sm:$0xff]   ;;  %v6240_v1 = vcombine.high %v2647_v60, %v2651_v61  ;;  %v6239_v5 = vcombine.low %v2647_v60, %v2651_v61  ;;  %v2691_v29 = vld [vmem:[#allocation16 + $0x3f8] sm:$0xff] }
 0x257   : > { %2457 = vmatpush1.bf16.msra.mxu0 %v7554_v49  ;;  %v2635_v49 = vld [vmem:[#allocation16 + $0x238] sm:$0xff] }
 0x258   : > { %2458 = vmatprep.subr.bf16.mxu0 %v7559_v51  ;;  %3504 = vmatpush1.bf16.msra.mxu1 %v6183_v8  ;;  %v7575_v51 = vld [vmem:[#allocation14 + $0x220] ss:$8 sps:$4 sm:$0xff]   ;;  %v6224_v52 = vcombine.high %v2631_v48, %v2635_v49  ;;  %v6223_v56 = vcombine.low %v2631_v48, %v2635_v49 }
 0x259   : > { %3505 = vmatprep.subr.bf16.mxu1 %v6192_v35 }
 0x25b   : > { %2459 = vmatpush1.bf16.msra.mxu0 %v7557_v55  ;;  %v2643_v55 = vld [vmem:[#allocation16 + $0x278] sm:$0xff] }
 0x25c   : > { %2460 = vmatprep.subr.bf16.mxu0 %v7562_v58  ;;  %3506 = vmatpush1.bf16.msra.mxu1 %v6191_v21  ;;  %v6232_v58 = vcombine.high %v2639_v54, %v2643_v55  ;;  %v2679_v21 = vld [vmem:[#allocation16 + $0x398] sm:$0xff] }
 0x25d   : > { %v8599_v6 = vpop.f32.mrb[4].mxu0  ;;  %3507 = vmatprep.subr.bf16.mxu1 %v6200_v24  ;;  %v7593_v24 = vld [vmem:[#allocation14 + $0x280] ss:$8 sps:$4 sm:$0xff]  }
 0x25e   : > { %v1522_v7 = vpop.f32.mrb[5].mxu0  ;;  %v8603_v37 = vpop.f32.mrb[4].mxu1  ;;  %v1573_v49 = vsub.f32 %v8599_v6, %v8583_v63 }
 0x25f   : > { %2461 = vmatpush1.bf16.msra.mxu0 %v7560_v62  ;;  %v1574_v11 = vsub.f32 %v1522_v7, %v8583_v63  ;;  %v1590_v12 = vsub.f32 0.0, %v1522_v7  ;;  %v1524_v13 = vpop.f32.mrb[6].mxu0  ;;  %v8605_v41 = vpop.f32.mrb[5].mxu1  ;;  %v6231_v62 = vcombine.low %v2639_v54, %v2643_v55  ;;  %v7584_v7 = vld [vmem:[#allocation14 + $0x250] ss:$8 sps:$4 sm:$0xff]  }
 0x260   : > { %2462 = vmatprep.subr.bf16.mxu0 %v7565_v2  ;;  %v1525_v16 = vpop.f32.mrb[7].mxu0  ;;  %v1565_v42 = vpop.f32.mrb[6].mxu1  ;;  %3508 = vmatpush1.bf16.msra.mxu1 %v6199_v31  ;;  %v2655_v2 = vld [vmem:[#allocation16 + $0x2d8] sm:$0xff]  ;;  %v7587_v13 = vld [vmem:[#allocation14 + $0x260] ss:$8 sps:$4 sm:$0xff]   ;;  %v1581_v54 = vmax.f32 %v1573_v49, 0.0 }
 0x261   : > { %v1582_v19 = vmax.f32 %v1574_v11, 0.0  ;;  %v1598_v20 = vsub.f32 %v1590_v12, %v8583_v63  ;;  %v1566_v45 = vpop.f32.mrb[7].mxu1  ;;  %3509 = vmatprep.subr.bf16.mxu1 %v6208_v38  ;;  %v6248_v8 = vcombine.high %v2655_v2, %v2659_v3  ;;  %v2667_v11 = vld [vmem:[#allocation16 + $0x338] sm:$0xff]  ;;  %v6247_v12 = vcombine.low %v2655_v2, %v2659_v3  ;;  %v7605_v42 = vld [vmem:[#allocation14 + $0x2c0] ss:$8 sps:$4 sm:$0xff]  }
 0x262   : > { %v2675_v16 = vld [vmem:[#allocation16 + $0x378] sm:$0xff] }
 0x263   : > { %2463 = vmatpush1.bf16.msra.mxu0 %v7563_v9  ;;  %v1606_v23 = vmax.f32 %v1598_v20, 0.0  ;;  %v7589_v9 = vld [vmem:[#allocation14 + $0x264] ss:$8 sps:$4 sm:$0xff]   ;;  %v7596_v31 = vld [vmem:[#allocation14 + $0x290] ss:$8 sps:$4 sm:$0xff]  }
 0x264   : > { %2464 = vmatprep.subr.bf16.mxu0 %v7568_v10  ;;  %3510 = vmatpush1.bf16.msra.mxu1 %v6207_v43  ;;  %v2663_v10 = vld [vmem:[#allocation16 + $0x318] sm:$0xff]  ;;  %v7595_v20 = vld [vmem:[#allocation14 + $0x284] ss:$8 sps:$4 sm:$0xff]   ;;  %v1592_v43 = vsub.f32 0.0, %v8605_v41 }
 0x265   : > { %v1614_v28 = vsub.f32 %v1582_v19, %v1606_v23  ;;  %3511 = vmatprep.subr.bf16.mxu1 %v6216_v46  ;;  %v6256_v35 = vcombine.high %v2663_v10, %v2667_v11  ;;  %v6255_v17 = vcombine.low %v2663_v10, %v2667_v11  ;;  %v6264_v19 = vcombine.high %v2671_v15, %v2675_v16  ;;  %v7604_v38 = vld [vmem:[#allocation14 + $0x2b4] ss:$8 sps:$4 sm:$0xff]   ;;  %v7608_v46 = vld [vmem:[#allocation14 + $0x2d0] ss:$8 sps:$4 sm:$0xff]   ;;  %v7631_v10 = vld [vmem:[#allocation14 + $0x344] ss:$8 sps:$4 sm:$0xff]  }
 0x266   : > { %v6263_v23 = vcombine.low %v2671_v15, %v2675_v16  ;;  %v7610_v45 = vld [vmem:[#allocation14 + $0x2d4] ss:$8 sps:$4 sm:$0xff]   ;;  %v1600_v48 = vsub.f32 %v1592_v43, %v8583_v63  ;;  %v7620_v2 = vld [vmem:[#allocation14 + $0x310] ss:$8 sps:$4 sm:$0xff]   ;;  %v7629_v11 = vld [vmem:[#allocation14 + $0x340] ss:$8 sps:$4 sm:$0xff]  }
 0x267   : > { %2465 = vmatpush1.bf16.msra.mxu0 %v7566_v22  ;;  %v1622_v33 = vpack.c.bf16 %v1614_v28, %v1614_v28  ;;  %v2683_v22 = vld [vmem:[#allocation16 + $0x3b8] sm:$0xff] }
 0x268   : > { %2475 = vmatprep.subr.bf16.mxu0 %v7571_v27  ;;  %3512 = vmatpush1.bf16.msra.mxu1 %v6215_v50  ;;  %v6272_v26 = vcombine.high %v2679_v21, %v2683_v22  ;;  %v7598_v27 = vld [vmem:[#allocation14 + $0x294] ss:$8 sps:$4 sm:$0xff]   ;;  %v6271_v30 = vcombine.low %v2679_v21, %v2683_v22  ;;  %v7613_v50 = vld [vmem:[#allocation14 + $0x2e4] ss:$8 sps:$4 sm:$0xff]   ;;  %v7638_v16 = vld [vmem:[#allocation14 + $0x370] ss:$8 sps:$4 sm:$0xff]  }
 0x269   : > { %3513 = vmatprep.subr.bf16.mxu1 %v6224_v52  ;;  %v2687_v28 = vld [vmem:[#allocation16 + $0x3d8] sm:$0xff]  ;;  %v7649_v21 = vld [vmem:[#allocation14 + $0x3a4] ss:$8 sps:$4 sm:$0xff]   ;;  %v7647_v22 = vld [vmem:[#allocation14 + $0x3a0] ss:$8 sps:$4 sm:$0xff]  }
 0x26a   : > { %2467 = vmatmul.mubr.bf16.vlgmr.msra.gmra.mrb[8].mxu0 %v1619_v34  ;;  %v6279_v34 = vcombine.low %v2687_v28, %v2691_v29  ;;  %v7640_v15 = vld [vmem:[#allocation14 + $0x374] ss:$8 sps:$4 sm:$0xff]  }
 0x26b   : > { %2476 = vmatpush1.bf16.msra.mxu0 %v7569_v32  ;;  %2507 = vmatprep.mubr.bf16.mxu0 %v1622_v33  ;;  %v6280_v32 = vcombine.high %v2687_v28, %v2691_v29  ;;  %v7601_v33 = vld [vmem:[#allocation14 + $0x2a4] ss:$8 sps:$4 sm:$0xff]   ;;  %v7653_v29 = vld [vmem:[#allocation14 + $0x3c0] ss:$8 sps:$4 sm:$0xff]  }
 0x26c   : > { %2477 = vmatprep.subr.bf16.mxu0 %v7574_v36  ;;  %3514 = vmatpush1.bf16.msra.mxu1 %v6223_v56  ;;  %v7599_v36 = vld [vmem:[#allocation14 + $0x2a0] ss:$8 sps:$4 sm:$0xff]   ;;  %v7616_v56 = vld [vmem:[#allocation14 + $0x2f4] ss:$8 sps:$4 sm:$0xff]   ;;  %v7655_v28 = vld [vmem:[#allocation14 + $0x3c4] ss:$8 sps:$4 sm:$0xff]  }
 0x26d   : > { %3515 = vmatprep.subr.bf16.mxu1 %v6232_v58 }
 0x26f   : > { %2478 = vmatpush1.bf16.msra.mxu0 %v7572_v44  ;;  %v1589_v44 = vsub.f32 0.0, %v8599_v6  ;;  %v7617_v6 = vld [vmem:[#allocation14 + $0x300] ss:$8 sps:$4 sm:$0xff]  }
 0x270   : > { %2479 = vmatprep.subr.bf16.mxu0 %v7577_v47  ;;  %3516 = vmatpush1.bf16.msra.mxu1 %v6231_v62  ;;  %v1576_v47 = vsub.f32 %v8605_v41, %v8583_v63  ;;  %v7622_v62 = vld [vmem:[#allocation14 + $0x314] ss:$8 sps:$4 sm:$0xff]  }
 0x271   : > { %3517 = vmatprep.subr.bf16.mxu1 %v6240_v1 }
 0x272   : > { %v1584_v52 = vmax.f32 %v1576_v47, 0.0  ;;  %v7662_v47 = vld [vmem:[#allocation14 + $0x3f0] ss:$8 sps:$4 sm:$0xff]  }
 0x273   : > { %2480 = vmatpush1.bf16.msra.mxu0 %v7575_v51  ;;  %v7611_v51 = vld [vmem:[#allocation14 + $0x2e0] ss:$8 sps:$4 sm:$0xff]  }
 0x274   : > { %2481 = vmatprep.subr.bf16.mxu0 %v7580_v53  ;;  %3518 = vmatpush1.bf16.msra.mxu1 %v6239_v5  ;;  %v1608_v53 = vmax.f32 %v1600_v48, 0.0  ;;  %v7625_v5 = vld [vmem:[#allocation14 + $0x324] ss:$8 sps:$4 sm:$0xff]  }
 0x275   : > { %3519 = vmatprep.subr.bf16.mxu1 %v6248_v8  ;;  %v7628_v8 = vld [vmem:[#allocation14 + $0x334] ss:$8 sps:$4 sm:$0xff]  }
 0x276   : > { %v1616_v41 = vsub.f32 %v1584_v52, %v1608_v53 }
 0x277   : > { %2482 = vmatpush1.bf16.msra.mxu0 %v7578_v57  ;;  %v7614_v57 = vld [vmem:[#allocation14 + $0x2f0] ss:$8 sps:$4 sm:$0xff]  }
 0x278   : > { %2483 = vmatprep.subr.bf16.mxu0 %v7583_v59  ;;  %3520 = vmatpush1.bf16.msra.mxu1 %v6247_v12  ;;  %v7619_v59 = vld [vmem:[#allocation14 + $0x304] ss:$8 sps:$4 sm:$0xff]   ;;  %v1624_v60 = vpack.c.bf16 %v1616_v41, %v1616_v41  ;;  %v7634_v12 = vld [vmem:[#allocation14 + $0x354] ss:$8 sps:$4 sm:$0xff]   ;;  %v7671_v41 = vld [vmem:[#allocation17 + $0x20] ss:$8 sps:$4 sm:$0xff]  }
 0x279   : > { %3521 = vmatprep.subr.bf16.mxu1 %v6256_v35  ;;  %v7637_v35 = vld [vmem:[#allocation14 + $0x364] ss:$8 sps:$4 sm:$0xff]  }
 0x27b   : > { %2484 = vmatpush1.bf16.msra.mxu0 %v7581_v0 }
 0x27c   : > { %2485 = vmatprep.subr.bf16.mxu0 %v7586_v25  ;;  %3522 = vmatpush1.bf16.msra.mxu1 %v6255_v17  ;;  %v7643_v17 = vld [vmem:[#allocation14 + $0x384] ss:$8 sps:$4 sm:$0xff]  }
 0x27d   : > { %3523 = vmatprep.subr.bf16.mxu1 %v6264_v19  ;;  %v7646_v19 = vld [vmem:[#allocation14 + $0x394] ss:$8 sps:$4 sm:$0xff]  }
 0x27f   : > { %2486 = vmatpush1.bf16.msra.mxu0 %v7584_v7  ;;  %v7623_v7 = vld [vmem:[#allocation14 + $0x320] ss:$8 sps:$4 sm:$0xff]  }
 0x280   : > { %2487 = vmatprep.subr.bf16.mxu0 %v7589_v9  ;;  %3524 = vmatpush1.bf16.msra.mxu1 %v6263_v23  ;;  %v7626_v9 = vld [vmem:[#allocation14 + $0x330] ss:$8 sps:$4 sm:$0xff]   ;;  %v2694_v23 = vlaneseq }
 0x281   : > { %3525 = vmatprep.subr.bf16.mxu1 %v6272_v26  ;;  %v7650_v26 = vld [vmem:[#allocation14 + $0x3b0] ss:$8 sps:$4 sm:$0xff]  }
 0x283   : > { %2488 = vmatpush1.bf16.msra.mxu0 %v7587_v13  ;;  %v7632_v13 = vld [vmem:[#allocation14 + $0x350] ss:$8 sps:$4 sm:$0xff]  }
 0x284   : > { %2489 = vmatprep.subr.bf16.mxu0 %v7592_v14  ;;  %3526 = vmatpush1.bf16.msra.mxu1 %v6271_v30  ;;  %v7635_v14 = vld [vmem:[#allocation14 + $0x360] ss:$8 sps:$4 sm:$0xff]  }
 0x285   : > { %3527 = vmatprep.subr.bf16.mxu1 %v6280_v32  ;;  %v7658_v32 = vld [vmem:[#allocation14 + $0x3d4] ss:$8 sps:$4 sm:$0xff]  }
 0x287   : > { %2490 = vmatpush1.bf16.msra.mxu0 %v7590_v18  ;;  %v7641_v18 = vld [vmem:[#allocation14 + $0x380] ss:$8 sps:$4 sm:$0xff]  }
 0x288   : > { %2491 = vmatprep.subr.bf16.mxu0 %v7595_v20  ;;  %3528 = vmatpush1.bf16.msra.mxu1 %v6279_v34  ;;  %v7644_v20 = vld [vmem:[#allocation14 + $0x390] ss:$8 sps:$4 sm:$0xff]  }
 0x289   : > { %v7656_v34 = vld [vmem:[#allocation14 + $0x3d0] ss:$8 sps:$4 sm:$0xff]  }
 0x28b   : > { %2492 = vmatpush1.bf16.msra.mxu0 %v7593_v24  ;;  %3530 = vmatmul.mubr.bf16.vlgmr.msra.gmra.mrb[20].mxu1 %v8567_v4  ;;  %v1597_v4 = vsub.f32 %v1589_v44, %v8583_v63  ;;  %v7652_v24 = vld [vmem:[#allocation14 + $0x3b4] ss:$8 sps:$4 sm:$0xff]  }
 0x28c   : > { %2493 = vmatprep.subr.bf16.mxu0 %v7598_v27  ;;  %v8620_v27 = vshrl.u32 %v2694_v23, 7  ;;  %v7707_v23 = vld [vmem:[#allocation17 + $0xe0] ss:$8 sps:$4 sm:$0xff]  }
 0x28d   : > { %v1605_v55 = vmax.f32 %v1597_v4, 0.0  ;;  %v7667_v4 = vld [vmem:[#allocation17 + $0x4] ss:$8 sps:$4 sm:$0xff]  }
 0x28e   : > { %v9556_v30 = vsub.s32 1, %v8620_v27 }
 0x28f   : > { %2494 = vmatpush1.bf16.msra.mxu0 %v7596_v31  ;;  %v1613_v58 = vsub.f32 %v1581_v54, %v1605_v55  ;;  %v1591_v31 = vsub.f32 0.0, %v8603_v37  ;;  %v7668_v55 = vld [vmem:[#allocation17 + $0x10] ss:$8 sps:$4 sm:$0xff]  }
 0x290   : > { %2495 = vmatprep.subr.bf16.mxu0 %v7601_v33  ;;  %v8627_v33 = vld [vmem:[%s9537_s8] sm:$0xff] }
 0x291   : > { %v1621_v61 = vpack.c.bf16 %v1613_v58, %v1613_v58  ;;  %v7676_v58 = vld [vmem:[#allocation17 + $0x34] ss:$8 sps:$4 sm:$0xff]  }
 0x293   : > { %2496 = vmatpush1.bf16.msra.mxu0 %v7599_v36  ;;  %v2701_v36 = vrot.slane %v8627_v33, %v9556_v30  ;;  %v548_v30 = vld [vmem:[#allocation10 + $0x150] sm:$0xff] }
 0x294   : > { %2497 = vmatprep.subr.bf16.mxu0 %v7604_v38  ;;  %v1575_v38 = vsub.f32 %v8603_v37, %v8583_v63  ;;  %v7665_v37 = vld [vmem:[#allocation17] ss:$8 sps:$4 sm:$0xff]  }
 0x296   : > { %v1583_v44 = vmax.f32 %v1575_v38, 0.0 }
 0x297   : > { %2498 = vmatpush1.bf16.msra.mxu0 %v7602_v39  ;;  %v1599_v39 = vsub.f32 %v1591_v31, %v8583_v63 }
 0x298   : > { %2499 = vmatprep.subr.bf16.mxu0 %v7607_v40  ;;  %v7661_v40 = vld [vmem:[#allocation14 + $0x3e4] ss:$8 sps:$4 sm:$0xff]  }
 0x29b   : > { %2500 = vmatpush1.bf16.msra.mxu0 %v7605_v42  ;;  %v7659_v42 = vld [vmem:[#allocation14 + $0x3e0] ss:$8 sps:$4 sm:$0xff]  }
 0x29c   : > { %2501 = vmatprep.subr.bf16.mxu0 %v7610_v45  ;;  %v1607_v45 = vmax.f32 %v1599_v39, 0.0  ;;  %v7718_v39 = vld [vmem:[#allocation17 + $0x114] ss:$8 sps:$4 sm:$0xff]  }
 0x29e   : > { %v8616_v0 = vpop.f32.mrb[8].mxu1  ;;  %v1615_v49 = vsub.f32 %v1583_v44, %v1607_v45  ;;  %v7721_v45 = vld [vmem:[#allocation17 + $0x124] ss:$8 sps:$4 sm:$0xff]  }
 0x29f   : > { %2502 = vmatpush1.bf16.msra.mxu0 %v7608_v46  ;;  %v8618_v1 = vpop.f32.mrb[9].mxu1  ;;  %v7664_v46 = vld [vmem:[#allocation14 + $0x3f4] ss:$8 sps:$4 sm:$0xff]  }
 0x2a0   : > { %2503 = vmatprep.subr.bf16.mxu0 %v7613_v50  ;;  %v3412_v25 = vpop.f32.mrb[10].mxu1  ;;  %v3411_v43 = vadd.f32 %v8618_v1, %v2701_v36  ;;  %v1623_v63 = vpack.c.bf16 %v1615_v49, %v1615_v49  ;;  %v7685_v1 = vld [vmem:[#allocation17 + $0x64] ss:$8 sps:$4 sm:$0xff]   ;;  %v7713_v36 = vld [vmem:[#allocation17 + $0x100] ss:$8 sps:$4 sm:$0xff]  }
 0x2a1   : > { %v3413_v3 = vpop.f32.mrb[11].mxu1  ;;  %v7683_v25 = vld [vmem:[#allocation17 + $0x60] ss:$8 sps:$4 sm:$0xff]   ;;  %v7727_v49 = vld [vmem:[#allocation17 + $0x144] ss:$8 sps:$4 sm:$0xff]  }
 0x2a2   : > { %v3539_v48 = vmax.f32 %v3411_v43, 0.0  ;;  %v7686_v3 = vld [vmem:[#allocation17 + $0x70] ss:$8 sps:$4 sm:$0xff]  }
 0x2a3   : > { %2504 = vmatpush1.bf16.msra.mxu0 %v7611_v51  ;;  %v7670_v51 = vld [vmem:[#allocation17 + $0x14] ss:$8 sps:$4 sm:$0xff]   ;;  %v7716_v43 = vld [vmem:[#allocation17 + $0x110] ss:$8 sps:$4 sm:$0xff]  }
 0x2a4   : > { %2505 = vmatprep.subr.bf16.mxu0 %v7616_v56  ;;  %v3547_v50 = vpack.c.bf16 %v3539_v48, %v3539_v48  ;;  %v7722_v48 = vld [vmem:[#allocation17 + $0x130] ss:$8 sps:$4 sm:$0xff]  }
 0x2a7   : > { %2506 = vmatpush1.bf16.msra.mxu0 %v7614_v57  ;;  %v7673_v57 = vld [vmem:[#allocation17 + $0x24] ss:$8 sps:$4 sm:$0xff]  }
 0x2a8   : > { %2516 = vmatprep.subr.bf16.mxu0 %v7619_v59  ;;  %v7674_v59 = vld [vmem:[#allocation17 + $0x30] ss:$8 sps:$4 sm:$0xff]  }
 0x2aa   : > { %2508 = vmatmul.mubr.bf16.vlgmr.msra.gmra.mrb[8].mxu0 %v1621_v61  ;;  %v7682_v61 = vld [vmem:[#allocation17 + $0x54] ss:$8 sps:$4 sm:$0xff]  }
 0x2ab   : > { %2517 = vmatpush1.bf16.msra.mxu0 %v7617_v6  ;;  %2548 = vmatprep.mubr.bf16.mxu0 %v1624_v60  ;;  %v7679_v6 = vld [vmem:[#allocation17 + $0x44] ss:$8 sps:$4 sm:$0xff]   ;;  %v7677_v60 = vld [vmem:[#allocation17 + $0x40] ss:$8 sps:$4 sm:$0xff]  }
 0x2ac   : > { %2518 = vmatprep.subr.bf16.mxu0 %v7622_v62  ;;  %v7680_v62 = vld [vmem:[#allocation17 + $0x50] ss:$8 sps:$4 sm:$0xff]  }
 0x2af   : > { %2519 = vmatpush1.bf16.msra.mxu0 %v7620_v2  ;;  %v7688_v2 = vld [vmem:[#allocation17 + $0x74] ss:$8 sps:$4 sm:$0xff]  }
 0x2b0   : > { %2520 = vmatprep.subr.bf16.mxu0 %v7625_v5  ;;  %v7691_v5 = vld [vmem:[#allocation17 + $0x84] ss:$8 sps:$4 sm:$0xff]  }
 0x2b3   : > { %2521 = vmatpush1.bf16.msra.mxu0 %v7623_v7  ;;  %v7689_v7 = vld [vmem:[#allocation17 + $0x80] ss:$8 sps:$4 sm:$0xff]  }
 0x2b4   : > { %2522 = vmatprep.subr.bf16.mxu0 %v7628_v8  ;;  %v7694_v8 = vld [vmem:[#allocation17 + $0x94] ss:$8 sps:$4 sm:$0xff]  }
 0x2b7   : > { %2523 = vmatpush1.bf16.msra.mxu0 %v7626_v9  ;;  %v7692_v9 = vld [vmem:[#allocation17 + $0x90] ss:$8 sps:$4 sm:$0xff]  }
 0x2b8   : > { %2524 = vmatprep.subr.bf16.mxu0 %v7631_v10  ;;  %v7697_v10 = vld [vmem:[#allocation17 + $0xa4] ss:$8 sps:$4 sm:$0xff]  }
 0x2bb   : > { %2525 = vmatpush1.bf16.msra.mxu0 %v7629_v11  ;;  %v7695_v11 = vld [vmem:[#allocation17 + $0xa0] ss:$8 sps:$4 sm:$0xff]  }
 0x2bc   : > { %2526 = vmatprep.subr.bf16.mxu0 %v7634_v12  ;;  %v7700_v12 = vld [vmem:[#allocation17 + $0xb4] ss:$8 sps:$4 sm:$0xff]  }
 0x2bf   : > { %2527 = vmatpush1.bf16.msra.mxu0 %v7632_v13  ;;  %v7698_v13 = vld [vmem:[#allocation17 + $0xb0] ss:$8 sps:$4 sm:$0xff]  }
 0x2c0   : > { %2528 = vmatprep.subr.bf16.mxu0 %v7637_v35  ;;  %v7703_v35 = vld [vmem:[#allocation17 + $0xc4] ss:$8 sps:$4 sm:$0xff]  }
 0x2c3   : > { %2529 = vmatpush1.bf16.msra.mxu0 %v7635_v14  ;;  %v9555_v14 = vsub.s32 0, %v8620_v27 }
 0x2c4   : > { %2530 = vmatprep.subr.bf16.mxu0 %v7640_v15  ;;  %v7701_v15 = vld [vmem:[#allocation17 + $0xc0] ss:$8 sps:$4 sm:$0xff]  }
 0x2c7   : > { %2531 = vmatpush1.bf16.msra.mxu0 %v7638_v16  ;;  %v2708_v16 = vsub.s32 3, %v8620_v27 }
 0x2c8   : > { %2532 = vmatprep.subr.bf16.mxu0 %v7643_v17  ;;  %v7706_v17 = vld [vmem:[#allocation17 + $0xd4] ss:$8 sps:$4 sm:$0xff]  }
 0x2cb   : > { %2533 = vmatpush1.bf16.msra.mxu0 %v7641_v18  ;;  %v2697_v18 = vrot.slane %v8627_v33, %v9555_v14 }
 0x2cc   : > { %2534 = vmatprep.subr.bf16.mxu0 %v7646_v19  ;;  %v7704_v19 = vld [vmem:[#allocation17 + $0xd0] ss:$8 sps:$4 sm:$0xff]  }
 0x2cf   : > { %2535 = vmatpush1.bf16.msra.mxu0 %v7644_v20  ;;  %v2709_v20 = vrot.slane %v8627_v33, %v2708_v16  ;;  %v7763_v16 = vld [vmem:[#allocation17 + $0x204] ss:$8 sps:$4 sm:$0xff]  }
 0x2d0   : > { %2536 = vmatprep.subr.bf16.mxu0 %v7649_v21  ;;  %v7709_v21 = vld [vmem:[#allocation17 + $0xe4] ss:$8 sps:$4 sm:$0xff]  }
 0x2d3   : > { %2537 = vmatpush1.bf16.msra.mxu0 %v7647_v22  ;;  %v3409_v22 = vadd.f32 %v8616_v0, %v2697_v18  ;;  %v7761_v18 = vld [vmem:[#allocation17 + $0x200] ss:$8 sps:$4 sm:$0xff]  }
 0x2d4   : > { %2538 = vmatprep.subr.bf16.mxu0 %v7652_v24 }
 0x2d7   : > { %2539 = vmatpush1.bf16.msra.mxu0 %v7650_v26  ;;  %v7712_v26 = vld [vmem:[#allocation17 + $0xf4] ss:$8 sps:$4 sm:$0xff]  }
 0x2d8   : > { %2540 = vmatprep.subr.bf16.mxu0 %v7655_v28  ;;  %v3538_v28 = vmax.f32 %v3409_v22, 0.0 }
 0x2db   : > { %2541 = vmatpush1.bf16.msra.mxu0 %v7653_v29  ;;  %v7710_v29 = vld [vmem:[#allocation17 + $0xf0] ss:$8 sps:$4 sm:$0xff]  }
 0x2dc   : > { %2542 = vmatprep.subr.bf16.mxu0 %v7658_v32  ;;  %v7715_v32 = vld [vmem:[#allocation17 + $0x104] ss:$8 sps:$4 sm:$0xff]  }
 0x2de   : > { %v8636_v52 = vpop.f32.mrb[12].mxu1 }
 0x2df   : > { %2543 = vmatpush1.bf16.msra.mxu0 %v7656_v34  ;;  %v8638_v53 = vpop.f32.mrb[13].mxu1  ;;  %v3546_v34 = vpack.c.bf16 %v3538_v28, %v3538_v28  ;;  %v573_v28 = vld [vmem:[#allocation11 + $0x18] sm:$0xff] }
 0x2e0   : > { %2544 = vmatprep.subr.bf16.mxu0 %v7661_v40  ;;  %v3453_v54 = vpop.f32.mrb[14].mxu1  ;;  %v3452_v24 = vadd.f32 %v8638_v53, %v2709_v20  ;;  %v7736_v53 = vld [vmem:[#allocation17 + $0x174] ss:$8 sps:$4 sm:$0xff]  }
 0x2e1   : > { %v3454_v56 = vpop.f32.mrb[15].mxu1  ;;  %v7734_v54 = vld [vmem:[#allocation17 + $0x170] ss:$8 sps:$4 sm:$0xff]   ;;  %v7766_v20 = vld [vmem:[#allocation17 + $0x214] ss:$8 sps:$4 sm:$0xff]  }
 0x2e2   : > { %v3541_v31 = vmax.f32 %v3452_v24, 0.0  ;;  %v7737_v56 = vld [vmem:[#allocation17 + $0x180] ss:$8 sps:$4 sm:$0xff]  }
 0x2e3   : > { %2545 = vmatpush1.bf16.msra.mxu0 %v7659_v42 }
 0x2e4   : > { %2546 = vmatprep.subr.bf16.mxu0 %v7664_v46  ;;  %v3549_v38 = vpack.c.bf16 %v3541_v31, %v3541_v31  ;;  %v7719_v46 = vld [vmem:[#allocation17 + $0x120] ss:$8 sps:$4 sm:$0xff]  }
 0x2e7   : > { %2547 = vmatpush1.bf16.msra.mxu0 %v7662_v47  ;;  %v7724_v47 = vld [vmem:[#allocation17 + $0x134] ss:$8 sps:$4 sm:$0xff]  }
 0x2e8   : > { %4334 = vmatprep.subr.bf16.mxu0 %v7667_v4  ;;  %v7725_v4 = vld [vmem:[#allocation17 + $0x140] ss:$8 sps:$4 sm:$0xff]  }
 0x2ea   : > { %2549 = vmatmul.mubr.bf16.vlgmr.msra.gmra.mrb[8].mxu0 %v1623_v63  ;;  %v7733_v63 = vld [vmem:[#allocation17 + $0x164] ss:$8 sps:$4 sm:$0xff]  }
 0x2eb   : > { %4335 = vmatpush1.bf16.msra.mxu0 %v7665_v37  ;;  %4366 = vmatprep.mubr.bf16.mxu0 %v3547_v50  ;;  %v7730_v37 = vld [vmem:[#allocation17 + $0x154] ss:$8 sps:$4 sm:$0xff]   ;;  %v7728_v50 = vld [vmem:[#allocation17 + $0x150] ss:$8 sps:$4 sm:$0xff]  }
 0x2ec   : > { %4336 = vmatprep.subr.bf16.mxu0 %v7670_v51  ;;  %v7731_v51 = vld [vmem:[#allocation17 + $0x160] ss:$8 sps:$4 sm:$0xff]  }
 0x2ef   : > { %4337 = vmatpush1.bf16.msra.mxu0 %v7668_v55  ;;  %v7739_v55 = vld [vmem:[#allocation17 + $0x184] ss:$8 sps:$4 sm:$0xff]  }
 0x2f0   : > { %4338 = vmatprep.subr.bf16.mxu0 %v7673_v57  ;;  %v7742_v57 = vld [vmem:[#allocation17 + $0x194] ss:$8 sps:$4 sm:$0xff]  }
 0x2f3   : > { %4339 = vmatpush1.bf16.msra.mxu0 %v7671_v41  ;;  %v7740_v41 = vld [vmem:[#allocation17 + $0x190] ss:$8 sps:$4 sm:$0xff]  }
 0x2f4   : > { %4340 = vmatprep.subr.bf16.mxu0 %v7676_v58  ;;  %v7745_v58 = vld [vmem:[#allocation17 + $0x1a4] ss:$8 sps:$4 sm:$0xff]  }
 0x2f7   : > { %4341 = vmatpush1.bf16.msra.mxu0 %v7674_v59  ;;  %v7743_v59 = vld [vmem:[#allocation17 + $0x1a0] ss:$8 sps:$4 sm:$0xff]  }
 0x2f8   : > { %4342 = vmatprep.subr.bf16.mxu0 %v7679_v6  ;;  %v7748_v6 = vld [vmem:[#allocation17 + $0x1b4] ss:$8 sps:$4 sm:$0xff]  }
 0x2fb   : > { %4343 = vmatpush1.bf16.msra.mxu0 %v7677_v60  ;;  %v7746_v60 = vld [vmem:[#allocation17 + $0x1b0] ss:$8 sps:$4 sm:$0xff]  }
 0x2fc   : > { %4344 = vmatprep.subr.bf16.mxu0 %v7682_v61  ;;  %v7751_v61 = vld [vmem:[#allocation17 + $0x1c4] ss:$8 sps:$4 sm:$0xff]  }
 0x2ff   : > { %4345 = vmatpush1.bf16.msra.mxu0 %v7680_v62  ;;  %v2704_v62 = vsub.s32 2, %v8620_v27 }
 0x300   : > { %4346 = vmatprep.subr.bf16.mxu0 %v7685_v1  ;;  %v7749_v1 = vld [vmem:[#allocation17 + $0x1c0] ss:$8 sps:$4 sm:$0xff]  }
 0x303   : > { %4347 = vmatpush1.bf16.msra.mxu0 %v7683_v25  ;;  %v2716_v25 = vsub.s32 5, %v8620_v27 }
 0x304   : > { %4348 = vmatprep.subr.bf16.mxu0 %v7688_v2  ;;  %v7754_v2 = vld [vmem:[#allocation17 + $0x1d4] ss:$8 sps:$4 sm:$0xff]  }
 0x307   : > { %4349 = vmatpush1.bf16.msra.mxu0 %v7686_v3  ;;  %v2705_v3 = vrot.slane %v8627_v33, %v2704_v62  ;;  %v588_v62 = vld [vmem:[#allocation11 + $0x90] sm:$0xff] }
 0x308   : > { %4350 = vmatprep.subr.bf16.mxu0 %v7691_v5  ;;  %v7752_v5 = vld [vmem:[#allocation17 + $0x1d0] ss:$8 sps:$4 sm:$0xff]  }
 0x30b   : > { %4351 = vmatpush1.bf16.msra.mxu0 %v7689_v7  ;;  %v2717_v7 = vrot.slane %v8627_v33, %v2716_v25  ;;  %v591_v25 = vld [vmem:[#allocation11 + $0xa8] sm:$0xff] }
 0x30c   : > { %4352 = vmatprep.subr.bf16.mxu0 %v7694_v8  ;;  %v7757_v8 = vld [vmem:[#allocation17 + $0x1e4] ss:$8 sps:$4 sm:$0xff]  }
 0x30f   : > { %4353 = vmatpush1.bf16.msra.mxu0 %v7692_v9  ;;  %v3450_v9 = vadd.f32 %v8636_v52, %v2705_v3  ;;  %v7764_v52 = vld [vmem:[#allocation17 + $0x210] ss:$8 sps:$4 sm:$0xff]  }
 0x310   : > { %4354 = vmatprep.subr.bf16.mxu0 %v7697_v10  ;;  %v7755_v10 = vld [vmem:[#allocation17 + $0x1e0] ss:$8 sps:$4 sm:$0xff]  }
 0x313   : > { %4355 = vmatpush1.bf16.msra.mxu0 %v7695_v11 }
 0x314   : > { %4356 = vmatprep.subr.bf16.mxu0 %v7700_v12  ;;  %v7760_v12 = vld [vmem:[#allocation17 + $0x1f4] ss:$8 sps:$4 sm:$0xff]  }
 0x317   : > { %4357 = vmatpush1.bf16.msra.mxu0 %v7698_v13  ;;  %v3540_v13 = vmax.f32 %v3450_v9, 0.0  ;;  %v592_v9 = vld [vmem:[#allocation11 + $0xb0] sm:$0xff] }
 0x318   : > { %4358 = vmatprep.subr.bf16.mxu0 %v7703_v35  ;;  %v7758_v35 = vld [vmem:[#allocation17 + $0x1f0] ss:$8 sps:$4 sm:$0xff]  }
 0x31b   : > { %4359 = vmatpush1.bf16.msra.mxu0 %v7701_v15 }
 0x31c   : > { %4360 = vmatprep.subr.bf16.mxu0 %v7706_v17  ;;  %v3548_v17 = vpack.c.bf16 %v3540_v13, %v3540_v13 }
 0x31e   : > { %v8648_v40 = vpop.f32.mrb[16].mxu1 }
 0x31f   : > { %4361 = vmatpush1.bf16.msra.mxu0 %v7704_v19  ;;  %v8650_v0 = vpop.f32.mrb[17].mxu1 }
 0x320   : > { %4362 = vmatprep.subr.bf16.mxu0 %v7709_v21  ;;  %v3494_v42 = vpop.f32.mrb[18].mxu1  ;;  %v3493_v11 = vadd.f32 %v8650_v0, %v2717_v7 }
 0x321   : > { %v3495_v44 = vpop.f32.mrb[19].mxu1  ;;  %v574_v42 = vld [vmem:[#allocation11 + $0x20] sm:$0xff] }
 0x322   : > { %v3543_v15 = vmax.f32 %v3493_v11, 0.0  ;;  %v579_v44 = vld [vmem:[#allocation11 + $0x48] sm:$0xff] }
 0x323   : > { %4363 = vmatpush1.bf16.msra.mxu0 %v7707_v23  ;;  %v7769_v23 = vld [vmem:[#allocation17 + $0x224] ss:$8 sps:$4 sm:$0xff]  }
 0x324   : > { %4364 = vmatprep.subr.bf16.mxu0 %v7712_v26  ;;  %v3551_v19 = vpack.c.bf16 %v3543_v15, %v3543_v15  ;;  %v571_v26 = vld [vmem:[#allocation11 + $0x8] sm:$0xff] }
 0x325   : > { %v595_v11 = vld [vmem:[#allocation11 + $0xc8] sm:$0xff] }
 0x327   : > { %4365 = vmatpush1.bf16.msra.mxu0 %v7710_v29  ;;  %v570_v29 = vld [vmem:[#allocation11] sm:$0xff] }
 0x328   : > { %4375 = vmatprep.subr.bf16.mxu0 %v7715_v32  ;;  %v8662_v32 = vpack.c.bf16 %v573_v28, %v571_v26  ;;  %v598_v26 = vld [vmem:[#allocation11 + $0xe0] sm:$0xff]  ;;  %v600_v28 = vld [vmem:[#allocation11 + $0xf0] sm:$0xff] }
 0x32a   : > { %4367 = vmatmul.mubr.bf16.vlgmr.msra.gmra.mrb[12].mxu0 %v3546_v34  ;;  %9664 = vst [vmem:[#allocation34_spill] sm:$0xff] %v8662_v32  ;;  %v572_v34 = vld [vmem:[#allocation11 + $0x10] sm:$0xff]  ;;  %6416 = vmatprep.subr.bf16.mxu1 %v8662_v32 }
 0x32b   : > { %4376 = vmatpush1.bf16.msra.mxu0 %v7713_v36  ;;  %4407 = vmatprep.mubr.bf16.mxu0 %v3549_v38  ;;  %v575_v36 = vld [vmem:[#allocation11 + $0x28] sm:$0xff]  ;;  %v577_v38 = vld [vmem:[#allocation11 + $0x38] sm:$0xff] }
 0x32c   : > { %4377 = vmatprep.subr.bf16.mxu0 %v7718_v39  ;;  %v8664_v39 = vpack.c.bf16 %v572_v34, %v570_v29  ;;  %v8666_v0 = vpack.c.bf16 %v577_v38, %v575_v36  ;;  %v7787_v29 = vld [vmem:[#allocation17 + $0x284] ss:$8 sps:$4 sm:$0xff]   ;;  %v605_v34 = vld [vmem:[#allocation11 + $0x118] sm:$0xff]  ;;  %v8706_v36 = vpack.c.bf16 %v600_v28, %v598_v26  ;;  %v7785_v38 = vld [vmem:[#allocation17 + $0x280] ss:$8 sps:$4 sm:$0xff]  }
 0x32d   : > { %v618_v26 = vld [vmem:[#allocation11 + $0x180] sm:$0xff]  ;;  %v620_v28 = vld [vmem:[#allocation11 + $0x190] sm:$0xff] }
 0x32e   : > { %6418 = vmatpush1.bf16.msra.mxu1 %v8664_v39 }
 0x32f   : > { %4378 = vmatpush1.bf16.msra.mxu0 %v7716_v43  ;;  %v576_v43 = vld [vmem:[#allocation11 + $0x30] sm:$0xff]  ;;  %6420 = vmatprep.subr.bf16.mxu1 %v8666_v0 }
 0x330   : > { %4379 = vmatprep.subr.bf16.mxu0 %v7721_v45  ;;  %v581_v45 = vld [vmem:[#allocation11 + $0x58] sm:$0xff] }
 0x333   : > { %4380 = vmatpush1.bf16.msra.mxu0 %v7719_v46  ;;  %v8670_v46 = vpack.c.bf16 %v576_v43, %v574_v42  ;;  %v602_v43 = vld [vmem:[#allocation11 + $0x100] sm:$0xff] }
 0x334   : > { %4381 = vmatprep.subr.bf16.mxu0 %v7724_v47  ;;  %v7767_v47 = vld [vmem:[#allocation17 + $0x220] ss:$8 sps:$4 sm:$0xff]  }
 0x335   : > { %6422 = vmatpush1.bf16.msra.mxu1 %v8670_v46 }
 0x337   : > { %4382 = vmatpush1.bf16.msra.mxu0 %v7722_v48  ;;  %v8673_v48 = vpack.c.bf16 %v581_v45, %v579_v44  ;;  %v604_v44 = vld [vmem:[#allocation11 + $0x110] sm:$0xff] }
 0x338   : > { %4383 = vmatprep.subr.bf16.mxu0 %v7727_v49  ;;  %v578_v49 = vld [vmem:[#allocation11 + $0x40] sm:$0xff]  ;;  %v7790_v45 = vld [vmem:[#allocation17 + $0x294] ss:$8 sps:$4 sm:$0xff]  }
 0x339   : > { %6424 = vmatprep.subr.bf16.mxu1 %v8673_v48 }
 0x33b   : > { %4384 = vmatpush1.bf16.msra.mxu0 %v7725_v4  ;;  %v580_v4 = vld [vmem:[#allocation11 + $0x50] sm:$0xff] }
 0x33c   : > { %4385 = vmatprep.subr.bf16.mxu0 %v7730_v37  ;;  %v7772_v37 = vld [vmem:[#allocation17 + $0x234] ss:$8 sps:$4 sm:$0xff]  }
 0x33f   : > { %4386 = vmatpush1.bf16.msra.mxu0 %v7728_v50  ;;  %v583_v50 = vld [vmem:[#allocation11 + $0x68] sm:$0xff] }
 0x340   : > { %4387 = vmatprep.subr.bf16.mxu0 %v7733_v63  ;;  %v585_v63 = vld [vmem:[#allocation11 + $0x78] sm:$0xff] }
 0x343   : > { %4388 = vmatpush1.bf16.msra.mxu0 %v7731_v51  ;;  %v8676_v51 = vpack.c.bf16 %v580_v4, %v578_v49  ;;  %v609_v49 = vld [vmem:[#allocation11 + $0x138] sm:$0xff]  ;;  %v8712_v4 = vpack.c.bf16 %v604_v44, %v602_v43  ;;  %v8739_v43 = vpack.c.bf16 %v620_v28, %v618_v26  ;;  %v7815_v26 = vld [vmem:[#allocation17 + $0x320] ss:$8 sps:$4 sm:$0xff]  }
 0x344   : > { %4389 = vmatprep.subr.bf16.mxu0 %v7736_v53  ;;  %v7770_v53 = vld [vmem:[#allocation17 + $0x230] ss:$8 sps:$4 sm:$0xff]   ;;  %v7820_v28 = vld [vmem:[#allocation17 + $0x334] ss:$8 sps:$4 sm:$0xff]  }
 0x345   : > { %6426 = vmatpush1.bf16.msra.mxu1 %v8676_v51  ;;  %9672 = vst [vmem:[#allocation42_spill] sm:$0xff] %v8739_v43  ;;  %v7800_v44 = vld [vmem:[#allocation17 + $0x2d0] ss:$8 sps:$4 sm:$0xff]  }
 0x347   : > { %4390 = vmatpush1.bf16.msra.mxu0 %v7734_v54  ;;  %v8679_v54 = vpack.c.bf16 %v585_v63, %v583_v50  ;;  %v606_v63 = vld [vmem:[#allocation11 + $0x120] sm:$0xff] }
 0x348   : > { %4391 = vmatprep.subr.bf16.mxu0 %v7739_v55  ;;  %v582_v55 = vld [vmem:[#allocation11 + $0x60] sm:$0xff] }
 0x349   : > { %6428 = vmatprep.subr.bf16.mxu1 %v8679_v54 }
 0x34b   : > { %4392 = vmatpush1.bf16.msra.mxu0 %v7737_v56  ;;  %v584_v56 = vld [vmem:[#allocation11 + $0x70] sm:$0xff] }
 0x34c   : > { %4393 = vmatprep.subr.bf16.mxu0 %v7742_v57  ;;  %v7775_v57 = vld [vmem:[#allocation17 + $0x244] ss:$8 sps:$4 sm:$0xff]  }
 0x34f   : > { %4394 = vmatpush1.bf16.msra.mxu0 %v7740_v41  ;;  %v587_v41 = vld [vmem:[#allocation11 + $0x88] sm:$0xff] }
 0x350   : > { %4395 = vmatprep.subr.bf16.mxu0 %v7745_v58  ;;  %v589_v58 = vld [vmem:[#allocation11 + $0x98] sm:$0xff] }
 0x353   : > { %4396 = vmatpush1.bf16.msra.mxu0 %v7743_v59  ;;  %v8682_v59 = vpack.c.bf16 %v584_v56, %v582_v55  ;;  %v7793_v55 = vld [vmem:[#allocation17 + $0x2a4] ss:$8 sps:$4 sm:$0xff]  }
 0x354   : > { %4397 = vmatprep.subr.bf16.mxu0 %v7748_v6  ;;  %v7773_v6 = vld [vmem:[#allocation17 + $0x240] ss:$8 sps:$4 sm:$0xff]  }
 0x355   : > { %6430 = vmatpush1.bf16.msra.mxu1 %v8682_v59  ;;  %v611_v56 = vld [vmem:[#allocation11 + $0x148] sm:$0xff] }
 0x357   : > { %4398 = vmatpush1.bf16.msra.mxu0 %v7746_v60  ;;  %v8685_v60 = vpack.c.bf16 %v589_v58, %v587_v41  ;;  %v7791_v58 = vld [vmem:[#allocation17 + $0x2a0] ss:$8 sps:$4 sm:$0xff]  }
 0x358   : > { %4399 = vmatprep.subr.bf16.mxu0 %v7751_v61  ;;  %v586_v61 = vld [vmem:[#allocation11 + $0x80] sm:$0xff] }
 0x359   : > { %v8688_v3 = vpack.c.bf16 %v588_v62, %v586_v61  ;;  %6432 = vmatprep.subr.bf16.mxu1 %v8685_v60  ;;  %v610_v61 = vld [vmem:[#allocation11 + $0x140] sm:$0xff]  ;;  %v612_v62 = vld [vmem:[#allocation11 + $0x150] sm:$0xff] }
 0x35b   : > { %4400 = vmatpush1.bf16.msra.mxu0 %v7749_v1  ;;  %v7778_v1 = vld [vmem:[#allocation17 + $0x254] ss:$8 sps:$4 sm:$0xff]   ;;  %6434 = vmatpush1.bf16.msra.mxu1 %v8688_v3 }
 0x35c   : > { %4401 = vmatprep.subr.bf16.mxu0 %v7754_v2  ;;  %v593_v2 = vld [vmem:[#allocation11 + $0xb8] sm:$0xff] }
 0x35d   : > { %v8691_v7 = vpack.c.bf16 %v593_v2, %v591_v25  ;;  %v615_v25 = vld [vmem:[#allocation11 + $0x168] sm:$0xff]  ;;  %v617_v2 = vld [vmem:[#allocation11 + $0x178] sm:$0xff] }
 0x35e   : > { %v8658_v21 = vpop.f32.mrb[20].mxu1 }
 0x35f   : > { %4402 = vmatpush1.bf16.msra.mxu0 %v7752_v5  ;;  %v8660_v22 = vpop.f32.mrb[21].mxu1  ;;  %v7776_v5 = vld [vmem:[#allocation17 + $0x250] ss:$8 sps:$4 sm:$0xff]   ;;  %6436 = vmatprep.subr.bf16.mxu1 %v8691_v7 }
 0x360   : > { %4403 = vmatprep.subr.bf16.mxu0 %v7757_v8  ;;  %v3535_v24 = vpop.f32.mrb[22].mxu1  ;;  %v590_v8 = vld [vmem:[#allocation11 + $0xa0] sm:$0xff] }
 0x361   : > { %v3536_v31 = vpop.f32.mrb[23].mxu1  ;;  %v8694_v13 = vpack.c.bf16 %v592_v9, %v590_v8  ;;  %v7794_v8 = vld [vmem:[#allocation17 + $0x2b0] ss:$8 sps:$4 sm:$0xff]   ;;  %v8727_v9 = vpack.c.bf16 %v617_v2, %v615_v25  ;;  %v7808_v2 = vld [vmem:[#allocation17 + $0x2f4] ss:$8 sps:$4 sm:$0xff]  }
 0x362   : > { %v603_v31 = vld [vmem:[#allocation11 + $0x108] sm:$0xff]  ;;  %v628_v25 = vld [vmem:[#allocation11 + $0x1d0] sm:$0xff] }
 0x363   : > { %4404 = vmatpush1.bf16.msra.mxu0 %v7755_v10  ;;  %v7781_v10 = vld [vmem:[#allocation17 + $0x264] ss:$8 sps:$4 sm:$0xff]   ;;  %6438 = vmatpush1.bf16.msra.mxu1 %v8694_v13  ;;  %v8709_v42 = vpack.c.bf16 %v605_v34, %v603_v31  ;;  %9669 = vst [vmem:[#allocation39_spill] sm:$0xff] %v8727_v9  ;;  %v625_v34 = vld [vmem:[#allocation11 + $0x1b8] sm:$0xff] }
 0x364   : > { %4405 = vmatprep.subr.bf16.mxu0 %v7760_v12  ;;  %v597_v12 = vld [vmem:[#allocation11 + $0xd8] sm:$0xff]  ;;  %v623_v31 = vld [vmem:[#allocation11 + $0x1a8] sm:$0xff] }
 0x365   : > { %v8697_v15 = vpack.c.bf16 %v597_v12, %v595_v11  ;;  %v616_v11 = vld [vmem:[#allocation11 + $0x170] sm:$0xff]  ;;  %v7799_v12 = vld [vmem:[#allocation17 + $0x2c4] ss:$8 sps:$4 sm:$0xff]  }
 0x367   : > { %4406 = vmatpush1.bf16.msra.mxu0 %v7758_v35  ;;  %v7779_v35 = vld [vmem:[#allocation17 + $0x260] ss:$8 sps:$4 sm:$0xff]   ;;  %6440 = vmatprep.subr.bf16.mxu1 %v8697_v15 }
 0x368   : > { %4416 = vmatprep.subr.bf16.mxu0 %v7763_v16  ;;  %v594_v16 = vld [vmem:[#allocation11 + $0xc0] sm:$0xff] }
 0x36a   : > { %4408 = vmatmul.mubr.bf16.vlgmr.msra.gmra.mrb[12].mxu0 %v3548_v17  ;;  %v596_v17 = vld [vmem:[#allocation11 + $0xd0] sm:$0xff] }
 0x36b   : > { %4417 = vmatpush1.bf16.msra.mxu0 %v7761_v18  ;;  %4448 = vmatprep.mubr.bf16.mxu0 %v3551_v19  ;;  %v7784_v18 = vld [vmem:[#allocation17 + $0x274] ss:$8 sps:$4 sm:$0xff]   ;;  %v599_v19 = vld [vmem:[#allocation11 + $0xe8] sm:$0xff] }
 0x36c   : > { %4418 = vmatprep.subr.bf16.mxu0 %v7766_v20  ;;  %v601_v20 = vld [vmem:[#allocation11 + $0xf8] sm:$0xff] }
 0x36d   : > { %v8703_v24 = vpack.c.bf16 %v601_v20, %v599_v19  ;;  %v7797_v19 = vld [vmem:[#allocation17 + $0x2c0] ss:$8 sps:$4 sm:$0xff]   ;;  %v2724_v20 = vsub.s32 7, %v8620_v27 }
 0x36f   : > { %4419 = vmatpush1.bf16.msra.mxu0 %v7764_v52  ;;  %v8700_v52 = vpack.c.bf16 %v596_v17, %v594_v16  ;;  %v621_v16 = vld [vmem:[#allocation11 + $0x198] sm:$0xff]  ;;  %v2712_v17 = vsub.s32 4, %v8620_v27 }
 0x370   : > { %4420 = vmatprep.subr.bf16.mxu0 %v7769_v23  ;;  %v7782_v23 = vld [vmem:[#allocation17 + $0x270] ss:$8 sps:$4 sm:$0xff]  }
 0x371   : > { %6442 = vmatpush1.bf16.msra.mxu1 %v8700_v52 }
 0x372   : > { %6444 = vmatprep.subr.bf16.mxu1 %v8703_v24 }
 0x373   : > { %4421 = vmatpush1.bf16.msra.mxu0 %v7767_v47  ;;  %v607_v47 = vld [vmem:[#allocation11 + $0x128] sm:$0xff] }
 0x374   : > { %4422 = vmatprep.subr.bf16.mxu0 %v7772_v37  ;;  %v7788_v37 = vld [vmem:[#allocation17 + $0x290] ss:$8 sps:$4 sm:$0xff]   ;;  %v8715_v50 = vpack.c.bf16 %v609_v49, %v607_v47  ;;  %v8743_v47 = vpack.c.bf16 %v625_v34, %v623_v31  ;;  %v622_v49 = vld [vmem:[#allocation11 + $0x1a0] sm:$0xff] }
 0x375   : > { %6446 = vmatpush1.bf16.msra.mxu1 %v8706_v36  ;;  %v7823_v31 = vld [vmem:[#allocation17 + $0x344] ss:$8 sps:$4 sm:$0xff]   ;;  %v7821_v34 = vld [vmem:[#allocation17 + $0x340] ss:$8 sps:$4 sm:$0xff]  }
 0x376   : > { %6448 = vmatprep.subr.bf16.mxu1 %v8709_v42  ;;  %9665 = vst [vmem:[#allocation35_spill] sm:$0xff] %v8715_v50  ;;  %9673 = vst [vmem:[#allocation43_spill] sm:$0xff] %v8743_v47 }
 0x377   : > { %4423 = vmatpush1.bf16.msra.mxu0 %v7770_v53  ;;  %v608_v53 = vld [vmem:[#allocation11 + $0x130] sm:$0xff] }
 0x378   : > { %4424 = vmatprep.subr.bf16.mxu0 %v7775_v57  ;;  %v613_v57 = vld [vmem:[#allocation11 + $0x158] sm:$0xff]  ;;  %v8718_v41 = vpack.c.bf16 %v608_v53, %v606_v63  ;;  %v7805_v63 = vld [vmem:[#allocation17 + $0x2e4] ss:$8 sps:$4 sm:$0xff]  }
 0x379   : > { %6450 = vmatpush1.bf16.msra.mxu1 %v8712_v4  ;;  %v627_v53 = vld [vmem:[#allocation11 + $0x1c8] sm:$0xff] }
 0x37a   : > { %9666 = vst [vmem:[#allocation36_spill] sm:$0xff] %v8718_v41  ;;  %6452 = vmatprep.subr.bf16.mxu1 %v8715_v50 }
 0x37b   : > { %4425 = vmatpush1.bf16.msra.mxu0 %v7773_v6  ;;  %v8721_v6 = vpack.c.bf16 %v613_v57, %v611_v56 }
 0x37c   : > { %4426 = vmatprep.subr.bf16.mxu0 %v7778_v1  ;;  %v7796_v1 = vld [vmem:[#allocation17 + $0x2b4] ss:$8 sps:$4 sm:$0xff]  }
 0x37d   : > { %9667 = vst [vmem:[#allocation37_spill] sm:$0xff] %v8721_v6  ;;  %6454 = vmatpush1.bf16.msra.mxu1 %v8718_v41 }
 0x37e   : > { %6456 = vmatprep.subr.bf16.mxu1 %v8721_v6 }
 0x37f   : > { %4427 = vmatpush1.bf16.msra.mxu0 %v7776_v5  ;;  %v8724_v5 = vpack.c.bf16 %v612_v62, %v610_v61 }
 0x380   : > { %4428 = vmatprep.subr.bf16.mxu0 %v7781_v10  ;;  %v614_v10 = vld [vmem:[#allocation11 + $0x160] sm:$0xff] }
 0x381   : > { %9668 = vst [vmem:[#allocation38_spill] sm:$0xff] %v8724_v5  ;;  %6458 = vmatpush1.bf16.msra.mxu1 %v8724_v5 }
 0x382   : > { %6460 = vmatprep.subr.bf16.mxu1 %v8727_v9  ;;  %v568_v9 = vld [vmem:[#allocation10 + $0x1f0] sm:$0xff] }
 0x383   : > { %4429 = vmatpush1.bf16.msra.mxu0 %v7779_v35  ;;  %v619_v35 = vld [vmem:[#allocation11 + $0x188] sm:$0xff] }
 0x384   : > { %4430 = vmatprep.subr.bf16.mxu0 %v7784_v18  ;;  %v8731_v18 = vpack.c.bf16 %v616_v11, %v614_v10  ;;  %v7806_v10 = vld [vmem:[#allocation17 + $0x2f0] ss:$8 sps:$4 sm:$0xff]  }
 0x386   : > { %9670 = vst [vmem:[#allocation40_spill] sm:$0xff] %v8731_v18  ;;  %6462 = vmatpush1.bf16.msra.mxu1 %v8731_v18 }
 0x387   : > { %4431 = vmatpush1.bf16.msra.mxu0 %v7782_v23  ;;  %v8735_v23 = vpack.c.bf16 %v621_v16, %v619_v35  ;;  %v7809_v35 = vld [vmem:[#allocation17 + $0x300] ss:$8 sps:$4 sm:$0xff]  }
 0x388   : > { %4432 = vmatprep.subr.bf16.mxu0 %v7787_v29  ;;  %v7802_v29 = vld [vmem:[#allocation17 + $0x2d4] ss:$8 sps:$4 sm:$0xff]  }
 0x389   : > { %9671 = vst [vmem:[#allocation41_spill] sm:$0xff] %v8735_v23  ;;  %6464 = vmatprep.subr.bf16.mxu1 %v8735_v23  ;;  %v564_v23 = vld [vmem:[#allocation10 + $0x1d0] sm:$0xff] }
 0x38a   : > { %6466 = vmatpush1.bf16.msra.mxu1 %v8739_v43 }
 0x38b   : > { %4433 = vmatpush1.bf16.msra.mxu0 %v7785_v38  ;;  %v2713_v38 = vrot.slane %v8627_v33, %v2712_v17  ;;  %6468 = vmatprep.subr.bf16.mxu1 %v8743_v47  ;;  %v7814_v17 = vld [vmem:[#allocation17 + $0x314] ss:$8 sps:$4 sm:$0xff]  }
 0x38c   : > { %4434 = vmatprep.subr.bf16.mxu0 %v7790_v45  ;;  %v2725_v45 = vrot.slane %v8627_v33, %v2724_v20  ;;  %v7817_v20 = vld [vmem:[#allocation17 + $0x324] ss:$8 sps:$4 sm:$0xff]   ;;  %v560_v47 = vld [vmem:[#allocation10 + $0x1b0] sm:$0xff] }
 0x38d   : > { %v3491_v56 = vadd.f32 %v8648_v40, %v2713_v38  ;;  %v7826_v38 = vld [vmem:[#allocation17 + $0x354] ss:$8 sps:$4 sm:$0xff]  }
 0x38e   : > { %v3534_v61 = vadd.f32 %v8660_v22, %v2725_v45  ;;  %v7811_v22 = vld [vmem:[#allocation17 + $0x304] ss:$8 sps:$4 sm:$0xff]  }
 0x38f   : > { %4435 = vmatpush1.bf16.msra.mxu0 %v7788_v37  ;;  %v624_v37 = vld [vmem:[#allocation11 + $0x1b0] sm:$0xff]  ;;  %v7829_v45 = vld [vmem:[#allocation17 + $0x364] ss:$8 sps:$4 sm:$0xff]  }
 0x390   : > { %4436 = vmatprep.subr.bf16.mxu0 %v7793_v55  ;;  %v629_v55 = vld [vmem:[#allocation11 + $0x1d8] sm:$0xff]  ;;  %v8747_v57 = vpack.c.bf16 %v624_v37, %v622_v49  ;;  %v3545_v11 = vmax.f32 %v3534_v61, 0.0  ;;  %v7835_v61 = vld [vmem:[#allocation17 + $0x384] ss:$8 sps:$4 sm:$0xff]  }
 0x391   : > { %v8751_v62 = vpack.c.bf16 %v629_v55, %v627_v53  ;;  %v7827_v53 = vld [vmem:[#allocation17 + $0x360] ss:$8 sps:$4 sm:$0xff]  }
 0x392   : > { %9674 = vst [vmem:[#allocation44_spill] sm:$0xff] %v8747_v57  ;;  %6470 = vmatpush1.bf16.msra.mxu1 %v8747_v57  ;;  %v3553_v16 = vpack.c.bf16 %v3545_v11, %v3545_v11  ;;  %v7844_v11 = vld [vmem:[#allocation17 + $0x3b4] ss:$8 sps:$4 sm:$0xff]  }
 0x393   : > { %4437 = vmatpush1.bf16.msra.mxu0 %v7791_v58  ;;  %v7803_v58 = vld [vmem:[#allocation17 + $0x2e0] ss:$8 sps:$4 sm:$0xff]   ;;  %9675 = vst [vmem:[#allocation45_spill] sm:$0xff] %v8751_v62  ;;  %6472 = vmatprep.subr.bf16.mxu1 %v8751_v62  ;;  %v556_v62 = vld [vmem:[#allocation10 + $0x190] sm:$0xff] }
 0x394   : > { %4438 = vmatprep.subr.bf16.mxu0 %v7796_v1  ;;  %v626_v1 = vld [vmem:[#allocation11 + $0x1c0] sm:$0xff] }
 0x395   : > { %v8754_v40 = vpack.c.bf16 %v628_v25, %v626_v1  ;;  %v7833_v1 = vld [vmem:[#allocation17 + $0x380] ss:$8 sps:$4 sm:$0xff]   ;;  %v7838_v25 = vld [vmem:[#allocation17 + $0x394] ss:$8 sps:$4 sm:$0xff]  }
 0x397   : > { %4439 = vmatpush1.bf16.msra.mxu0 %v7794_v8  ;;  %v3542_v8 = vmax.f32 %v3491_v56, 0.0  ;;  %9676 = vst [vmem:[#allocation46_spill] sm:$0xff] %v8754_v40  ;;  %6474 = vmatpush1.bf16.msra.mxu1 %v8754_v40  ;;  %v7832_v56 = vld [vmem:[#allocation17 + $0x374] ss:$8 sps:$4 sm:$0xff]  }
 0x398   : > { %4440 = vmatprep.subr.bf16.mxu0 %v7799_v12 }
 0x399   : > { %v3550_v12 = vpack.c.bf16 %v3542_v8, %v3542_v8  ;;  %v7841_v8 = vld [vmem:[#allocation17 + $0x3a4] ss:$8 sps:$4 sm:$0xff]  }
 0x39b   : > { %4441 = vmatpush1.bf16.msra.mxu0 %v7797_v19  ;;  %v7812_v19 = vld [vmem:[#allocation17 + $0x310] ss:$8 sps:$4 sm:$0xff]  }
 0x39c   : > { %4442 = vmatprep.subr.bf16.mxu0 %v7802_v29  ;;  %v7818_v29 = vld [vmem:[#allocation17 + $0x330] ss:$8 sps:$4 sm:$0xff]  }
 0x39f   : > { %4443 = vmatpush1.bf16.msra.mxu0 %v7800_v44  ;;  %v7824_v44 = vld [vmem:[#allocation17 + $0x350] ss:$8 sps:$4 sm:$0xff]  }
 0x3a0   : > { %4444 = vmatprep.subr.bf16.mxu0 %v7805_v63 }
 0x3a3   : > { %4445 = vmatpush1.bf16.msra.mxu0 %v7803_v58  ;;  %v7830_v58 = vld [vmem:[#allocation17 + $0x370] ss:$8 sps:$4 sm:$0xff]  }
 0x3a4   : > { %4446 = vmatprep.subr.bf16.mxu0 %v7808_v2  ;;  %v7836_v2 = vld [vmem:[#allocation17 + $0x390] ss:$8 sps:$4 sm:$0xff]  }
 0x3a7   : > { %4447 = vmatpush1.bf16.msra.mxu0 %v7806_v10  ;;  %v7839_v10 = vld [vmem:[#allocation17 + $0x3a0] ss:$8 sps:$4 sm:$0xff]  }
 0x3a8   : > { %4457 = vmatprep.subr.bf16.mxu0 %v7811_v22  ;;  %v7842_v22 = vld [vmem:[#allocation17 + $0x3b0] ss:$8 sps:$4 sm:$0xff]  }
 0x3aa   : > { %4449 = vmatmul.mubr.bf16.vlgmr.msra.gmra.mrb[12].mxu0 %v3550_v12  ;;  %v7847_v12 = vld [vmem:[#allocation17 + $0x3c4] ss:$8 sps:$4 sm:$0xff]  }
 0x3ab   : > { %4458 = vmatpush1.bf16.msra.mxu0 %v7809_v35  ;;  %4489 = vmatprep.mubr.bf16.mxu0 %v3553_v16  ;;  %v7845_v35 = vld [vmem:[#allocation17 + $0x3c0] ss:$8 sps:$4 sm:$0xff]   ;;  %v2720_v16 = vsub.s32 6, %v8620_v27 }
 0x3ac   : > { %4459 = vmatprep.subr.bf16.mxu0 %v7814_v17  ;;  %v7850_v17 = vld [vmem:[#allocation17 + $0x3d4] ss:$8 sps:$4 sm:$0xff]  }
 0x3af   : > { %4460 = vmatpush1.bf16.msra.mxu0 %v7812_v19  ;;  %v7848_v19 = vld [vmem:[#allocation17 + $0x3d0] ss:$8 sps:$4 sm:$0xff]  }
 0x3b0   : > { %4461 = vmatprep.subr.bf16.mxu0 %v7817_v20  ;;  %v2721_v20 = vrot.slane %v8627_v33, %v2720_v16  ;;  %v630_v33 = vld [vmem:[#allocation11 + $0x1e0] sm:$0xff]  ;;  %v515_v16 = vld [vmem:[#allocation10 + $0x48] sm:$0xff] }
 0x3b3   : > { %4462 = vmatpush1.bf16.msra.mxu0 %v7815_v26  ;;  %v7853_v26 = vld [vmem:[#allocation17 + $0x3e4] ss:$8 sps:$4 sm:$0xff]  }
 0x3b4   : > { %4463 = vmatprep.subr.bf16.mxu0 %v7820_v28  ;;  %v7851_v28 = vld [vmem:[#allocation17 + $0x3e0] ss:$8 sps:$4 sm:$0xff]  }
 0x3b7   : > { %4464 = vmatpush1.bf16.msra.mxu0 %v7818_v29  ;;  %v3532_v29 = vadd.f32 %v8658_v21, %v2721_v20  ;;  %v507_v21 = vld [vmem:[#allocation10 + $0x8] sm:$0xff]  ;;  %v514_v20 = vld [vmem:[#allocation10 + $0x40] sm:$0xff] }
 0x3b8   : > { %4465 = vmatprep.subr.bf16.mxu0 %v7823_v31  ;;  %v7856_v31 = vld [vmem:[#allocation17 + $0x3f4] ss:$8 sps:$4 sm:$0xff]  }
 0x3bb   : > { %4466 = vmatpush1.bf16.msra.mxu0 %v7821_v34  ;;  %v7854_v34 = vld [vmem:[#allocation17 + $0x3f0] ss:$8 sps:$4 sm:$0xff]  }
 0x3bc   : > { %4467 = vmatprep.subr.bf16.mxu0 %v7826_v38  ;;  %v3544_v38 = vmax.f32 %v3532_v29, 0.0  ;;  %v519_v29 = vld [vmem:[#allocation10 + $0x68] sm:$0xff] }
 0x3bd   : > { %v8758_v49 = vpop.f32.mrb[8].mxu0 }
 0x3be   : > { %v8760_v37 = vpop.f32.mrb[9].mxu0 }
 0x3bf   : > { %v2554_v63 = vpop.f32.mrb[10].mxu0  ;;  %4468 = vmatpush1.bf16.msra.mxu0 %v7824_v44  ;;  %v3552_v44 = vpack.c.bf16 %v3544_v38, %v3544_v38  ;;  %v518_v38 = vld [vmem:[#allocation10 + $0x60] sm:$0xff] }
 0x3c0   : > { %v2555_v55 = vpop.f32.mrb[11].mxu0  ;;  %4469 = vmatprep.subr.bf16.mxu0 %v7829_v45  ;;  %v631_v45 = vld [vmem:[#allocation11 + $0x1e8] sm:$0xff]  ;;  %v633_v63 = vld [vmem:[#allocation11 + $0x1f8] sm:$0xff] }
 0x3c1   : > { %v632_v55 = vld [vmem:[#allocation11 + $0x1f0] sm:$0xff] }
 0x3c3   : > { %4470 = vmatpush1.bf16.msra.mxu0 %v7827_v53  ;;  %v8765_v53 = vpack.c.bf16 %v633_v63, %v631_v45  ;;  %v523_v63 = vld [vmem:[#allocation10 + $0x88] sm:$0xff] }
 0x3c4   : > { %4471 = vmatprep.subr.bf16.mxu0 %v7832_v56  ;;  %v8767_v56 = vpack.c.bf16 %v632_v55, %v630_v33  ;;  %v525_v33 = vld [vmem:[#allocation10 + $0x98] sm:$0xff] }
 0x3c5   : > { %9677 = vst [vmem:[#allocation47_spill] sm:$0xff] %v8765_v53  ;;  %6476 = vmatprep.subr.bf16.mxu1 %v8765_v53  ;;  %v8796_v55 = vpack.c.bf16 %v525_v33, %v523_v63  ;;  %v537_v63 = vld [vmem:[#allocation10 + $0xf8] sm:$0xff]  ;;  %v552_v53 = vld [vmem:[#allocation10 + $0x170] sm:$0xff] }
 0x3c6   : > { %9678 = vst [vmem:[#allocation48_spill] sm:$0xff] %v8767_v56  ;;  %6478 = vmatpush1.bf16.msra.mxu1 %v8767_v56 }
 0x3c7   : > { %4472 = vmatpush1.bf16.msra.mxu0 %v7830_v58  ;;  %v509_v58 = vld [vmem:[#allocation10 + $0x18] sm:$0xff] }
 0x3c8   : > { %4473 = vmatprep.subr.bf16.mxu0 %v7835_v61  ;;  %v8771_v61 = vpack.c.bf16 %v509_v58, %v507_v21  ;;  %v522_v21 = vld [vmem:[#allocation10 + $0x80] sm:$0xff]  ;;  %v524_v58 = vld [vmem:[#allocation10 + $0x90] sm:$0xff] }
 0x3ca   : > { %9679 = vst [vmem:[#allocation49_spill] sm:$0xff] %v8771_v61  ;;  %6480 = vmatprep.subr.bf16.mxu1 %v8771_v61 }
 0x3cb   : > { %4474 = vmatpush1.bf16.msra.mxu0 %v7833_v1  ;;  %v506_v1 = vld [vmem:[#allocation10] sm:$0xff] }
 0x3cc   : > { %4475 = vmatprep.subr.bf16.mxu0 %v7838_v25  ;;  %v508_v25 = vld [vmem:[#allocation10 + $0x10] sm:$0xff] }
 0x3cf   : > { %4476 = vmatpush1.bf16.msra.mxu0 %v7836_v2  ;;  %v8773_v2 = vpack.c.bf16 %v508_v25, %v506_v1  ;;  %v8798_v1 = vpack.c.bf16 %v524_v58, %v522_v21  ;;  %v527_v25 = vld [vmem:[#allocation10 + $0xa8] sm:$0xff]  ;;  %v534_v21 = vld [vmem:[#allocation10 + $0xe0] sm:$0xff]  ;;  %v536_v58 = vld [vmem:[#allocation10 + $0xf0] sm:$0xff] }
 0x3d0   : > { %4477 = vmatprep.subr.bf16.mxu0 %v7841_v8  ;;  %v511_v8 = vld [vmem:[#allocation10 + $0x28] sm:$0xff] }
 0x3d3   : > { %4478 = vmatpush1.bf16.msra.mxu0 %v7839_v10  ;;  %v513_v10 = vld [vmem:[#allocation10 + $0x38] sm:$0xff] }
 0x3d4   : > { %4479 = vmatprep.subr.bf16.mxu0 %v7844_v11  ;;  %v8778_v11 = vpack.c.bf16 %v513_v10, %v511_v8  ;;  %v529_v8 = vld [vmem:[#allocation10 + $0xb8] sm:$0xff] }
 0x3d5   : > { %v8802_v10 = vpack.c.bf16 %v529_v8, %v527_v25  ;;  %v8816_v25 = vpack.c.bf16 %v536_v58, %v534_v21  ;;  %v539_v8 = vld [vmem:[#allocation10 + $0x108] sm:$0xff]  ;;  %v542_v21 = vld [vmem:[#allocation10 + $0x120] sm:$0xff]  ;;  %v544_v58 = vld [vmem:[#allocation10 + $0x130] sm:$0xff] }
 0x3d6   : > { %v8828_v14 = vpack.c.bf16 %v544_v58, %v542_v21  ;;  %v550_v58 = vld [vmem:[#allocation10 + $0x160] sm:$0xff] }
 0x3d7   : > { %4480 = vmatpush1.bf16.msra.mxu0 %v7842_v22  ;;  %v510_v22 = vld [vmem:[#allocation10 + $0x20] sm:$0xff]  ;;  %v8840_v40 = vpack.c.bf16 %v552_v53, %v550_v58 }
 0x3d8   : > { %4481 = vmatprep.subr.bf16.mxu0 %v7847_v12  ;;  %v512_v12 = vld [vmem:[#allocation10 + $0x30] sm:$0xff]  ;;  %9681 = vst [vmem:[#allocation51_spill] sm:$0xff] %v8828_v14  ;;  %v558_v58 = vld [vmem:[#allocation10 + $0x1a0] sm:$0xff] }
 0x3d9   : > { %9685 = vst [vmem:[#allocation55_spill] sm:$0xff] %v8840_v40  ;;  %v8852_v43 = vpack.c.bf16 %v560_v47, %v558_v58  ;;  %v566_v58 = vld [vmem:[#allocation10 + $0x1e0] sm:$0xff] }
 0x3da   : > { %v8864_v5 = vpack.c.bf16 %v568_v9, %v566_v58 }
 0x3db   : > { %4482 = vmatpush1.bf16.msra.mxu0 %v7845_v35  ;;  %v8780_v35 = vpack.c.bf16 %v512_v12, %v510_v22  ;;  %v526_v22 = vld [vmem:[#allocation10 + $0xa0] sm:$0xff]  ;;  %v528_v12 = vld [vmem:[#allocation10 + $0xb0] sm:$0xff]  ;;  %9689 = vst [vmem:[#allocation59_spill] sm:$0xff] %v8852_v43 }
 0x3dc   : > { %4483 = vmatprep.subr.bf16.mxu0 %v7850_v17  ;;  %v517_v17 = vld [vmem:[#allocation10 + $0x58] sm:$0xff]  ;;  %9693 = vst [vmem:[#allocation63_spill] sm:$0xff] %v8864_v5 }
 0x3df   : > { %4484 = vmatpush1.bf16.msra.mxu0 %v7848_v19  ;;  %v8784_v19 = vpack.c.bf16 %v517_v17, %v515_v16  ;;  %v8804_v16 = vpack.c.bf16 %v528_v12, %v526_v22  ;;  %v531_v17 = vld [vmem:[#allocation10 + $0xc8] sm:$0xff]  ;;  %v541_v22 = vld [vmem:[#allocation10 + $0x118] sm:$0xff] }
 0x3e0   : > { %4485 = vmatprep.subr.bf16.mxu0 %v7853_v26  ;;  %v516_v26 = vld [vmem:[#allocation10 + $0x50] sm:$0xff]  ;;  %v8820_v12 = vpack.c.bf16 %v541_v22, %v539_v8  ;;  %v547_v8 = vld [vmem:[#allocation10 + $0x148] sm:$0xff]  ;;  %v549_v22 = vld [vmem:[#allocation10 + $0x158] sm:$0xff] }
 0x3e3   : > { %4486 = vmatpush1.bf16.msra.mxu0 %v7851_v28  ;;  %v8786_v28 = vpack.c.bf16 %v516_v26, %v514_v20  ;;  %v533_v20 = vld [vmem:[#allocation10 + $0xd8] sm:$0xff] }
 0x3e4   : > { %4487 = vmatprep.subr.bf16.mxu0 %v7856_v31  ;;  %v521_v31 = vld [vmem:[#allocation10 + $0x78] sm:$0xff]  ;;  %v8808_v26 = vpack.c.bf16 %v533_v20, %v531_v17  ;;  %v538_v17 = vld [vmem:[#allocation10 + $0x100] sm:$0xff]  ;;  %v540_v20 = vld [vmem:[#allocation10 + $0x110] sm:$0xff] }
 0x3e7   : > { %4488 = vmatpush1.bf16.msra.mxu0 %v7854_v34  ;;  %v8790_v34 = vpack.c.bf16 %v521_v31, %v519_v29  ;;  %v530_v29 = vld [vmem:[#allocation10 + $0xc0] sm:$0xff]  ;;  %v532_v31 = vld [vmem:[#allocation10 + $0xd0] sm:$0xff] }
 0x3e8   : > { %6672 = vmatprep.subr.bf16.mxu0 %v8771_v61 }
 0x3ea   : > { %4490 = vmatmul.mubr.bf16.vlgmr.msra.gmra.mrb[12].mxu0 %v3552_v44  ;;  %v520_v44 = vld [vmem:[#allocation10 + $0x70] sm:$0xff] }
 0x3eb   : > { %6674 = vmatpush1.bf16.msra.mxu0 %v8773_v2  ;;  %v8792_v45 = vpack.c.bf16 %v520_v44, %v518_v38  ;;  %v8810_v38 = vpack.c.bf16 %v532_v31, %v530_v29  ;;  %v535_v44 = vld [vmem:[#allocation10 + $0xe8] sm:$0xff]  ;;  %v8822_v29 = vpack.c.bf16 %v540_v20, %v538_v17  ;;  %v8832_v17 = vpack.c.bf16 %v549_v22, %v547_v8  ;;  %v546_v20 = vld [vmem:[#allocation10 + $0x140] sm:$0xff]  ;;  %v557_v22 = vld [vmem:[#allocation10 + $0x198] sm:$0xff] }
 0x3ec   : > { %6676 = vmatprep.subr.bf16.mxu0 %v8778_v11  ;;  %v8814_v33 = vpack.c.bf16 %v537_v63, %v535_v44  ;;  %v543_v31 = vld [vmem:[#allocation10 + $0x128] sm:$0xff]  ;;  %v545_v44 = vld [vmem:[#allocation10 + $0x138] sm:$0xff]  ;;  %v8834_v56 = vpack.c.bf16 %v548_v30, %v546_v20  ;;  %v554_v20 = vld [vmem:[#allocation10 + $0x180] sm:$0xff] }
 0x3ed   : > { %v8826_v63 = vpack.c.bf16 %v545_v44, %v543_v31  ;;  %9682 = vst [vmem:[#allocation52_spill] sm:$0xff] %v8832_v17  ;;  %v551_v31 = vld [vmem:[#allocation10 + $0x168] sm:$0xff]  ;;  %v553_v44 = vld [vmem:[#allocation10 + $0x178] sm:$0xff]  ;;  %v8846_v57 = vpack.c.bf16 %v556_v62, %v554_v20  ;;  %v562_v20 = vld [vmem:[#allocation10 + $0x1c0] sm:$0xff] }
 0x3ee   : > { %9683 = vst [vmem:[#allocation53_spill] sm:$0xff] %v8834_v56  ;;  %v8838_v21 = vpack.c.bf16 %v553_v44, %v551_v31  ;;  %v555_v8 = vld [vmem:[#allocation10 + $0x188] sm:$0xff]  ;;  %v561_v44 = vld [vmem:[#allocation10 + $0x1b8] sm:$0xff]  ;;  %v8858_v18 = vpack.c.bf16 %v564_v23, %v562_v20  ;;  %v9695_v20 = vsub.s32 0, %v8620_v27 }
 0x3ef   : > { %6678 = vmatpush1.bf16.msra.mxu0 %v8780_v35  ;;  %9680 = vst [vmem:[#allocation50_spill] sm:$0xff] %v8826_v63  ;;  %v8844_v30 = vpack.c.bf16 %v557_v22, %v555_v8  ;;  %9687 = vst [vmem:[#allocation57_spill] sm:$0xff] %v8846_v57  ;;  %v559_v31 = vld [vmem:[#allocation10 + $0x1a8] sm:$0xff]  ;;  %v565_v22 = vld [vmem:[#allocation10 + $0x1d8] sm:$0xff] }
 0x3f0   : > { %6680 = vmatprep.subr.bf16.mxu0 %v8784_v19  ;;  %9684 = vst [vmem:[#allocation54_spill] sm:$0xff] %v8838_v21  ;;  %v8850_v53 = vpack.c.bf16 %v561_v44, %v559_v31  ;;  %v563_v8 = vld [vmem:[#allocation10 + $0x1c8] sm:$0xff]  ;;  %9691 = vst [vmem:[#allocation61_spill] sm:$0xff] %v8858_v18  ;;  %v569_v44 = vld [vmem:[#allocation10 + $0x1f8] sm:$0xff] }
 0x3f1   : > { %9686 = vst [vmem:[#allocation56_spill] sm:$0xff] %v8844_v30  ;;  %v8856_v62 = vpack.c.bf16 %v565_v22, %v563_v8  ;;  %v567_v31 = vld [vmem:[#allocation10 + $0x1e8] sm:$0xff]  ;;  %v3682_v23 = vld [vmem:[%s9539_s10] sm:$0x3]  ;;  %v9694_v8 = vsub.s32 1, %v8620_v27 }
 0x3f2   : > { %9688 = vst [vmem:[#allocation58_spill] sm:$0xff] %v8850_v53  ;;  %v8862_v47 = vpack.c.bf16 %v569_v44, %v567_v31  ;;  %v3687_v31 = vrot.slane %v3682_v23, %v9695_v20  ;;  %v2558_v20 = vld [vmem:[#allocation8 + $0x8] sm:$0xff] }
 0x3f3   : > { %6682 = vmatpush1.bf16.msra.mxu0 %v8786_v28  ;;  %9690 = vst [vmem:[#allocation60_spill] sm:$0xff] %v8856_v62  ;;  %v3691_v22 = vrot.slane %v3682_v23, %v9694_v8  ;;  %v2557_v8 = vld [vmem:[#allocation8] sm:$0xff] }
 0x3f4   : > { %6684 = vmatprep.subr.bf16.mxu0 %v8790_v34  ;;  %9692 = vst [vmem:[#allocation62_spill] sm:$0xff] %v8862_v47 }
 0x3f7   : > { %6686 = vmatpush1.bf16.msra.mxu0 %v8792_v45 }
 0x3f8   : > { %6688 = vmatprep.subr.bf16.mxu0 %v8796_v55 }
 0x3fb   : > { %6690 = vmatpush1.bf16.msra.mxu0 %v8798_v1 }
 0x3fc   : > { %6692 = vmatprep.subr.bf16.mxu0 %v8802_v10 }
 0x3ff   : > { %6694 = vmatpush1.bf16.msra.mxu0 %v8804_v16 }
 0x400   : > { %6696 = vmatprep.subr.bf16.mxu0 %v8808_v26 }
 0x403   : > { %6698 = vmatpush1.bf16.msra.mxu0 %v8810_v38 }
 0x404   : > { %6700 = vmatprep.subr.bf16.mxu0 %v8814_v33 }
 0x407   : > { %6702 = vmatpush1.bf16.msra.mxu0 %v8816_v25 }
 0x408   : > { %6704 = vmatprep.subr.bf16.mxu0 %v8820_v12 }
 0x40b   : > { %6706 = vmatpush1.bf16.msra.mxu0 %v8822_v29 }
 0x40c   : > { %6708 = vmatprep.subr.bf16.mxu0 %v8826_v63 }
 0x40f   : > { %6710 = vmatpush1.bf16.msra.mxu0 %v8828_v14 }
 0x410   : > { %6712 = vmatprep.subr.bf16.mxu0 %v8832_v17 }
 0x413   : > { %6714 = vmatpush1.bf16.msra.mxu0 %v8834_v56 }
 0x414   : > { %6716 = vmatprep.subr.bf16.mxu0 %v8838_v21 }
 0x417   : > { %6718 = vmatpush1.bf16.msra.mxu0 %v8840_v40 }
 0x418   : > { %6720 = vmatprep.subr.bf16.mxu0 %v8844_v30 }
 0x41b   : > { %6722 = vmatpush1.bf16.msra.mxu0 %v8846_v57 }
 0x41c   : > { %6724 = vmatprep.subr.bf16.mxu0 %v8850_v53 }
 0x41f   : > { %6726 = vmatpush1.bf16.msra.mxu0 %v8852_v43 }
 0x420   : > { %6728 = vmatprep.subr.bf16.mxu0 %v8856_v62 }
 0x423   : > { %6730 = vmatpush1.bf16.msra.mxu0 %v8858_v18 }
 0x424   : > { %6732 = vmatprep.subr.bf16.mxu0 %v8862_v47 }
 0x427   : > { %6734 = vmatpush1.bf16.msra.mxu0 %v8864_v5 }
 0x428   : > { %6800 = vmatprep.subr.bf16.mxu0 %v8771_v61 }
 0x4bd   : > { %v4491_v44 = vpop.f32.mrb[12].mxu0 }
 0x4be   : > { %v4493_v6 = vpop.f32.mrb[13].mxu0  ;;  %v8878_v41 = vadd.f32 %v4491_v44, %v3687_v31 }
 0x4bf   : > { %v8876_v9 = vadd.f32 %v4493_v6, %v3691_v22  ;;  %v4495_v58 = vpop.f32.mrb[14].mxu0  ;;  %v8950_v6 = vstv %s503_s15 }
 0x4c0   : > { %9697 = vst [vmem:[#allocation65_spill] sm:$0xff] %v8878_v41  ;;  %v4496_v50 = vpop.f32.mrb[15].mxu0  ;;  %v2560_v23 = vmul.f32 %v8950_v6, %v8758_v49  ;;  %v2561_v22 = vmul.f32 %v8950_v6, %v8760_v37 }
 0x4c1   : > { %9696 = vst [vmem:[#allocation64_spill] sm:$0xff] %v8876_v9  ;;  %4562 = vmatprep.mubr.f32.mxu1 %v8876_v9 }
 0x4c2   : > { %4563 = vmatmul.mubr.f32.vlgmr.msra.gmra.mrb[24].mxu1 %v8878_v41 }
 0x4c3   : > { %6482 = vmatpush1.bf16.msra.mxu1 %v8773_v2  ;;  %4635 = vmatprep.mubr.f32.mxu1 %v8876_v9  ;;  %v2562_v9 = vadd.f32 %v2560_v23, %v2557_v8  ;;  %v9703_v8 = vld [vmem:[#allocation40_spill] sm:$0xff] }
 0x4c4   : > { %6484 = vmatprep.subr.bf16.mxu1 %v8778_v11 }
 0x4c7   : > { %6486 = vmatpush1.bf16.msra.mxu1 %v8780_v35 }
 0x4c8   : > { %6488 = vmatprep.subr.bf16.mxu1 %v8784_v19 }
 0x4cb   : > { %6490 = vmatpush1.bf16.msra.mxu1 %v8786_v28 }
 0x4cc   : > { %6492 = vmatprep.subr.bf16.mxu1 %v8790_v34 }
 0x4cf   : > { %6494 = vmatpush1.bf16.msra.mxu1 %v8792_v45 }
 0x4d0   : > { %6496 = vmatprep.subr.bf16.mxu1 %v8796_v55 }
 0x4d3   : > { %6498 = vmatpush1.bf16.msra.mxu1 %v8798_v1 }
 0x4d4   : > { %6500 = vmatprep.subr.bf16.mxu1 %v8802_v10 }
 0x4d7   : > { %6502 = vmatpush1.bf16.msra.mxu1 %v8804_v16 }
 0x4d8   : > { %6504 = vmatprep.subr.bf16.mxu1 %v8808_v26 }
 0x4db   : > { %6506 = vmatpush1.bf16.msra.mxu1 %v8810_v38 }
 0x4dc   : > { %6508 = vmatprep.subr.bf16.mxu1 %v8814_v33 }
 0x4df   : > { %6510 = vmatpush1.bf16.msra.mxu1 %v8816_v25 }
 0x4e0   : > { %6512 = vmatprep.subr.bf16.mxu1 %v8820_v12 }
 0x4e3   : > { %6514 = vmatpush1.bf16.msra.mxu1 %v8822_v29 }
 0x4e4   : > { %6516 = vmatprep.subr.bf16.mxu1 %v8826_v63 }
 0x4e7   : > { %6518 = vmatpush1.bf16.msra.mxu1 %v8828_v14 }
 0x4e8   : > { %6520 = vmatprep.subr.bf16.mxu1 %v8832_v17 }
 0x4eb   : > { %6522 = vmatpush1.bf16.msra.mxu1 %v8834_v56 }
 0x4ec   : > { %6524 = vmatprep.subr.bf16.mxu1 %v8838_v21 }
 0x4ef   : > { %6526 = vmatpush1.bf16.msra.mxu1 %v8840_v40 }
 0x4f0   : > { %6528 = vmatprep.subr.bf16.mxu1 %v8844_v30 }
 0x4f3   : > { %6530 = vmatpush1.bf16.msra.mxu1 %v8846_v57 }
 0x4f4   : > { %6532 = vmatprep.subr.bf16.mxu1 %v8850_v53 }
 0x4f7   : > { %6534 = vmatpush1.bf16.msra.mxu1 %v8852_v43 }
 0x4f8   : > { %6536 = vmatprep.subr.bf16.mxu1 %v8856_v62 }
 0x4fb   : > { %6538 = vmatpush1.bf16.msra.mxu1 %v8858_v18 }
 0x4fc   : > { %6540 = vmatprep.subr.bf16.mxu1 %v8862_v47 }
 0x4ff   : > { %6542 = vmatpush1.bf16.msra.mxu1 %v8864_v5 }
 0x500   : > { %6544 = vmatprep.subr.bf16.mxu1 %v8771_v61 }
 0x502   : > { %4636 = vmatmul.mubr.f32.vlgmr.msra.gmra.mrb[26].mxu1 %v8878_v41 }
 0x503   : > { %6546 = vmatpush1.bf16.msra.mxu1 %v8773_v2 }
 0x504   : > { %6548 = vmatprep.subr.bf16.mxu1 %v8778_v11 }
 0x507   : > { %6550 = vmatpush1.bf16.msra.mxu1 %v8780_v35 }
 0x508   : > { %6552 = vmatprep.subr.bf16.mxu1 %v8784_v19 }
 0x50b   : > { %6554 = vmatpush1.bf16.msra.mxu1 %v8786_v28 }
 0x50c   : > { %6556 = vmatprep.subr.bf16.mxu1 %v8790_v34 }
 0x50f   : > { %6558 = vmatpush1.bf16.msra.mxu1 %v8792_v45 }
 0x510   : > { %6560 = vmatprep.subr.bf16.mxu1 %v8796_v55 }
 0x513   : > { %6562 = vmatpush1.bf16.msra.mxu1 %v8798_v1 }
 0x514   : > { %6564 = vmatprep.subr.bf16.mxu1 %v8802_v10 }
 0x517   : > { %6566 = vmatpush1.bf16.msra.mxu1 %v8804_v16 }
 0x518   : > { %6568 = vmatprep.subr.bf16.mxu1 %v8808_v26 }
 0x51b   : > { %6570 = vmatpush1.bf16.msra.mxu1 %v8810_v38 }
 0x51c   : > { %6572 = vmatprep.subr.bf16.mxu1 %v8814_v33 }
 0x51f   : > { %6574 = vmatpush1.bf16.msra.mxu1 %v8816_v25 }
 0x520   : > { %6576 = vmatprep.subr.bf16.mxu1 %v8820_v12 }
 0x523   : > { %6578 = vmatpush1.bf16.msra.mxu1 %v8822_v29 }
 0x524   : > { %6580 = vmatprep.subr.bf16.mxu1 %v8826_v63 }
 0x527   : > { %6582 = vmatpush1.bf16.msra.mxu1 %v8828_v14 }
 0x528   : > { %6584 = vmatprep.subr.bf16.mxu1 %v8832_v17 }
 0x52b   : > { %6586 = vmatpush1.bf16.msra.mxu1 %v8834_v56 }
 0x52c   : > { %6588 = vmatprep.subr.bf16.mxu1 %v8838_v21 }
 0x52f   : > { %6590 = vmatpush1.bf16.msra.mxu1 %v8840_v40 }
 0x530   : > { %6592 = vmatprep.subr.bf16.mxu1 %v8844_v30 }
 0x533   : > { %6594 = vmatpush1.bf16.msra.mxu1 %v8846_v57 }
 0x534   : > { %6596 = vmatprep.subr.bf16.mxu1 %v8850_v53 }
 0x537   : > { %6598 = vmatpush1.bf16.msra.mxu1 %v8852_v43 }
 0x538   : > { %6600 = vmatprep.subr.bf16.mxu1 %v8856_v62 }
 0x53b   : > { %6602 = vmatpush1.bf16.msra.mxu1 %v8858_v18 }
 0x53c   : > { %6604 = vmatprep.subr.bf16.mxu1 %v8862_v47 }
 0x53f   : > { %6606 = vmatpush1.bf16.msra.mxu1 %v8864_v5  ;;  %v2563_v5 = vadd.f32 %v2561_v22, %v2558_v20  ;;  %v9704_v22 = vld [vmem:[#allocation41_spill] sm:$0xff]  ;;  %v9705_v20 = vld [vmem:[#allocation42_spill] sm:$0xff] }
 0x540   : > { %6608 = vmatprep.subr.bf16.mxu1 %v8662_v32 }
 0x595   : > { %v4564_v27 = vpop.f32.mrb[24].mxu1 }
 0x596   : > { %v4566_v50 = vpop.f32.mrb[25].mxu1  ;;  %v4569_v31 = vmul.f32 %v4564_v27, %v8950_v6 }
 0x597   : > { %v4570_v44 = vmul.f32 %v4566_v50, %v8950_v6 }
 0x5d5   : > { %v4637_v58 = vpop.f32.mrb[26].mxu1 }
 0x5d6   : > { %v4638_v41 = vadd.f32 %v4637_v58, %v4569_v31  ;;  %v4639_v61 = vpop.f32.mrb[27].mxu1  ;;  %v9706_v31 = vld [vmem:[#allocation43_spill] sm:$0xff]  ;;  %v9708_v58 = vld [vmem:[#allocation45_spill] sm:$0xff] }
 0x5d7   : > { %v4640_v47 = vadd.f32 %v4639_v61, %v4570_v44  ;;  %v9700_v61 = vld [vmem:[#allocation37_spill] sm:$0xff]  ;;  %v9707_v44 = vld [vmem:[#allocation44_spill] sm:$0xff] }
 0x5d8   : > { %v8958_v18 = vsub.f32 %v4638_v41, %v2562_v9  ;;  %v9698_v41 = vld [vmem:[#allocation35_spill] sm:$0xff] }
 0x5d9   : > { %v8960_v62 = vsub.f32 %v4640_v47, %v2563_v5  ;;  %v9699_v5 = vld [vmem:[#allocation36_spill] sm:$0xff]  ;;  %v9701_v47 = vld [vmem:[#allocation38_spill] sm:$0xff]  ;;  %v9702_v9 = vld [vmem:[#allocation39_spill] sm:$0xff] }
 0x5da   : > { %v4646_v49 = vmul.f32 %v8958_v18, %v8958_v18  ;;  %v8970_v50 = vsub.f32 0.0, %v8958_v18 }
 0x5db   : > { %v8965_v37 = vsub.f32 0.0, %v8960_v62  ;;  %v4647_v27 = vmul.f32 %v8960_v62, %v8960_v62 }
 0x5dd   : > { %4715 = vmatprep.mubr.f32.mxu1 %v8965_v37  ;;  %v4648_v23 = vadd.f32 %v4647_v27, %v4646_v49  ;;  %v9709_v49 = vld [vmem:[#allocation46_spill] sm:$0xff]  ;;  %v9710_v27 = vld [vmem:[#allocation47_spill] sm:$0xff] }
 0x5de   : > { %4716 = vmatmul.mubr.f32.vlgmr.msra.gmra.mrb[28].mxu1 %v8970_v50 }
 0x5df   : > { %6610 = vmatpush1.bf16.msra.mxu1 %v8664_v39  ;;  %4649 = vadd.xlane.f32.xlu1 %v4648_v23  ;;  %v9711_v23 = vld [vmem:[#allocation48_spill] sm:$0xff] }
 0x5e0   : > { %4786 = vmatprep.mubr.f32.mxu1 %v8965_v37  ;;  %6612 = vmatprep.subr.bf16.mxu1 %v8666_v0 }
 0x5e3   : > { %6614 = vmatpush1.bf16.msra.mxu1 %v8670_v46 }
 0x5e4   : > { %6616 = vmatprep.subr.bf16.mxu1 %v8673_v48 }
 0x5e7   : > { %6618 = vmatpush1.bf16.msra.mxu1 %v8676_v51 }
 0x5e8   : > { %6620 = vmatprep.subr.bf16.mxu1 %v8679_v54 }
 0x5eb   : > { %6622 = vmatpush1.bf16.msra.mxu1 %v8682_v59 }
 0x5ec   : > { %6624 = vmatprep.subr.bf16.mxu1 %v8685_v60 }
 0x5ef   : > { %6626 = vmatpush1.bf16.msra.mxu1 %v8688_v3 }
 0x5f0   : > { %6628 = vmatprep.subr.bf16.mxu1 %v8691_v7 }
 0x5f3   : > { %6630 = vmatpush1.bf16.msra.mxu1 %v8694_v13 }
 0x5f4   : > { %6632 = vmatprep.subr.bf16.mxu1 %v8697_v15 }
 0x5f7   : > { %6634 = vmatpush1.bf16.msra.mxu1 %v8700_v52 }
 0x5f8   : > { %6636 = vmatprep.subr.bf16.mxu1 %v8703_v24 }
 0x5fb   : > { %6638 = vmatpush1.bf16.msra.mxu1 %v8706_v36 }
 0x5fc   : > { %6640 = vmatprep.subr.bf16.mxu1 %v8709_v42 }
 0x5ff   : > { %6642 = vmatpush1.bf16.msra.mxu1 %v8712_v4 }
 0x600   : > { %6644 = vmatprep.subr.bf16.mxu1 %v9698_v41 }
 0x603   : > { %6646 = vmatpush1.bf16.msra.mxu1 %v9699_v5 }
 0x604   : > { %6648 = vmatprep.subr.bf16.mxu1 %v9700_v61 }
 0x607   : > { %6650 = vmatpush1.bf16.msra.mxu1 %v9701_v47 }
 0x608   : > { %6652 = vmatprep.subr.bf16.mxu1 %v9702_v9 }
 0x60b   : > { %6654 = vmatpush1.bf16.msra.mxu1 %v9703_v8 }
 0x60c   : > { %6656 = vmatprep.subr.bf16.mxu1 %v9704_v22 }
 0x60f   : > { %6658 = vmatpush1.bf16.msra.mxu1 %v9705_v20 }
 0x610   : > { %6660 = vmatprep.subr.bf16.mxu1 %v9706_v31 }
 0x613   : > { %6662 = vmatpush1.bf16.msra.mxu1 %v9707_v44 }
 0x614   : > { %6664 = vmatprep.subr.bf16.mxu1 %v9708_v58 }
 0x617   : > { %6666 = vmatpush1.bf16.msra.mxu1 %v9709_v49 }
 0x618   : > { %6668 = vmatprep.subr.bf16.mxu1 %v9710_v27 }
 0x61b   : > { %6670 = vmatpush1.bf16.msra.mxu1 %v9711_v23 }
 0x61c   : > { %6736 = vmatprep.subr.bf16.mxu1 %v8662_v32 }
 0x61e   : > { %4787 = vmatmul.mubr.f32.vlgmr.msra.gmra.mrb[30].mxu1 %v8970_v50 }
 0x61f   : > { %6738 = vmatpush1.bf16.msra.mxu1 %v8664_v39 }
 0x620   : > { %6740 = vmatprep.subr.bf16.mxu1 %v8666_v0 }
 0x623   : > { %6742 = vmatpush1.bf16.msra.mxu1 %v8670_v46 }
 0x624   : > { %6744 = vmatprep.subr.bf16.mxu1 %v8673_v48 }
 0x627   : > { %6746 = vmatpush1.bf16.msra.mxu1 %v8676_v51 }
 0x628   : > { %6748 = vmatprep.subr.bf16.mxu1 %v8679_v54 }
 0x62b   : > { %6750 = vmatpush1.bf16.msra.mxu1 %v8682_v59 }
 0x62c   : > { %6752 = vmatprep.subr.bf16.mxu1 %v8685_v60 }
 0x62f   : > { %6754 = vmatpush1.bf16.msra.mxu1 %v8688_v3 }
 0x630   : > { %6756 = vmatprep.subr.bf16.mxu1 %v8691_v7 }
 0x633   : > { %6758 = vmatpush1.bf16.msra.mxu1 %v8694_v13 }
 0x634   : > { %6760 = vmatprep.subr.bf16.mxu1 %v8697_v15 }
 0x637   : > { %6762 = vmatpush1.bf16.msra.mxu1 %v8700_v52 }
 0x638   : > { %6764 = vmatprep.subr.bf16.mxu1 %v8703_v24 }
 0x63b   : > { %6766 = vmatpush1.bf16.msra.mxu1 %v8706_v36 }
 0x63c   : > { %6768 = vmatprep.subr.bf16.mxu1 %v8709_v42 }
 0x63f   : > { %6770 = vmatpush1.bf16.msra.mxu1 %v8712_v4 }
 0x640   : > { %6772 = vmatprep.subr.bf16.mxu1 %v9698_v41 }
 0x643   : > { %6774 = vmatpush1.bf16.msra.mxu1 %v9699_v5 }
 0x644   : > { %6776 = vmatprep.subr.bf16.mxu1 %v9700_v61 }
 0x647   : > { %6778 = vmatpush1.bf16.msra.mxu1 %v9701_v47 }
 0x648   : > { %6780 = vmatprep.subr.bf16.mxu1 %v9702_v9 }
 0x64b   : > { %6782 = vmatpush1.bf16.msra.mxu1 %v9703_v8 }
 0x64c   : > { %6784 = vmatprep.subr.bf16.mxu1 %v9704_v22 }
 0x64f   : > { %6786 = vmatpush1.bf16.msra.mxu1 %v9705_v20 }
 0x650   : > { %6788 = vmatprep.subr.bf16.mxu1 %v9706_v31 }
 0x653   : > { %6790 = vmatpush1.bf16.msra.mxu1 %v9707_v44 }
 0x654   : > { %6792 = vmatprep.subr.bf16.mxu1 %v9708_v58 }
 0x657   : > { %6794 = vmatpush1.bf16.msra.mxu1 %v9709_v49 }
 0x658   : > { %6796 = vmatprep.subr.bf16.mxu1 %v9710_v27 }
 0x65b   : > { %6798 = vmatpush1.bf16.msra.mxu1 %v9711_v23 }
 0x65c   : > { %6864 = vmatprep.subr.bf16.mxu1 %v8662_v32 }
 0x66c   : > { %v4650_v47 = vpop.xlane.xlu1 %4649 }
 0x6b1   : > { %v4717_v43 = vpop.f32.mrb[28].mxu1 }
 0x6b2   : > { %v4793_v53 = vmul.f32 %v4717_v43, %v8970_v50  ;;  %v4719_v57 = vpop.f32.mrb[29].mxu1 }
 0x6b3   : > { %v4794_v20 = vmul.f32 %v4719_v57, %v8965_v37 }
 0x6b5   : > { %v4795_v22 = vadd.f32 %v4794_v20, %v4793_v53 }
 0x6f1   : > { %v4788_v31 = vpop.f32.mrb[30].mxu1 }
 0x6f2   : > { %v4798_v44 = vmul.f32 %v4788_v31, %v8970_v50  ;;  %v4811_v58 = vmul.f32 %v4788_v31, %v8950_v6  ;;  %v4790_v30 = vpop.f32.mrb[31].mxu1 }
 0x6f3   : > { %v4799_v49 = vmul.f32 %v4790_v30, %v8965_v37  ;;  %v4812_v27 = vmul.f32 %v4790_v30, %v8950_v6 }
 0x6f4   : > { %v4813_v23 = vadd.f32 %v4811_v58, %v4717_v43 }
 0x6f5   : > { %v4814_v8 = vadd.f32 %v4812_v27, %v4719_v57  ;;  %v4800_v32 = vadd.f32 %v4799_v49, %v4798_v44  ;;  %v9713_v49 = vld [vmem:[#allocation53_spill] sm:$0xff]  ;;  %v9714_v27 = vld [vmem:[#allocation38_spill] sm:$0xff] }
 0x6f7   : > { %4801 = vadd.xlane.f32.xlu0 %v4800_v32 }
 0x6fb   : > { %4796 = vadd.xlane.f32.xlu0 %v4795_v22 }
 0x784   : > { %v4802_v40 = vpop.xlane.xlu0 %4801 }
 0x785   : > { %v4803_v9 = vmul.f32 %v4802_v40, %v8950_v6 }
 0x788   : > { %v4797_v21 = vpop.xlane.xlu0 %4796 }
 0x789   : > { %v4804_v53 = vadd.f32 %v4803_v9, %v4797_v21 }
 0x78b   : > { %7857 = vrcp.f32 %v4804_v53  ;;  %v9716_v53 = vld [vmem:[#allocation39_spill] sm:$0xff] }
 0x78c   : > { %7859 = vrcp.f32 %v4650_v47 }
 0x795   : > { %v7858_v20 = vpop.eup %7857 }
 0x796   : > { %v9047_v56 = vmul.f32 %v7858_v20, %v4650_v47  ;;  %v7860_v30 = vpop.eup %7859  ;;  %v9712_v47 = vld [vmem:[#allocation37_spill] sm:$0xff]  ;;  %v9717_v20 = vld [vmem:[#allocation55_spill] sm:$0xff] }
 0x798   : > { %v4815_v31 = vmul.f32 %v4813_v23, %v9047_v56  ;;  %v4816_v61 = vmul.f32 %v4814_v8, %v9047_v56  ;;  %v9715_v23 = vld [vmem:[#allocation54_spill] sm:$0xff] }
 0x79a   : > { %v9052_v43 = vadd.f32 %v4815_v31, %v8958_v18  ;;  %v9055_v32 = vadd.f32 %v4816_v61, %v8960_v62  ;;  %v9718_v31 = vld [vmem:[#allocation40_spill] sm:$0xff] }
 0x79c   : > { %v4819_v57 = vmul.f32 %v9052_v43, %v9052_v43  ;;  %v4820_v40 = vmul.f32 %v9055_v32, %v9055_v32  ;;  %v4826_v18 = vsub.f32 0.0, %v9052_v43  ;;  %v4827_v22 = vsub.f32 0.0, %v9055_v32 }
 0x79e   : > { %v4821_v21 = vadd.f32 %v4820_v40, %v4819_v57  ;;  %v9719_v57 = vld [vmem:[#allocation56_spill] sm:$0xff]  ;;  %v9720_v40 = vld [vmem:[#allocation41_spill] sm:$0xff] }
 0x7a0   : > { %4822 = vadd.xlane.f32.xlu1 %v4821_v21  ;;  %v9721_v21 = vld [vmem:[#allocation57_spill] sm:$0xff] }
 0x82d   : > { %v9061_v9 = vpop.xlane.xlu1 %4822 }
 0x82e   : > { %v4825_v8 = vmul.f32 %v7860_v30, %v9061_v9  ;;  %v9722_v30 = vld [vmem:[#allocation42_spill] sm:$0xff] }
 0x830   : > { %v4828_v62 = vmul.f32 %v4825_v8, %v8970_v50  ;;  %v4829_v61 = vmul.f32 %v4825_v8, %v8965_v37  ;;  %v9723_v8 = vld [vmem:[#allocation58_spill] sm:$0xff] }
 0x832   : > { %v9068_v44 = vadd.f32 %v4828_v62, %v4826_v18  ;;  %v9070_v58 = vadd.f32 %v4829_v61, %v4827_v22  ;;  %v9724_v18 = vld [vmem:[#allocation43_spill] sm:$0xff]  ;;  %v9726_v62 = vld [vmem:[#allocation44_spill] sm:$0xff] }
 0x833   : > { %v9725_v22 = vld [vmem:[#allocation59_spill] sm:$0xff]  ;;  %v9727_v61 = vld [vmem:[#allocation60_spill] sm:$0xff] }
 0x834   : > { %4896 = vmatprep.mubr.f32.mxu0 %v9070_v58  ;;  %4967 = vmatprep.mubr.f32.mxu1 %v9070_v58 }
 0x835   : > { %4897 = vmatmul.mubr.f32.vlgmr.msra.gmra.mrb[16].mxu0 %v9068_v44  ;;  %4968 = vmatmul.mubr.f32.vlgmr.msra.gmra.mrb[32].mxu1 %v9068_v44 }
 0x836   : > { %6802 = vmatpush1.bf16.msra.mxu0 %v8773_v2  ;;  %6866 = vmatpush1.bf16.msra.mxu1 %v8664_v39 }
 0x837   : > { %6804 = vmatprep.subr.bf16.mxu0 %v8778_v11  ;;  %6868 = vmatprep.subr.bf16.mxu1 %v8666_v0 }
 0x83a   : > { %6806 = vmatpush1.bf16.msra.mxu0 %v8780_v35  ;;  %6870 = vmatpush1.bf16.msra.mxu1 %v8670_v46 }
 0x83b   : > { %6808 = vmatprep.subr.bf16.mxu0 %v8784_v19  ;;  %6872 = vmatprep.subr.bf16.mxu1 %v8673_v48 }
 0x83e   : > { %6810 = vmatpush1.bf16.msra.mxu0 %v8786_v28  ;;  %6874 = vmatpush1.bf16.msra.mxu1 %v8676_v51 }
 0x83f   : > { %6812 = vmatprep.subr.bf16.mxu0 %v8790_v34  ;;  %6876 = vmatprep.subr.bf16.mxu1 %v8679_v54 }
 0x842   : > { %6814 = vmatpush1.bf16.msra.mxu0 %v8792_v45  ;;  %6878 = vmatpush1.bf16.msra.mxu1 %v8682_v59 }
 0x843   : > { %6816 = vmatprep.subr.bf16.mxu0 %v8796_v55  ;;  %6880 = vmatprep.subr.bf16.mxu1 %v8685_v60 }
 0x846   : > { %6818 = vmatpush1.bf16.msra.mxu0 %v8798_v1  ;;  %6882 = vmatpush1.bf16.msra.mxu1 %v8688_v3 }
 0x847   : > { %6820 = vmatprep.subr.bf16.mxu0 %v8802_v10  ;;  %6884 = vmatprep.subr.bf16.mxu1 %v8691_v7 }
 0x84a   : > { %6822 = vmatpush1.bf16.msra.mxu0 %v8804_v16  ;;  %6886 = vmatpush1.bf16.msra.mxu1 %v8694_v13 }
 0x84b   : > { %6824 = vmatprep.subr.bf16.mxu0 %v8808_v26  ;;  %6888 = vmatprep.subr.bf16.mxu1 %v8697_v15 }
 0x84e   : > { %6826 = vmatpush1.bf16.msra.mxu0 %v8810_v38  ;;  %6890 = vmatpush1.bf16.msra.mxu1 %v8700_v52 }
 0x84f   : > { %6828 = vmatprep.subr.bf16.mxu0 %v8814_v33  ;;  %6892 = vmatprep.subr.bf16.mxu1 %v8703_v24 }
 0x852   : > { %6830 = vmatpush1.bf16.msra.mxu0 %v8816_v25  ;;  %6894 = vmatpush1.bf16.msra.mxu1 %v8706_v36 }
 0x853   : > { %6832 = vmatprep.subr.bf16.mxu0 %v8820_v12  ;;  %6896 = vmatprep.subr.bf16.mxu1 %v8709_v42 }
 0x856   : > { %6834 = vmatpush1.bf16.msra.mxu0 %v8822_v29  ;;  %6898 = vmatpush1.bf16.msra.mxu1 %v8712_v4 }
 0x857   : > { %6836 = vmatprep.subr.bf16.mxu0 %v8826_v63  ;;  %6900 = vmatprep.subr.bf16.mxu1 %v9698_v41 }
 0x85a   : > { %6838 = vmatpush1.bf16.msra.mxu0 %v8828_v14  ;;  %6902 = vmatpush1.bf16.msra.mxu1 %v9699_v5  ;;  %v4808_v14 = vmul.f32 %v9047_v56, %v8965_v37 }
 0x85b   : > { %6840 = vmatprep.subr.bf16.mxu0 %v8832_v17  ;;  %6904 = vmatprep.subr.bf16.mxu1 %v9712_v47 }
 0x85e   : > { %6842 = vmatpush1.bf16.msra.mxu0 %v9713_v49  ;;  %6906 = vmatpush1.bf16.msra.mxu1 %v9714_v27 }
 0x85f   : > { %6844 = vmatprep.subr.bf16.mxu0 %v9715_v23  ;;  %6908 = vmatprep.subr.bf16.mxu1 %v9716_v53 }
 0x862   : > { %6846 = vmatpush1.bf16.msra.mxu0 %v9717_v20  ;;  %6910 = vmatpush1.bf16.msra.mxu1 %v9718_v31  ;;  %v9728_v20 = vld [vmem:[#allocation45_spill] sm:$0xff] }
 0x863   : > { %6848 = vmatprep.subr.bf16.mxu0 %v9719_v57  ;;  %6912 = vmatprep.subr.bf16.mxu1 %v9720_v40  ;;  %v9729_v31 = vld [vmem:[#allocation61_spill] sm:$0xff]  ;;  %v9730_v57 = vld [vmem:[#allocation46_spill] sm:$0xff] }
 0x864   : > { %v9731_v40 = vld [vmem:[#allocation62_spill] sm:$0xff] }
 0x866   : > { %6850 = vmatpush1.bf16.msra.mxu0 %v9721_v21  ;;  %6914 = vmatpush1.bf16.msra.mxu1 %v9722_v30  ;;  %v9732_v21 = vld [vmem:[#allocation47_spill] sm:$0xff] }
 0x867   : > { %6852 = vmatprep.subr.bf16.mxu0 %v9723_v8  ;;  %6916 = vmatprep.subr.bf16.mxu1 %v9724_v18  ;;  %v9733_v30 = vld [vmem:[#allocation63_spill] sm:$0xff]  ;;  %v9734_v8 = vld [vmem:[#allocation48_spill] sm:$0xff]  ;;  %v9735_v18 = vld [vmem:[#allocation49_spill] sm:$0xff] }
 0x86a   : > { %6854 = vmatpush1.bf16.msra.mxu0 %v9725_v22  ;;  %6918 = vmatpush1.bf16.msra.mxu1 %v9726_v62  ;;  %v9736_v22 = vld [vmem:[#allocation34_spill] sm:$0xff] }
 0x86b   : > { %6856 = vmatprep.subr.bf16.mxu0 %v9727_v61  ;;  %6920 = vmatprep.subr.bf16.mxu1 %v9728_v20 }
 0x86e   : > { %6858 = vmatpush1.bf16.msra.mxu0 %v9729_v31  ;;  %6922 = vmatpush1.bf16.msra.mxu1 %v9730_v57 }
 0x86f   : > { %6860 = vmatprep.subr.bf16.mxu0 %v9731_v40  ;;  %6924 = vmatprep.subr.bf16.mxu1 %v9732_v21 }
 0x872   : > { %6862 = vmatpush1.bf16.msra.mxu0 %v9733_v30  ;;  %6926 = vmatpush1.bf16.msra.mxu1 %v9734_v8 }
 0x873   : > { %6928 = vmatprep.subr.bf16.mxu0 %v9735_v18  ;;  %6992 = vmatprep.subr.bf16.mxu1 %v9736_v22 }
 0x908   : > { %v4898_v62 = vpop.f32.mrb[16].mxu0  ;;  %v4969_v61 = vpop.f32.mrb[32].mxu1 }
 0x909   : > { %v4974_v20 = vmul.f32 %v4898_v62, %v9068_v44  ;;  %v4979_v31 = vmul.f32 %v4969_v61, %v9068_v44  ;;  %v4992_v57 = vmul.f32 %v4969_v61, %v8950_v6  ;;  %v4900_v53 = vpop.f32.mrb[17].mxu0  ;;  %v4971_v40 = vpop.f32.mrb[33].mxu1  ;;  %v4807_v61 = vmul.f32 %v9047_v56, %v8970_v50 }
 0x90a   : > { %v4975_v21 = vmul.f32 %v4900_v53, %v9070_v58  ;;  %v4980_v30 = vmul.f32 %v4971_v40, %v9070_v58  ;;  %v4993_v8 = vmul.f32 %v4971_v40, %v8950_v6 }
 0x90b   : > { %v4994_v23 = vadd.f32 %v4992_v57, %v4898_v62 }
 0x90c   : > { %v4995_v18 = vadd.f32 %v4993_v8, %v4900_v53  ;;  %v4981_v27 = vadd.f32 %v4980_v30, %v4979_v31  ;;  %v4976_v22 = vadd.f32 %v4975_v21, %v4974_v20  ;;  %v9737_v53 = vld [vmem:[#allocation65_spill] sm:$0xff]  ;;  %v9738_v20 = vld [vmem:[#allocation64_spill] sm:$0xff] }
 0x90d   : > { %v4809_v31 = vadd.f32 %v9737_v53, %v4807_v61  ;;  %v9743_v53 = vld [vmem:[#allocation37_spill] sm:$0xff] }
 0x90e   : > { %4982 = vadd.xlane.f32.xlu0 %v4981_v27  ;;  %4977 = vadd.xlane.f32.xlu1 %v4976_v22  ;;  %v4810_v27 = vadd.f32 %v9738_v20, %v4808_v14  ;;  %v9745_v20 = vld [vmem:[#allocation38_spill] sm:$0xff] }
 0x99b   : > { %v4983_v49 = vpop.xlane.xlu0 %4982  ;;  %v4978_v17 = vpop.xlane.xlu1 %4977 }
 0x99c   : > { %v4984_v47 = vmul.f32 %v4983_v49, %v8950_v6 }
 0x99e   : > { %v4985_v5 = vadd.f32 %v4984_v47, %v4978_v17 }
 0x9a0   : > { %7861 = vrcp.f32 %v4985_v5 }
 0x9a1   : > { %7863 = vrcp.f32 %v9061_v9 }
 0x9aa   : > { %v7862_v41 = vpop.eup %7861 }
 0x9ab   : > { %v4987_v57 = vmul.f32 %v7862_v41, %v9061_v9  ;;  %v9739_v9 = vld [vmem:[#allocation35_spill] sm:$0xff] }
 0x9ad   : > { %v4996_v40 = vmul.f32 %v4994_v23, %v4987_v57  ;;  %v4997_v21 = vmul.f32 %v4995_v18, %v4987_v57  ;;  %v4988_v49 = vmul.f32 %v4987_v57, %v9068_v44  ;;  %v4989_v17 = vmul.f32 %v4987_v57, %v9070_v58  ;;  %v7864_v23 = vpop.eup %7863  ;;  %v9742_v57 = vld [vmem:[#allocation52_spill] sm:$0xff] }
 0x9af   : > { %v9157_v5 = vadd.f32 %v4996_v40, %v9052_v43  ;;  %v9160_v50 = vadd.f32 %v4997_v21, %v9055_v32  ;;  %v9162_v56 = vadd.f32 %v4988_v49, %v4809_v31  ;;  %v9164_v37 = vadd.f32 %v4989_v17, %v4810_v27  ;;  %v9744_v31 = vld [vmem:[#allocation53_spill] sm:$0xff]  ;;  %v9746_v27 = vld [vmem:[#allocation54_spill] sm:$0xff]  ;;  %v9747_v40 = vld [vmem:[#allocation39_spill] sm:$0xff] }
 0x9b0   : > { %v9748_v21 = vld [vmem:[#allocation55_spill] sm:$0xff]  ;;  %v9749_v49 = vld [vmem:[#allocation40_spill] sm:$0xff] }
 0x9b1   : > { %v5000_v41 = vmul.f32 %v9157_v5, %v9157_v5  ;;  %v5001_v14 = vmul.f32 %v9160_v50, %v9160_v50  ;;  %v5007_v30 = vsub.f32 0.0, %v9157_v5  ;;  %v5008_v8 = vsub.f32 0.0, %v9160_v50  ;;  %v9750_v17 = vld [vmem:[#allocation56_spill] sm:$0xff] }
 0x9b3   : > { %v5002_v47 = vadd.f32 %v5001_v14, %v5000_v41  ;;  %v9751_v41 = vld [vmem:[#allocation41_spill] sm:$0xff] }
 0x9b4   : > { %v9752_v14 = vld [vmem:[#allocation57_spill] sm:$0xff] }
 0x9b5   : > { %5003 = vadd.xlane.f32.xlu0 %v5002_v47  ;;  %v9753_v47 = vld [vmem:[#allocation42_spill] sm:$0xff] }
 0xa42   : > { %v9171_v43 = vpop.xlane.xlu0 %5003 }
 0xa43   : > { %v5006_v32 = vmul.f32 %v7864_v23, %v9171_v43  ;;  %v9754_v23 = vld [vmem:[#allocation58_spill] sm:$0xff] }
 0xa45   : > { %v5009_v18 = vmul.f32 %v5006_v32, %v9068_v44  ;;  %v5010_v22 = vmul.f32 %v5006_v32, %v9070_v58  ;;  %v9740_v44 = vld [vmem:[#allocation51_spill] sm:$0xff]  ;;  %v9741_v58 = vld [vmem:[#allocation36_spill] sm:$0xff] }
 0xa46   : > { %v9755_v32 = vld [vmem:[#allocation43_spill] sm:$0xff] }
 0xa47   : > { %v9178_v62 = vadd.f32 %v5009_v18, %v5007_v30  ;;  %v9180_v61 = vadd.f32 %v5010_v22, %v5008_v8  ;;  %v9756_v30 = vld [vmem:[#allocation59_spill] sm:$0xff]  ;;  %v9757_v8 = vld [vmem:[#allocation44_spill] sm:$0xff]  ;;  %v9759_v22 = vld [vmem:[#allocation45_spill] sm:$0xff] }
 0xa48   : > { %v9758_v18 = vld [vmem:[#allocation60_spill] sm:$0xff] }
 0xa49   : > { %5077 = vmatprep.mubr.f32.mxu0 %v9180_v61  ;;  %5148 = vmatprep.mubr.f32.mxu1 %v9180_v61 }
 0xa4a   : > { %5078 = vmatmul.mubr.f32.vlgmr.msra.gmra.mrb[18].mxu0 %v9178_v62  ;;  %5149 = vmatmul.mubr.f32.vlgmr.msra.gmra.mrb[34].mxu1 %v9178_v62 }
 0xa4b   : > { %6930 = vmatpush1.bf16.msra.mxu0 %v8773_v2  ;;  %6994 = vmatpush1.bf16.msra.mxu1 %v8664_v39 }
 0xa4c   : > { %6932 = vmatprep.subr.bf16.mxu0 %v8778_v11  ;;  %6996 = vmatprep.subr.bf16.mxu1 %v8666_v0 }
 0xa4f   : > { %6934 = vmatpush1.bf16.msra.mxu0 %v8780_v35  ;;  %6998 = vmatpush1.bf16.msra.mxu1 %v8670_v46 }
 0xa50   : > { %6936 = vmatprep.subr.bf16.mxu0 %v8784_v19  ;;  %7000 = vmatprep.subr.bf16.mxu1 %v8673_v48 }
 0xa53   : > { %6938 = vmatpush1.bf16.msra.mxu0 %v8786_v28  ;;  %7002 = vmatpush1.bf16.msra.mxu1 %v8676_v51 }
 0xa54   : > { %6940 = vmatprep.subr.bf16.mxu0 %v8790_v34  ;;  %7004 = vmatprep.subr.bf16.mxu1 %v8679_v54 }
 0xa57   : > { %6942 = vmatpush1.bf16.msra.mxu0 %v8792_v45  ;;  %7006 = vmatpush1.bf16.msra.mxu1 %v8682_v59 }
 0xa58   : > { %6944 = vmatprep.subr.bf16.mxu0 %v8796_v55  ;;  %7008 = vmatprep.subr.bf16.mxu1 %v8685_v60 }
 0xa5b   : > { %6946 = vmatpush1.bf16.msra.mxu0 %v8798_v1  ;;  %7010 = vmatpush1.bf16.msra.mxu1 %v8688_v3 }
 0xa5c   : > { %6948 = vmatprep.subr.bf16.mxu0 %v8802_v10  ;;  %7012 = vmatprep.subr.bf16.mxu1 %v8691_v7 }
 0xa5f   : > { %6950 = vmatpush1.bf16.msra.mxu0 %v8804_v16  ;;  %7014 = vmatpush1.bf16.msra.mxu1 %v8694_v13 }
 0xa60   : > { %6952 = vmatprep.subr.bf16.mxu0 %v8808_v26  ;;  %7016 = vmatprep.subr.bf16.mxu1 %v8697_v15 }
 0xa63   : > { %6954 = vmatpush1.bf16.msra.mxu0 %v8810_v38  ;;  %7018 = vmatpush1.bf16.msra.mxu1 %v8700_v52 }
 0xa64   : > { %6956 = vmatprep.subr.bf16.mxu0 %v8814_v33  ;;  %7020 = vmatprep.subr.bf16.mxu1 %v8703_v24 }
 0xa67   : > { %6958 = vmatpush1.bf16.msra.mxu0 %v8816_v25  ;;  %7022 = vmatpush1.bf16.msra.mxu1 %v8706_v36 }
 0xa68   : > { %6960 = vmatprep.subr.bf16.mxu0 %v8820_v12  ;;  %7024 = vmatprep.subr.bf16.mxu1 %v8709_v42 }
 0xa6b   : > { %6962 = vmatpush1.bf16.msra.mxu0 %v8822_v29  ;;  %7026 = vmatpush1.bf16.msra.mxu1 %v8712_v4 }
 0xa6c   : > { %6964 = vmatprep.subr.bf16.mxu0 %v8826_v63  ;;  %7028 = vmatprep.subr.bf16.mxu1 %v9739_v9 }
 0xa6f   : > { %6966 = vmatpush1.bf16.msra.mxu0 %v9740_v44  ;;  %7030 = vmatpush1.bf16.msra.mxu1 %v9741_v58 }
 0xa70   : > { %6968 = vmatprep.subr.bf16.mxu0 %v9742_v57  ;;  %7032 = vmatprep.subr.bf16.mxu1 %v9743_v53 }
 0xa73   : > { %6970 = vmatpush1.bf16.msra.mxu0 %v9744_v31  ;;  %7034 = vmatpush1.bf16.msra.mxu1 %v9745_v20 }
 0xa74   : > { %6972 = vmatprep.subr.bf16.mxu0 %v9746_v27  ;;  %7036 = vmatprep.subr.bf16.mxu1 %v9747_v40 }
 0xa77   : > { %6974 = vmatpush1.bf16.msra.mxu0 %v9748_v21  ;;  %7038 = vmatpush1.bf16.msra.mxu1 %v9749_v49  ;;  %v9760_v49 = vld [vmem:[#allocation61_spill] sm:$0xff] }
 0xa78   : > { %6976 = vmatprep.subr.bf16.mxu0 %v9750_v17  ;;  %7040 = vmatprep.subr.bf16.mxu1 %v9751_v41  ;;  %v9761_v17 = vld [vmem:[#allocation46_spill] sm:$0xff] }
 0xa79   : > { %v9762_v41 = vld [vmem:[#allocation62_spill] sm:$0xff] }
 0xa7b   : > { %6978 = vmatpush1.bf16.msra.mxu0 %v9752_v14  ;;  %7042 = vmatpush1.bf16.msra.mxu1 %v9753_v47  ;;  %v9763_v14 = vld [vmem:[#allocation47_spill] sm:$0xff] }
 0xa7c   : > { %6980 = vmatprep.subr.bf16.mxu0 %v9754_v23  ;;  %7044 = vmatprep.subr.bf16.mxu1 %v9755_v32  ;;  %v9764_v47 = vld [vmem:[#allocation63_spill] sm:$0xff]  ;;  %v9765_v23 = vld [vmem:[#allocation48_spill] sm:$0xff]  ;;  %v9766_v32 = vld [vmem:[#allocation49_spill] sm:$0xff] }
 0xa7f   : > { %6982 = vmatpush1.bf16.msra.mxu0 %v9756_v30  ;;  %7046 = vmatpush1.bf16.msra.mxu1 %v9757_v8  ;;  %v9767_v30 = vld [vmem:[#allocation34_spill] sm:$0xff] }
 0xa80   : > { %6984 = vmatprep.subr.bf16.mxu0 %v9758_v18  ;;  %7048 = vmatprep.subr.bf16.mxu1 %v9759_v22 }
 0xa83   : > { %6986 = vmatpush1.bf16.msra.mxu0 %v9760_v49  ;;  %7050 = vmatpush1.bf16.msra.mxu1 %v9761_v17 }
 0xa84   : > { %6988 = vmatprep.subr.bf16.mxu0 %v9762_v41  ;;  %7052 = vmatprep.subr.bf16.mxu1 %v9763_v14 }
 0xa87   : > { %6990 = vmatpush1.bf16.msra.mxu0 %v9764_v47  ;;  %7054 = vmatpush1.bf16.msra.mxu1 %v9765_v23 }
 0xa88   : > { %7056 = vmatprep.subr.bf16.mxu0 %v9766_v32  ;;  %7120 = vmatprep.subr.bf16.mxu1 %v9767_v30 }
 0xb1d   : > { %v5079_v8 = vpop.f32.mrb[18].mxu0  ;;  %v5150_v18 = vpop.f32.mrb[34].mxu1 }
 0xb1e   : > { %v5155_v22 = vmul.f32 %v5079_v8, %v9178_v62  ;;  %v5160_v49 = vmul.f32 %v5150_v18, %v9178_v62  ;;  %v5173_v17 = vmul.f32 %v5150_v18, %v8950_v6  ;;  %v5081_v21 = vpop.f32.mrb[19].mxu0  ;;  %v5152_v41 = vpop.f32.mrb[35].mxu1 }
 0xb1f   : > { %v5156_v14 = vmul.f32 %v5081_v21, %v9180_v61  ;;  %v5161_v47 = vmul.f32 %v5152_v41, %v9180_v61  ;;  %v5174_v23 = vmul.f32 %v5152_v41, %v8950_v6  ;;  %v9771_v41 = vld [vmem:[#allocation36_spill] sm:$0xff] }
 0xb20   : > { %v5175_v40 = vadd.f32 %v5173_v17, %v5079_v8  ;;  %v9777_v8 = vld [vmem:[#allocation39_spill] sm:$0xff] }
 0xb21   : > { %v5176_v32 = vadd.f32 %v5174_v23, %v5081_v21  ;;  %v5162_v27 = vadd.f32 %v5161_v47, %v5160_v49  ;;  %v5157_v30 = vadd.f32 %v5156_v14, %v5155_v22  ;;  %v9772_v14 = vld [vmem:[#allocation52_spill] sm:$0xff]  ;;  %v9773_v47 = vld [vmem:[#allocation37_spill] sm:$0xff]  ;;  %v9778_v22 = vld [vmem:[#allocation55_spill] sm:$0xff] }
 0xb22   : > { %v9774_v23 = vld [vmem:[#allocation53_spill] sm:$0xff] }
 0xb23   : > { %5163 = vadd.xlane.f32.xlu1 %v5162_v27  ;;  %5158 = vadd.xlane.f32.xlu0 %v5157_v30  ;;  %v9776_v30 = vld [vmem:[#allocation54_spill] sm:$0xff] }
 0xbb0   : > { %v5164_v20 = vpop.xlane.xlu1 %5163  ;;  %v5159_v53 = vpop.xlane.xlu0 %5158 }
 0xbb1   : > { %v5165_v31 = vmul.f32 %v5164_v20, %v8950_v6 }
 0xbb3   : > { %v5166_v57 = vadd.f32 %v5165_v31, %v5159_v53 }
 0xbb5   : > { %7865 = vrcp.f32 %v5166_v57 }
 0xbb6   : > { %7867 = vrcp.f32 %v9171_v43 }
 0xbbf   : > { %v7866_v18 = vpop.eup %7865 }
 0xbc0   : > { %v5168_v58 = vmul.f32 %v7866_v18, %v9171_v43  ;;  %v9768_v43 = vld [vmem:[#allocation50_spill] sm:$0xff]  ;;  %v9779_v18 = vld [vmem:[#allocation40_spill] sm:$0xff] }
 0xbc2   : > { %v5177_v44 = vmul.f32 %v5175_v40, %v5168_v58  ;;  %v5178_v9 = vmul.f32 %v5176_v32, %v5168_v58  ;;  %v5169_v63 = vmul.f32 %v5168_v58, %v9178_v62  ;;  %v5170_v17 = vmul.f32 %v5168_v58, %v9180_v61  ;;  %v9775_v32 = vld [vmem:[#allocation38_spill] sm:$0xff] }
 0xbc4   : > { %v9261_v21 = vadd.f32 %v5177_v44, %v9157_v5  ;;  %v9264_v27 = vadd.f32 %v5178_v9, %v9160_v50  ;;  %v9267_v20 = vadd.f32 %v5169_v63, %v9162_v56  ;;  %v9270_v57 = vadd.f32 %v5170_v17, %v9164_v37  ;;  %v7868_v5 = vpop.eup %7867  ;;  %v9780_v17 = vld [vmem:[#allocation56_spill] sm:$0xff] }
 0xbc6   : > { %v5181_v53 = vmul.f32 %v9261_v21, %v9261_v21  ;;  %v5182_v31 = vmul.f32 %v9264_v27, %v9264_v27  ;;  %v5188_v63 = vsub.f32 0.0, %v9261_v21  ;;  %v5189_v56 = vsub.f32 0.0, %v9264_v27 }
 0xbc8   : > { %v5183_v40 = vadd.f32 %v5182_v31, %v5181_v53  ;;  %v9781_v53 = vld [vmem:[#allocation41_spill] sm:$0xff] }
 0xbc9   : > { %v9782_v31 = vld [vmem:[#allocation57_spill] sm:$0xff] }
 0xbca   : > { %5184 = vadd.xlane.f32.xlu1 %v5183_v40  ;;  %v9783_v40 = vld [vmem:[#allocation42_spill] sm:$0xff] }
 0xc57   : > { %v9277_v44 = vpop.xlane.xlu1 %5184 }
 0xc58   : > { %v5187_v50 = vmul.f32 %v7868_v5, %v9277_v44  ;;  %v9784_v5 = vld [vmem:[#allocation58_spill] sm:$0xff] }
 0xc5a   : > { %v5190_v37 = vmul.f32 %v5187_v50, %v9178_v62  ;;  %v5191_v9 = vmul.f32 %v5187_v50, %v9180_v61  ;;  %v9769_v62 = vld [vmem:[#allocation35_spill] sm:$0xff] }
 0xc5b   : > { %v9770_v61 = vld [vmem:[#allocation51_spill] sm:$0xff] }
 0xc5c   : > { %v9284_v58 = vadd.f32 %v5190_v37, %v5188_v63  ;;  %v9286_v49 = vadd.f32 %v5191_v9, %v5189_v56  ;;  %v9785_v50 = vld [vmem:[#allocation43_spill] sm:$0xff]  ;;  %v9787_v56 = vld [vmem:[#allocation44_spill] sm:$0xff]  ;;  %v9789_v9 = vld [vmem:[#allocation45_spill] sm:$0xff] }
 0xc5d   : > { %v9786_v63 = vld [vmem:[#allocation59_spill] sm:$0xff]  ;;  %v9788_v37 = vld [vmem:[#allocation60_spill] sm:$0xff] }
 0xc5e   : > { %5258 = vmatprep.mubr.f32.mxu0 %v9286_v49  ;;  %5329 = vmatprep.mubr.f32.mxu1 %v9286_v49 }
 0xc5f   : > { %5259 = vmatmul.mubr.f32.vlgmr.msra.gmra.mrb[20].mxu0 %v9284_v58  ;;  %5330 = vmatmul.mubr.f32.vlgmr.msra.gmra.mrb[36].mxu1 %v9284_v58 }
 0xc60   : > { %7058 = vmatpush1.bf16.msra.mxu0 %v8773_v2  ;;  %7122 = vmatpush1.bf16.msra.mxu1 %v8664_v39 }
 0xc61   : > { %7060 = vmatprep.subr.bf16.mxu0 %v8778_v11  ;;  %7124 = vmatprep.subr.bf16.mxu1 %v8666_v0 }
 0xc64   : > { %7062 = vmatpush1.bf16.msra.mxu0 %v8780_v35  ;;  %7126 = vmatpush1.bf16.msra.mxu1 %v8670_v46 }
 0xc65   : > { %7064 = vmatprep.subr.bf16.mxu0 %v8784_v19  ;;  %7128 = vmatprep.subr.bf16.mxu1 %v8673_v48 }
 0xc68   : > { %7066 = vmatpush1.bf16.msra.mxu0 %v8786_v28  ;;  %7130 = vmatpush1.bf16.msra.mxu1 %v8676_v51 }
 0xc69   : > { %7068 = vmatprep.subr.bf16.mxu0 %v8790_v34  ;;  %7132 = vmatprep.subr.bf16.mxu1 %v8679_v54 }
 0xc6c   : > { %7070 = vmatpush1.bf16.msra.mxu0 %v8792_v45  ;;  %7134 = vmatpush1.bf16.msra.mxu1 %v8682_v59 }
 0xc6d   : > { %7072 = vmatprep.subr.bf16.mxu0 %v8796_v55  ;;  %7136 = vmatprep.subr.bf16.mxu1 %v8685_v60 }
 0xc70   : > { %7074 = vmatpush1.bf16.msra.mxu0 %v8798_v1  ;;  %7138 = vmatpush1.bf16.msra.mxu1 %v8688_v3 }
 0xc71   : > { %7076 = vmatprep.subr.bf16.mxu0 %v8802_v10  ;;  %7140 = vmatprep.subr.bf16.mxu1 %v8691_v7 }
 0xc74   : > { %7078 = vmatpush1.bf16.msra.mxu0 %v8804_v16  ;;  %7142 = vmatpush1.bf16.msra.mxu1 %v8694_v13 }
 0xc75   : > { %7080 = vmatprep.subr.bf16.mxu0 %v8808_v26  ;;  %7144 = vmatprep.subr.bf16.mxu1 %v8697_v15 }
 0xc78   : > { %7082 = vmatpush1.bf16.msra.mxu0 %v8810_v38  ;;  %7146 = vmatpush1.bf16.msra.mxu1 %v8700_v52 }
 0xc79   : > { %7084 = vmatprep.subr.bf16.mxu0 %v8814_v33  ;;  %7148 = vmatprep.subr.bf16.mxu1 %v8703_v24 }
 0xc7c   : > { %7086 = vmatpush1.bf16.msra.mxu0 %v8816_v25  ;;  %7150 = vmatpush1.bf16.msra.mxu1 %v8706_v36 }
 0xc7d   : > { %7088 = vmatprep.subr.bf16.mxu0 %v8820_v12  ;;  %7152 = vmatprep.subr.bf16.mxu1 %v8709_v42 }
 0xc80   : > { %7090 = vmatpush1.bf16.msra.mxu0 %v8822_v29  ;;  %7154 = vmatpush1.bf16.msra.mxu1 %v8712_v4 }
 0xc81   : > { %7092 = vmatprep.subr.bf16.mxu0 %v9768_v43  ;;  %7156 = vmatprep.subr.bf16.mxu1 %v9769_v62 }
 0xc84   : > { %7094 = vmatpush1.bf16.msra.mxu0 %v9770_v61  ;;  %7158 = vmatpush1.bf16.msra.mxu1 %v9771_v41 }
 0xc85   : > { %7096 = vmatprep.subr.bf16.mxu0 %v9772_v14  ;;  %7160 = vmatprep.subr.bf16.mxu1 %v9773_v47 }
 0xc88   : > { %7098 = vmatpush1.bf16.msra.mxu0 %v9774_v23  ;;  %7162 = vmatpush1.bf16.msra.mxu1 %v9775_v32 }
 0xc89   : > { %7100 = vmatprep.subr.bf16.mxu0 %v9776_v30  ;;  %7164 = vmatprep.subr.bf16.mxu1 %v9777_v8 }
 0xc8c   : > { %7102 = vmatpush1.bf16.msra.mxu0 %v9778_v22  ;;  %7166 = vmatpush1.bf16.msra.mxu1 %v9779_v18  ;;  %v9790_v18 = vld [vmem:[#allocation61_spill] sm:$0xff] }
 0xc8d   : > { %7104 = vmatprep.subr.bf16.mxu0 %v9780_v17  ;;  %7168 = vmatprep.subr.bf16.mxu1 %v9781_v53  ;;  %v9791_v17 = vld [vmem:[#allocation46_spill] sm:$0xff] }
 0xc8e   : > { %v9792_v53 = vld [vmem:[#allocation62_spill] sm:$0xff] }
 0xc90   : > { %7106 = vmatpush1.bf16.msra.mxu0 %v9782_v31  ;;  %7170 = vmatpush1.bf16.msra.mxu1 %v9783_v40  ;;  %v9793_v31 = vld [vmem:[#allocation47_spill] sm:$0xff] }
 0xc91   : > { %7108 = vmatprep.subr.bf16.mxu0 %v9784_v5  ;;  %7172 = vmatprep.subr.bf16.mxu1 %v9785_v50  ;;  %v9794_v40 = vld [vmem:[#allocation63_spill] sm:$0xff]  ;;  %v9795_v5 = vld [vmem:[#allocation48_spill] sm:$0xff]  ;;  %v9796_v50 = vld [vmem:[#allocation49_spill] sm:$0xff] }
 0xc94   : > { %7110 = vmatpush1.bf16.msra.mxu0 %v9786_v63  ;;  %7174 = vmatpush1.bf16.msra.mxu1 %v9787_v56  ;;  %v9797_v63 = vld [vmem:[#allocation34_spill] sm:$0xff] }
 0xc95   : > { %7112 = vmatprep.subr.bf16.mxu0 %v9788_v37  ;;  %7176 = vmatprep.subr.bf16.mxu1 %v9789_v9 }
 0xc98   : > { %7114 = vmatpush1.bf16.msra.mxu0 %v9790_v18  ;;  %7178 = vmatpush1.bf16.msra.mxu1 %v9791_v17 }
 0xc99   : > { %7116 = vmatprep.subr.bf16.mxu0 %v9792_v53  ;;  %7180 = vmatprep.subr.bf16.mxu1 %v9793_v31 }
 0xc9c   : > { %7118 = vmatpush1.bf16.msra.mxu0 %v9794_v40  ;;  %7182 = vmatpush1.bf16.msra.mxu1 %v9795_v5 }
 0xc9d   : > { %7184 = vmatprep.subr.bf16.mxu0 %v9796_v50  ;;  %7248 = vmatprep.subr.bf16.mxu1 %v9797_v63 }
 0xd32   : > { %v5260_v56 = vpop.f32.mrb[20].mxu0  ;;  %v5331_v37 = vpop.f32.mrb[36].mxu1 }
 0xd33   : > { %v5336_v9 = vmul.f32 %v5260_v56, %v9284_v58  ;;  %v5341_v18 = vmul.f32 %v5331_v37, %v9284_v58  ;;  %v5354_v17 = vmul.f32 %v5331_v37, %v8950_v6  ;;  %v5262_v22 = vpop.f32.mrb[21].mxu0  ;;  %v5333_v53 = vpop.f32.mrb[37].mxu1 }
 0xd34   : > { %v5337_v31 = vmul.f32 %v5262_v22, %v9286_v49  ;;  %v5342_v40 = vmul.f32 %v5333_v53, %v9286_v49  ;;  %v5355_v5 = vmul.f32 %v5333_v53, %v8950_v6 }
 0xd35   : > { %v5356_v8 = vadd.f32 %v5354_v17, %v5260_v56 }
 0xd36   : > { %v5357_v50 = vadd.f32 %v5355_v5, %v5262_v22  ;;  %v5343_v30 = vadd.f32 %v5342_v40, %v5341_v18  ;;  %v5338_v63 = vadd.f32 %v5337_v31, %v5336_v9 }
 0xd38   : > { %5344 = vadd.xlane.f32.xlu0 %v5343_v30  ;;  %5339 = vadd.xlane.f32.xlu1 %v5338_v63 }
 0xdc5   : > { %v5345_v32 = vpop.xlane.xlu0 %5344  ;;  %v5340_v47 = vpop.xlane.xlu1 %5339 }
 0xdc6   : > { %v5346_v23 = vmul.f32 %v5345_v32, %v8950_v6 }
 0xdc8   : > { %v5347_v14 = vadd.f32 %v5346_v23, %v5340_v47 }
 0xdca   : > { %7869 = vrcp.f32 %v5347_v14 }
 0xdcb   : > { %7871 = vrcp.f32 %v9277_v44 }
 0xdd4   : > { %v7870_v37 = vpop.eup %7869 }
 0xdd5   : > { %v5349_v41 = vmul.f32 %v7870_v37, %v9277_v44 }
 0xdd7   : > { %v5358_v61 = vmul.f32 %v5356_v8, %v5349_v41  ;;  %v5359_v62 = vmul.f32 %v5357_v50, %v5349_v41  ;;  %v5350_v43 = vmul.f32 %v5349_v41, %v9284_v58  ;;  %v5351_v17 = vmul.f32 %v5349_v41, %v9286_v49 }
 0xdd9   : > { %v9367_v22 = vadd.f32 %v5358_v61, %v9261_v21  ;;  %v9370_v30 = vadd.f32 %v5359_v62, %v9264_v27  ;;  %v9373_v32 = vadd.f32 %v5350_v43, %v9267_v20  ;;  %v9376_v14 = vadd.f32 %v5351_v17, %v9270_v57  ;;  %v7872_v21 = vpop.eup %7871 }
 0xddb   : > { %v5362_v47 = vmul.f32 %v9367_v22, %v9367_v22  ;;  %v5363_v23 = vmul.f32 %v9370_v30, %v9370_v30  ;;  %v5369_v20 = vsub.f32 0.0, %v9367_v22  ;;  %v5370_v57 = vsub.f32 0.0, %v9370_v30 }
 0xddd   : > { %v5364_v8 = vadd.f32 %v5363_v23, %v5362_v47 }
 0xddf   : > { %5365 = vadd.xlane.f32.xlu0 %v5364_v8 }
 0xe6c   : > { %v9383_v61 = vpop.xlane.xlu0 %5365 }
 0xe6d   : > { %v5368_v27 = vmul.f32 %v7872_v21, %v9383_v61 }
 0xe6f   : > { %v5371_v43 = vmul.f32 %v5368_v27, %v9284_v58  ;;  %v5372_v62 = vmul.f32 %v5368_v27, %v9286_v49 }
 0xe71   : > { %v9390_v41 = vadd.f32 %v5371_v43, %v5369_v20  ;;  %v9392_v18 = vadd.f32 %v5372_v62, %v5370_v57 }
 0xe73   : > { %5439 = vmatprep.mubr.f32.mxu0 %v9392_v18  ;;  %5510 = vmatprep.mubr.f32.mxu1 %v9392_v18 }
 0xe74   : > { %5440 = vmatmul.mubr.f32.vlgmr.msra.gmra.mrb[22].mxu0 %v9390_v41  ;;  %5511 = vmatmul.mubr.f32.vlgmr.msra.gmra.mrb[38].mxu1 %v9390_v41 }
 0xe75   : > { %7186 = vmatpush1.bf16.msra.mxu0 %v8773_v2  ;;  %7250 = vmatpush1.bf16.msra.mxu1 %v8664_v39  ;;  %v9798_v39 = vld [vmem:[#allocation50_spill] sm:$0xff]  ;;  %v9815_v2 = vld [vmem:[#allocation43_spill] sm:$0xff] }
 0xe76   : > { %7188 = vmatprep.subr.bf16.mxu0 %v8778_v11  ;;  %7252 = vmatprep.subr.bf16.mxu1 %v8666_v0  ;;  %v9799_v0 = vld [vmem:[#allocation35_spill] sm:$0xff] }
 0xe77   : > { %v9816_v11 = vld [vmem:[#allocation59_spill] sm:$0xff] }
 0xe79   : > { %7190 = vmatpush1.bf16.msra.mxu0 %v8780_v35  ;;  %7254 = vmatpush1.bf16.msra.mxu1 %v8670_v46  ;;  %v9800_v46 = vld [vmem:[#allocation51_spill] sm:$0xff]  ;;  %v9817_v35 = vld [vmem:[#allocation44_spill] sm:$0xff] }
 0xe7a   : > { %7192 = vmatprep.subr.bf16.mxu0 %v8784_v19  ;;  %7256 = vmatprep.subr.bf16.mxu1 %v8673_v48  ;;  %v9801_v48 = vld [vmem:[#allocation36_spill] sm:$0xff] }
 0xe7b   : > { %v9818_v19 = vld [vmem:[#allocation60_spill] sm:$0xff] }
 0xe7d   : > { %7194 = vmatpush1.bf16.msra.mxu0 %v8786_v28  ;;  %7258 = vmatpush1.bf16.msra.mxu1 %v8676_v51  ;;  %v9802_v51 = vld [vmem:[#allocation52_spill] sm:$0xff]  ;;  %v9819_v28 = vld [vmem:[#allocation45_spill] sm:$0xff] }
 0xe7e   : > { %7196 = vmatprep.subr.bf16.mxu0 %v8790_v34  ;;  %7260 = vmatprep.subr.bf16.mxu1 %v8679_v54  ;;  %v9803_v54 = vld [vmem:[#allocation37_spill] sm:$0xff] }
 0xe7f   : > { %v9820_v34 = vld [vmem:[#allocation61_spill] sm:$0xff] }
 0xe81   : > { %7198 = vmatpush1.bf16.msra.mxu0 %v8792_v45  ;;  %7262 = vmatpush1.bf16.msra.mxu1 %v8682_v59  ;;  %v9804_v59 = vld [vmem:[#allocation53_spill] sm:$0xff]  ;;  %v9821_v45 = vld [vmem:[#allocation46_spill] sm:$0xff] }
 0xe82   : > { %7200 = vmatprep.subr.bf16.mxu0 %v8796_v55  ;;  %7264 = vmatprep.subr.bf16.mxu1 %v8685_v60  ;;  %v9805_v60 = vld [vmem:[#allocation38_spill] sm:$0xff] }
 0xe83   : > { %v9822_v55 = vld [vmem:[#allocation62_spill] sm:$0xff] }
 0xe85   : > { %7202 = vmatpush1.bf16.msra.mxu0 %v8798_v1  ;;  %7266 = vmatpush1.bf16.msra.mxu1 %v8688_v3  ;;  %v9806_v3 = vld [vmem:[#allocation54_spill] sm:$0xff]  ;;  %v9823_v1 = vld [vmem:[#allocation47_spill] sm:$0xff] }
 0xe86   : > { %7204 = vmatprep.subr.bf16.mxu0 %v8802_v10  ;;  %7268 = vmatprep.subr.bf16.mxu1 %v8691_v7  ;;  %v9807_v7 = vld [vmem:[#allocation39_spill] sm:$0xff] }
 0xe87   : > { %v9824_v10 = vld [vmem:[#allocation63_spill] sm:$0xff] }
 0xe89   : > { %7206 = vmatpush1.bf16.msra.mxu0 %v8804_v16  ;;  %7270 = vmatpush1.bf16.msra.mxu1 %v8694_v13  ;;  %v9808_v13 = vld [vmem:[#allocation55_spill] sm:$0xff]  ;;  %v9825_v16 = vld [vmem:[#allocation48_spill] sm:$0xff] }
 0xe8a   : > { %7208 = vmatprep.subr.bf16.mxu0 %v8808_v26  ;;  %7272 = vmatprep.subr.bf16.mxu1 %v8697_v15  ;;  %v9809_v15 = vld [vmem:[#allocation40_spill] sm:$0xff] }
 0xe8d   : > { %7210 = vmatpush1.bf16.msra.mxu0 %v8810_v38  ;;  %7274 = vmatpush1.bf16.msra.mxu1 %v8700_v52  ;;  %v9810_v52 = vld [vmem:[#allocation56_spill] sm:$0xff] }
 0xe8e   : > { %7212 = vmatprep.subr.bf16.mxu0 %v8814_v33  ;;  %7276 = vmatprep.subr.bf16.mxu1 %v8703_v24  ;;  %v9811_v24 = vld [vmem:[#allocation41_spill] sm:$0xff] }
 0xe91   : > { %7214 = vmatpush1.bf16.msra.mxu0 %v8816_v25  ;;  %7278 = vmatpush1.bf16.msra.mxu1 %v8706_v36  ;;  %v9812_v36 = vld [vmem:[#allocation57_spill] sm:$0xff] }
 0xe92   : > { %7216 = vmatprep.subr.bf16.mxu0 %v8820_v12  ;;  %7280 = vmatprep.subr.bf16.mxu1 %v8709_v42  ;;  %v9813_v42 = vld [vmem:[#allocation42_spill] sm:$0xff] }
 0xe95   : > { %7218 = vmatpush1.bf16.msra.mxu0 %v8822_v29  ;;  %7282 = vmatpush1.bf16.msra.mxu1 %v8712_v4  ;;  %v9814_v4 = vld [vmem:[#allocation58_spill] sm:$0xff] }
 0xe96   : > { %7220 = vmatprep.subr.bf16.mxu0 %v9798_v39  ;;  %7284 = vmatprep.subr.bf16.mxu1 %v9799_v0 }
 0xe99   : > { %7222 = vmatpush1.bf16.msra.mxu0 %v9800_v46  ;;  %7286 = vmatpush1.bf16.msra.mxu1 %v9801_v48 }
 0xe9a   : > { %7224 = vmatprep.subr.bf16.mxu0 %v9802_v51  ;;  %7288 = vmatprep.subr.bf16.mxu1 %v9803_v54 }
 0xe9d   : > { %7226 = vmatpush1.bf16.msra.mxu0 %v9804_v59  ;;  %7290 = vmatpush1.bf16.msra.mxu1 %v9805_v60 }
 0xe9e   : > { %7228 = vmatprep.subr.bf16.mxu0 %v9806_v3  ;;  %7292 = vmatprep.subr.bf16.mxu1 %v9807_v7 }
 0xea1   : > { %7230 = vmatpush1.bf16.msra.mxu0 %v9808_v13  ;;  %7294 = vmatpush1.bf16.msra.mxu1 %v9809_v15 }
 0xea2   : > { %7232 = vmatprep.subr.bf16.mxu0 %v9810_v52  ;;  %7296 = vmatprep.subr.bf16.mxu1 %v9811_v24 }
 0xea5   : > { %7234 = vmatpush1.bf16.msra.mxu0 %v9812_v36  ;;  %7298 = vmatpush1.bf16.msra.mxu1 %v9813_v42 }
 0xea6   : > { %7236 = vmatprep.subr.bf16.mxu0 %v9814_v4  ;;  %7300 = vmatprep.subr.bf16.mxu1 %v9815_v2 }
 0xea9   : > { %7238 = vmatpush1.bf16.msra.mxu0 %v9816_v11  ;;  %7302 = vmatpush1.bf16.msra.mxu1 %v9817_v35 }
 0xeaa   : > { %7240 = vmatprep.subr.bf16.mxu0 %v9818_v19  ;;  %7304 = vmatprep.subr.bf16.mxu1 %v9819_v28 }
 0xead   : > { %7242 = vmatpush1.bf16.msra.mxu0 %v9820_v34  ;;  %7306 = vmatpush1.bf16.msra.mxu1 %v9821_v45 }
 0xeae   : > { %7244 = vmatprep.subr.bf16.mxu0 %v9822_v55  ;;  %7308 = vmatprep.subr.bf16.mxu1 %v9823_v1 }
 0xeb1   : > { %7246 = vmatpush1.bf16.msra.mxu0 %v9824_v10  ;;  %7310 = vmatpush1.bf16.msra.mxu1 %v9825_v16 }
 0xf47   : > { %v5441_v26 = vpop.f32.mrb[22].mxu0  ;;  %v5512_v38 = vpop.f32.mrb[38].mxu1 }
 0xf48   : > { %v5517_v33 = vmul.f32 %v5441_v26, %v9390_v41  ;;  %v5522_v25 = vmul.f32 %v5512_v38, %v9390_v41  ;;  %v5535_v12 = vmul.f32 %v5512_v38, %v8950_v6  ;;  %v5443_v29 = vpop.f32.mrb[23].mxu0  ;;  %v5514_v44 = vpop.f32.mrb[39].mxu1 }
 0xf49   : > { %v5518_v58 = vmul.f32 %v5443_v29, %v9392_v18  ;;  %v5523_v49 = vmul.f32 %v5514_v44, %v9392_v18  ;;  %v5536_v53 = vmul.f32 %v5514_v44, %v8950_v6 }
 0xf4a   : > { %v5537_v31 = vadd.f32 %v5535_v12, %v5441_v26 }
 0xf4b   : > { %v5538_v40 = vadd.f32 %v5536_v53, %v5443_v29  ;;  %v5524_v5 = vadd.f32 %v5523_v49, %v5522_v25  ;;  %v5519_v56 = vadd.f32 %v5518_v58, %v5517_v33 }
 0xf4d   : > { %5525 = vadd.xlane.f32.xlu1 %v5524_v5  ;;  %5520 = vadd.xlane.f32.xlu0 %v5519_v56 }
 0xfda   : > { %v5526_v9 = vpop.xlane.xlu1 %5525  ;;  %v5521_v63 = vpop.xlane.xlu0 %5520 }
 0xfdb   : > { %v5527_v50 = vmul.f32 %v5526_v9, %v8950_v6 }
 0xfdd   : > { %v5528_v37 = vadd.f32 %v5527_v50, %v5521_v63 }
 0xfdf   : > { %7873 = vrcp.f32 %v5528_v37 }
 0xfe0   : > { %7875 = vrcp.f32 %v9383_v61 }
 0xfe9   : > { %v7874_v17 = vpop.eup %7873 }
 0xfea   : > { %v5530_v47 = vmul.f32 %v7874_v17, %v9383_v61  ;;  %v7876_v48 = vpop.eup %7875 }
 0xfec   : > { %v5539_v23 = vmul.f32 %v5537_v31, %v5530_v47  ;;  %v5540_v8 = vmul.f32 %v5538_v40, %v5530_v47  ;;  %v5531_v21 = vmul.f32 %v5530_v47, %v9390_v41  ;;  %v5532_v27 = vmul.f32 %v5530_v47, %v9392_v18 }
 0xfee   : > { %v5541_v20 = vadd.f32 %v5539_v23, %v9367_v22  ;;  %v5542_v57 = vadd.f32 %v5540_v8, %v9370_v30  ;;  %v5533_v43 = vadd.f32 %v5531_v21, %v9373_v32  ;;  %v5534_v62 = vadd.f32 %v5532_v27, %v9376_v14 }
 0xff0   : > { %v5543_v39 = vmul.f32 %v5541_v20, %v5541_v20  ;;  %v5544_v0 = vmul.f32 %v5542_v57, %v5542_v57  ;;  %v5550_v59 = vsub.f32 0.0, %v5541_v20  ;;  %v5551_v60 = vsub.f32 0.0, %v5542_v57 }
 0xff2   : > { %v5545_v46 = vadd.f32 %v5544_v0, %v5543_v39 }
 0xff4   : > { %5546 = vadd.xlane.f32.xlu1 %v5545_v46 }
0x1081   : > { %v5547_v51 = vpop.xlane.xlu1 %5546 }
0x1082   : > { %v5549_v54 = vmul.f32 %v7876_v48, %v5547_v51 }
0x1084   : > { %v5552_v3 = vmul.f32 %v5549_v54, %v9390_v41  ;;  %v5553_v22 = vmul.f32 %v5549_v54, %v9392_v18 }
0x1086   : > { %v5554_v30 = vadd.f32 %v5552_v3, %v5550_v59  ;;  %v5555_v7 = vadd.f32 %v5553_v22, %v5551_v60 }
0x1088   : > { %5620 = vmatprep.mubr.f32.mxu0 %v5555_v7  ;;  %5691 = vmatprep.mubr.f32.mxu1 %v5555_v7 }
0x1089   : > { %5621 = vmatmul.mubr.f32.vlgmr.msra.gmra.mrb[24].mxu0 %v5554_v30  ;;  %5692 = vmatmul.mubr.f32.vlgmr.msra.gmra.mrb[40].mxu1 %v5554_v30 }
0x115c   : > { %v5622_v32 = vpop.f32.mrb[24].mxu0  ;;  %v5693_v14 = vpop.f32.mrb[40].mxu1 }
0x115d   : > { %v5698_v13 = vmul.f32 %v5622_v32, %v5554_v30  ;;  %v5703_v15 = vmul.f32 %v5693_v14, %v5554_v30  ;;  %v5624_v61 = vpop.f32.mrb[25].mxu0  ;;  %v5695_v52 = vpop.f32.mrb[41].mxu1 }
0x115e   : > { %v5699_v24 = vmul.f32 %v5624_v61, %v5555_v7  ;;  %v5704_v36 = vmul.f32 %v5695_v52, %v5555_v7 }
0x1160   : > { %v5705_v42 = vadd.f32 %v5704_v36, %v5703_v15  ;;  %v5700_v41 = vadd.f32 %v5699_v24, %v5698_v13 }
0x1162   : > { %5706 = vadd.xlane.f32.xlu0 %v5705_v42  ;;  %5701 = vadd.xlane.f32.xlu1 %v5700_v41 }
0x11ef   : > { %v5707_v18 = vpop.xlane.xlu0 %5706  ;;  %v5702_v2 = vpop.xlane.xlu1 %5701 }
0x11f0   : > { %v5708_v4 = vmul.f32 %v5707_v18, %v8950_v6 }
0x11f2   : > { %v5709_v11 = vadd.f32 %v5708_v4, %v5702_v2 }
0x11f4   : > { %7877 = vrcp.f32 %v5709_v11 }
0x11fe   : > { %v7878_v35 = vpop.eup %7877 }
0x11ff   : > { %v5711_v19 = vmul.f32 %v7878_v35, %v5547_v51 }
0x1201   : > { %v5712_v28 = vmul.f32 %v5711_v19, %v5554_v30  ;;  %v5713_v34 = vmul.f32 %v5711_v19, %v5555_v7 }
0x1203   : > { %v5714_v45 = vadd.f32 %v5712_v28, %v5533_v43  ;;  %v5715_v55 = vadd.f32 %v5713_v34, %v5534_v62 }
0x1205   : > { %5716 = vst [vmem:[#allocation2] sm:$0xff] %v5714_v45  ;;  %5717 = vst [vmem:[#allocation2 + $0x8] sm:$0xff] %v5715_v55 }
0x1206   : > { %5718 = vst [vmem:[%s8559_s13] sm:$0xff] %v5714_v45  ;;  %5719 = vst [vmem:[%s8559_s13 + $0x8] sm:$0xff] %v5715_v55 }
0x1207   : > { %8131 = shalt.err (!%p8128_p0)
}
0x1208   : > { %s8132_s23 = scalar_lea.hbm %s9483_s12, 256  ;;  %s8136_s25 = scalar_lea.hbm %s9827_s22, 1024 }
0x1209   : > { %p8133_p2 = scmp.ne.s32.totalorder %s9483_s12, %s8132_s23  ;;  %p8137_p9 = scmp.lt.u32.totalorder %s9483_s12, %s9827_s22 }
0x120a   : > { %p8138_p10 = scmp.lt.u32.totalorder %s8136_s25, %s8132_s23  ;;  %p8140_p3 = scmp.lt.u32.totalorder %s8132_s23, %s9483_s12 }
0x120b   : > { %p8134_p6 = pnand %p8133_p2, %p9828_p1 }
0x120c   : > { %p8139_p11 = por %p8138_p10, %p8137_p9 }
0x120d   : > { %p8135_p5 = pneg %p8134_p6 }
0x120e   : > { %p8141_p4 = por %p8140_p3, %p8139_p11 }
0x1210   : > { %p8142_p7 = pnand %p8141_p4, %p8135_p5 }
0x1212   : > { %8145 = shalt.err (!%p8142_p7)
}
0x1213   : > { %7373 = dma.vmem_to_hbm [thread:$0]  (%p9828_p1), %s9485_s14, 256, %s9483_s12, %s5721_s21  }
0x1214 PF: > { %s9829_s16 = sld [smem:[#allocation29_spill]]  ;;  %s9830_s15 = sld [smem:[#allocation27_spill]] }
0x1215   : > { %s9831_s19 = sld [smem:[#allocation33_spill]] }
0x121a   : > { %p7425_p8 = scmp.ge.s32.totalorder %s9829_s16, 2  ;;  %s5747_s30 = sand.u32 1, %s9830_s15  }
0x121b   : > { %p9832_p12 = scmp.ne.s32.totalorder %s9831_s19, 0  ;;  %s5748_s17 = scalar_lea.sflag [#allocation5], %s5747_s30 }
0x121d   : > { %p7404_p13 = pnand %p7425_p8, %p9832_p12 }
0x121f   : > { %8187 = dma.done.wait (!%p7404_p13), %s5748_s17, 256  }
0x1220   : > { %8189 = vsyncadd (!%p7404_p13), %s5748_s17, 4294967040  ;;  %s9833_s20 = sld [smem:[#allocation30_spill]]  ;;  %s9834_s28 = sld [smem:[#allocation28_spill]] }
0x1221   : > { %s9835_s19 = sld [smem:[#allocation31_spill]]  ;;  %s9836_s17 = smov %s8196_s18 }
0x1226   : > { %p27_p0 = scmp.ge.s32.totalorder %s9833_s20, 6   ;;  %s9837_s18 = smov %s9834_s28 }
0x1228   :  { %29 = sbr.rel (!%p27_p0) target bundleno = 12 (0xc), region = 138 }
0x122f   :  { %5753 = vsyncpa [#allocation4], 1 }
0x1230   :  { %5755 = vsyncpa [#allocation4 + $0x1], 1 }
0x1231   :  { %5756 = vsyncpa [#allocation9], 1 }
0x1232   :  { %5757 = vsyncpa [#allocation12], 1 }
0x1233   :  { %5758 = vsyncpa [#allocation15], 1 }
0x1234   :  { %5759 = vsyncpa [#allocation18], 1 }
0x1235   :  { %5760 = vsyncpa [#allocation5], 1 }
0x1236   :  { %5762 = vsyncpa [#allocation5 + $0x1], 1 }
0x1237   :  { %5763 = vsyncpa [#allocation6], 1 }
0x1238   :  { %5765 = vsyncpa [#allocation6 + $0x1], 1 }

</bundles_post_ra>
